<compile_context>
chip_gen: v7x
topology: tpu7x:2x2x1
jax: 0.10.0
libtpu: 0.0.40
codegen_flags: <defaults>
</compile_context>

<pallas_src>
import functools

import jax
import jax.numpy as jnp
from jax.experimental import pallas as pl
from jax.experimental.pallas import tpu as pltpu

# ---------------- small synthetic config (real model: D=768, depth=12, 1000 classes) ----
B = 2
C = 3
IMG = 28
PATCH = 14
D = 128              # embed dim (multiple of 128 -> lane-aligned blocks)
NH = 4               # heads
HD = D // NH         # head dim
DEPTH = 4            # blocks (== n of get_intermediate_layers, like the real 4-layer head)
R = 4                # register tokens (with_registers=True)
MLP = 4 * D
NUM_CLASSES = 10
HEAD_PAD = 128       # lane-dense padded class dim; sliced to NUM_CLASSES
EPS = 1e-6

GELU_ACT = "gelu_exact"           # may be downgraded in __main__ if erf can't lower

# Tiling targets.
TM = 512             # row tile target for weight-streaming GEMMs
TN = 256             # output-column tile target
TQ = 256             # attention query tile target
VMEM_LIMIT_BYTES = 48 * 1024 * 1024   # > 32 MiB scoped default, < v7x 64 MiB physical


def _round_up(v, m):
    return ((v + m - 1) // m) * m


NP_ = (IMG // PATCH) ** 2         # patches
N_VALID = 1 + R + NP_             # cls + registers + patches
# Pad tokens so B*N_PAD divides the big row tile when the flattened M exceeds it; otherwise
# just pad to the bf16 sublane multiple (16).
_n16 = _round_up(N_VALID, 16)
N_PAD = _round_up(N_VALID, max(16, TM // B)) if B * _n16 > TM else _n16


def _tile(dim, target, align):
    """Largest aligned divisor of dim that is <= target (full dim if dim <= target)."""
    if dim <= target:
        return dim
    t = (min(target, dim) // align) * align
    while t >= align:
        if dim % t == 0:
            return t
        t -= align
    return dim   # fallback: full dim (always a legal block)


def _gelu(y, act):
    if act == "gelu_exact":
        return jax.nn.gelu(y, approximate=False)   # nn.GELU default (erf)
    if act == "gelu_tanh":
        return jax.nn.gelu(y, approximate=True)
    return y


# ---------------- fused LayerNorm -> matmul (+ optional GELU), LN hoisted to scratch ----
def _ln_mm_kernel(x_ref, g_ref, be_ref, w_ref, b_ref, o_ref, xn_ref, *, act):
    # LayerNorm of this row tile is computed only once (j == 0) and cached in bf16 scratch;
    # every output-column tile reuses it (j axis is "arbitrary", so this order is guaranteed).
    @pl.when(pl.program_id(1) == 0)
    def _():
        x = x_ref[...].astype(jnp.float32)
        mu = jnp.mean(x, axis=-1, keepdims=True)
        var = jnp.mean(jnp.square(x - mu), axis=-1, keepdims=True)
        xn = (x - mu) * jax.lax.rsqrt(var + EPS)
        xn = xn * g_ref[...].astype(jnp.float32) + be_ref[...].astype(jnp.float32)
        xn_ref[...] = xn.astype(xn_ref.dtype)

    y = jnp.dot(xn_ref[...], w_ref[...].astype(jnp.bfloat16),
                preferred_element_type=jnp.float32)
    y = y + b_ref[...].astype(jnp.float32)
    y = _gelu(y, act)
    o_ref[...] = y.astype(o_ref.dtype)


def ln_matmul(x, g, be, w, b, act="none", out_dtype=None):
    """out = act(LayerNorm(x) @ w + b).  x:(M,K) f32, w:(K,N) bf16."""
    M, K = x.shape
    Nout = w.shape[1]
    out_dtype = out_dtype or x.dtype
    tm = _tile(M, TM, 16)
    tn = _tile(Nout, TN, 128)
    cost = pl.CostEstimate(
        flops=2 * M * K * Nout,
        transcendentals=(M * Nout if act.startswith("gelu") else 0),
        bytes_accessed=int(x.size * x.dtype.itemsize + w.size * w.dtype.itemsize
                           + M * Nout * 2))
    return pl.pallas_call(
        functools.partial(_ln_mm_kernel, act=act),
        out_shape=jax.ShapeDtypeStruct((M, Nout), out_dtype),
        grid=(M // tm, Nout // tn),
        in_specs=[pl.BlockSpec((tm, K), lambda i, j: (i, 0)),
                  pl.BlockSpec((1, K), lambda i, j: (0, 0)),
                  pl.BlockSpec((1, K), lambda i, j: (0, 0)),
                  pl.BlockSpec((K, tn), lambda i, j: (0, j)),
                  pl.BlockSpec((1, tn), lambda i, j: (0, j))],
        out_specs=pl.BlockSpec((tm, tn), lambda i, j: (i, j)),
        scratch_shapes=[pltpu.VMEM((tm, K), jnp.bfloat16)],
        compiler_params=pltpu.CompilerParams(
            dimension_semantics=("parallel", "arbitrary"),
            vmem_limit_bytes=VMEM_LIMIT_BYTES),
        cost_estimate=cost,
    )(x, g.reshape(1, K), be.reshape(1, K), w, b.reshape(1, Nout))


# ---------------- plain matmul (+ optional GELU), used for patch embed & head --------
def _mm_kernel(x_ref, w_ref, b_ref, o_ref, *, act):
    y = jnp.dot(x_ref[...].astype(jnp.bfloat16), w_ref[...].astype(jnp.bfloat16),
                preferred_element_type=jnp.float32)
    y = y + b_ref[...].astype(jnp.float32)
    y = _gelu(y, act)
    o_ref[...] = y.astype(o_ref.dtype)


def matmul(x, w, b, act="none", out_dtype=None):
    M, K = x.shape
    Nout = w.shape[1]
    out_dtype = out_dtype or x.dtype
    tm = _tile(M, TM, 8)
    tn = _tile(Nout, TN, 128)
    cost = pl.CostEstimate(
        flops=2 * M * K * Nout,
        transcendentals=(M * Nout if act.startswith("gelu") else 0),
        bytes_accessed=int(x.size * x.dtype.itemsize + w.size * w.dtype.itemsize
                           + M * Nout * 4))
    return pl.pallas_call(
        functools.partial(_mm_kernel, act=act),
        out_shape=jax.ShapeDtypeStruct((M, Nout), out_dtype),
        grid=(M // tm, Nout // tn),
        in_specs=[pl.BlockSpec((tm, K), lambda i, j: (i, 0)),
                  pl.BlockSpec((K, tn), lambda i, j: (0, j)),
                  pl.BlockSpec((1, tn), lambda i, j: (0, j))],
        out_specs=pl.BlockSpec((tm, tn), lambda i, j: (i, j)),
        compiler_params=pltpu.CompilerParams(
            dimension_semantics=("parallel", "parallel"),
            vmem_limit_bytes=VMEM_LIMIT_BYTES),
        cost_estimate=cost,
    )(x, w, b.reshape(1, Nout))


# ---------------- full-K matmul fused with bias + LayerScale + residual add ---------
def _mm_scale_resid_kernel(x_ref, w_ref, b_ref, ls_ref, r_ref, o_ref):
    y = jnp.dot(x_ref[...].astype(jnp.bfloat16), w_ref[...].astype(jnp.bfloat16),
                preferred_element_type=jnp.float32)
    y = (y + b_ref[...].astype(jnp.float32)) * ls_ref[...].astype(jnp.float32)
    o_ref[...] = (r_ref[...].astype(jnp.float32) + y).astype(o_ref.dtype)


def matmul_scale_residual(x, w, b, ls, resid):
    """out = resid + ls * (x @ w + b).  x:(M,K) bf16, w:(K,N) bf16, resid:(M,N) f32."""
    M, K = x.shape
    Nout = w.shape[1]
    tm = _tile(M, TM, 16)
    tn = _tile(Nout, TN, 128)
    cost = pl.CostEstimate(
        flops=2 * M * K * Nout, transcendentals=0,
        bytes_accessed=int(x.size * x.dtype.itemsize + w.size * w.dtype.itemsize
                           + 2 * M * Nout * 4))
    return pl.pallas_call(
        _mm_scale_resid_kernel,
        out_shape=jax.ShapeDtypeStruct((M, Nout), resid.dtype),
        grid=(M // tm, Nout // tn),
        in_specs=[pl.BlockSpec((tm, K), lambda i, j: (i, 0)),
                  pl.BlockSpec((K, tn), lambda i, j: (0, j)),
                  pl.BlockSpec((1, tn), lambda i, j: (0, j)),
                  pl.BlockSpec((1, tn), lambda i, j: (0, j)),
                  pl.BlockSpec((tm, tn), lambda i, j: (i, j))],
        out_specs=pl.BlockSpec((tm, tn), lambda i, j: (i, j)),
        compiler_params=pltpu.CompilerParams(
            dimension_semantics=("parallel", "parallel"),
            vmem_limit_bytes=VMEM_LIMIT_BYTES),
        cost_estimate=cost,
    )(x, w, b.reshape(1, Nout), ls.reshape(1, Nout), resid)


# ---------------- row-tiled LayerNorm (final norm) ----------------
def _ln_kernel(x_ref, g_ref, b_ref, o_ref):
    x = x_ref[...].astype(jnp.float32)
    mu = jnp.mean(x, axis=-1, keepdims=True)
    var = jnp.mean(jnp.square(x - mu), axis=-1, keepdims=True)
    xn = (x - mu) * jax.lax.rsqrt(var + EPS)
    o_ref[...] = (xn * g_ref[...] + b_ref[...]).astype(o_ref.dtype)


def layernorm(x, g, b):
    M, K = x.shape
    tm = _tile(M, 256, 8)
    return pl.pallas_call(
        _ln_kernel,
        out_shape=jax.ShapeDtypeStruct((M, K), x.dtype),
        grid=(M // tm,),
        in_specs=[pl.BlockSpec((tm, K), lambda i: (i, 0)),
                  pl.BlockSpec((1, K), lambda i: (0, 0)),
                  pl.BlockSpec((1, K), lambda i: (0, 0))],
        out_specs=pl.BlockSpec((tm, K), lambda i: (i, 0)),
        compiler_params=pltpu.CompilerParams(dimension_semantics=("parallel",)),
    )(x, g.reshape(1, K), b.reshape(1, K))


# ---------------- q-tiled attention over packed QKV ----------------
def _attn_kernel(q_ref, k_ref, v_ref, o_ref, *, nh, hd, n_valid, scale):
    q = q_ref[0]                      # (tq, D) bf16
    k = k_ref[0]                      # (N,  D) bf16 (resident across q tiles)
    v = v_ref[0]
    tq = q.shape[0]
    nk = k.shape[0]
    kmask = jax.lax.broadcasted_iota(jnp.int32, (tq, nk), 1) < n_valid
    outs = []
    for h in range(nh):               # static unroll over heads; all VMEM-local
        sl = slice(h * hd, (h + 1) * hd)
        # contract over head dim of q and k directly (no k transpose through the XLU)
        s = jnp.einsum("qd,kd->qk", q[:, sl], k[:, sl],
                       preferred_element_type=jnp.float32) * scale
        s = jnp.where(kmask, s, -1e30)            # mask padded key positions
        s = s - jnp.max(s, axis=-1, keepdims=True)
        p = jnp.exp(s)
        p = p / jnp.sum(p, axis=-1, keepdims=True)   # exact divide (matches torch softmax)
        outs.append(jnp.dot(p.astype(jnp.bfloat16), v[:, sl],
                            preferred_element_type=jnp.float32).astype(o_ref.dtype))
    # single lane-dense (tq, D) store; per-head results already bf16 (small live set)
    o_ref[0] = jnp.concatenate(outs, axis=-1)


def attention(qkv, n_valid, nh):
    """qkv: (B, N, 3D) bf16 packed [Q | K | V] along the last dim -> (B, N, D) bf16."""
    b, n, d3 = qkv.shape
    d = d3 // 3
    hd = d // nh
    scale = float(hd) ** -0.5
    tq = _tile(n, TQ, 16)
    kernel = functools.partial(_attn_kernel, nh=nh, hd=hd, n_valid=n_valid, scale=scale)
    return pl.pallas_call(
        kernel,
        out_shape=jax.ShapeDtypeStruct((b, n, d), qkv.dtype),
        grid=(b, n // tq),
        in_specs=[pl.BlockSpec((1, tq, d), lambda i, qi: (i, qi, 0)),   # Q column block
                  pl.BlockSpec((1, n, d), lambda i, qi: (i, 0, 1)),     # K column block
                  pl.BlockSpec((1, n, d), lambda i, qi: (i, 0, 2))],    # V column block
        out_specs=pl.BlockSpec((1, tq, d), lambda i, qi: (i, qi, 0)),
        compiler_params=pltpu.CompilerParams(
            dimension_semantics=("parallel", "parallel"),
            vmem_limit_bytes=VMEM_LIMIT_BYTES),
    )(qkv, qkv, qkv)


# ---------------- model (thin JAX glue around the fused kernels) ----------------
def block_forward(xt2d, p):
    # xt2d: (B*N_PAD, D) f32 residual stream
    # attention branch: x + ls1 * proj(attn(LN1(x)))
    qkv = ln_matmul(xt2d, p["ln1_g"], p["ln1_b"], p["qkv_w"], p["qkv_b"],
                    out_dtype=jnp.bfloat16)                           # (B*N, 3D) bf16
    o = attention(qkv.reshape(B, N_PAD, 3 * D), N_VALID, NH)          # (B, N, D) bf16
    xt2d = matmul_scale_residual(o.reshape(B * N_PAD, D),
                                 p["proj_w"], p["proj_b"], p["ls1"], xt2d)
    # MLP branch: x + ls2 * fc2(GELU(fc1(LN2(x))))
    h = ln_matmul(xt2d, p["ln2_g"], p["ln2_b"], p["fc1_w"], p["fc1_b"],
                  act=GELU_ACT, out_dtype=jnp.bfloat16)               # (B*N, MLP) bf16
    xt2d = matmul_scale_residual(h, p["fc2_w"], p["fc2_b"], p["ls2"], xt2d)
    return xt2d


def dinov2_classification_forward(x, params):
    """x: (B, C, H, W) NCHW float32 -> logits (B, NUM_CLASSES)."""
    b, c, hh, ww = x.shape
    gh, gw = hh // PATCH, ww // PATCH

    # patch embed: stride-14 conv == per-patch matmul (flatten order (c, ph, pw))
    patches = x.reshape(b, c, gh, PATCH, gw, PATCH)
    patches = patches.transpose(0, 2, 4, 1, 3, 5).reshape(b * gh * gw, c * PATCH * PATCH)
    tok = matmul(patches, params["patch_w"], params["patch_b"]).reshape(b, gh * gw, D)

    # prepare_tokens_with_masks: cls + pos, registers after cls, pad N to the tile multiple
    cls = jnp.broadcast_to(params["cls_token"], (b, 1, D))
    xt = jnp.concatenate([cls, tok], axis=1) + params["pos_embed"]
    regs = jnp.broadcast_to(params["reg_tokens"], (b, R, D))
    xt = jnp.concatenate([xt[:, :1], regs, xt[:, 1:]], axis=1)       # (B, N_VALID, D)
    xt = jnp.concatenate(
        [xt, jnp.zeros((b, N_PAD - N_VALID, D), xt.dtype)], axis=1)  # (B, N_PAD, D)

    xt2d = xt.reshape(b * N_PAD, D)
    collected = []
    for p in params["blocks"]:
        xt2d = block_forward(xt2d, p)
        collected.append(xt2d)
    collected = collected[-4:]   # get_intermediate_layers(n=4, norm=True)

    # final norm: cls rows only for all but the last layer; full tokens for the last layer
    cls_rows = jnp.concatenate(
        [o.reshape(b, N_PAD, D)[:, 0] for o in collected[:-1]], axis=0)       # (3B, D)
    cls_rows = layernorm(cls_rows, params["norm_g"], params["norm_b"])
    last = layernorm(collected[-1],
                     params["norm_g"], params["norm_b"]).reshape(b, N_PAD, D)

    n_layers = len(collected)
    cls_list = [cls_rows[i * b:(i + 1) * b] for i in range(n_layers - 1)] + [last[:, 0]]
    # TODO(synk): tiny patch-token mean reduction / concat kept in plain-JAX glue.
    patch_mean = jnp.mean(last[:, 1 + R:1 + R + NP_], axis=1)

    # head input: [cls_-4, cls_-3, cls_-2, cls_-1, mean(patch tokens of last block)]
    head_in = jnp.concatenate(cls_list + [patch_mean], axis=-1)               # (B, 5D)
    logits = matmul(head_in, params["head_w"], params["head_b"])              # (B, 128)
    return logits[:, :NUM_CLASSES]


# ---------------- deterministic synthetic parameters (bf16 matmul weights) ----------
def init_params(key):
    keys = iter(jax.random.split(key, 64))
    bf = jnp.bfloat16

    def nrm(shape, scale=0.02, dtype=jnp.float32):
        return (scale * jax.random.normal(next(keys), shape, dtype=jnp.float32)).astype(dtype)

    params = {
        "patch_w": nrm((C * PATCH * PATCH, D), dtype=bf),
        "patch_b": nrm((D,)),
        "cls_token": nrm((1, 1, D)),
        "reg_tokens": nrm((1, R, D)),
        "pos_embed": nrm((1, 1 + NP_, D)),
        "norm_g": jnp.ones((D,), jnp.float32),
        "norm_b": jnp.zeros((D,), jnp.float32),
        "head_w": nrm((5 * D, HEAD_PAD), dtype=bf),
        "head_b": jnp.zeros((HEAD_PAD,), jnp.float32),
        "blocks": [],
    }
    for _ in range(DEPTH):
        params["blocks"].append({
            "ln1_g": jnp.ones((D,), jnp.float32), "ln1_b": jnp.zeros((D,), jnp.float32),
            "qkv_w": nrm((D, 3 * D), dtype=bf), "qkv_b": nrm((3 * D,)),
            "proj_w": nrm((D, D), dtype=bf), "proj_b": nrm((D,)),
            "ls1": jnp.ones((D,), jnp.float32),      # LayerScale init_values=1.0
            "ln2_g": jnp.ones((D,), jnp.float32), "ln2_b": jnp.zeros((D,), jnp.float32),
            "fc1_w": nrm((D, MLP), dtype=bf), "fc1_b": nrm((MLP,)),
            "fc2_w": nrm((MLP, D), dtype=bf), "fc2_b": nrm((D,)),
            "ls2": jnp.ones((D,), jnp.float32),
        })
    return params


if __name__ == "__main__":
    # Probe whether exact (erf) GELU lowers on this backend; fall back to tanh approx if not.
    try:
        jax.block_until_ready(
            matmul(jnp.zeros((8, D), jnp.float32),
                   jnp.zeros((D, D), jnp.bfloat16),
                   jnp.zeros((D,), jnp.float32), act="gelu_exact"))
    except Exception:
        # TODO(synk): erf not lowerable here; tanh-GELU differs slightly from nn.GELU exact.
        GELU_ACT = "gelu_tanh"

    key = jax.random.PRNGKey(0)
    pkey, xkey = jax.random.split(key)
    params = init_params(pkey)
    x = jax.random.normal(xkey, (B, C, IMG, IMG), dtype=jnp.float32)

    fwd = jax.jit(dinov2_classification_forward)
    logits = fwd(x, params)
    jax.block_until_ready(logits)

    assert logits.shape == (B, NUM_CLASSES)
    assert bool(jnp.all(jnp.isfinite(logits)))
    print("KERNEL_OK")
</pallas_src>

<mosaic_0001>
module attributes {stable_mosaic.version = 11 : i64} {
  func.func @_mm_kernel(%arg0: i32, %arg1: i32, %arg2: memref<8x588xf32, #tpu.memory_space<vmem>>, %arg3: memref<588x128xbf16, #tpu.memory_space<vmem>>, %arg4: memref<1x128xf32, #tpu.memory_space<vmem>>, %arg5: memref<8x128xf32, #tpu.memory_space<vmem>>) attributes {dimension_semantics = [#tpu.dimension_semantics<parallel>, #tpu.dimension_semantics<parallel>], iteration_bounds = array<i64: 1, 1>, scalar_prefetch = 0 : i64, scratch_operands = 0 : i64, tpu.core_type = #tpu.core_type<tc>, window_params = [{transform_indices = @transform_0, window_bounds = array<i64: 8, 588>}, {transform_indices = @transform_1, window_bounds = array<i64: 588, 128>}, {transform_indices = @transform_2, window_bounds = array<i64: 1, 128>}, {transform_indices = @transform_3, window_bounds = array<i64: 8, 128>}]} {
    %c0 = arith.constant 0 : index
    %c0_0 = arith.constant 0 : index
    %0 = vector.load %arg2[%c0, %c0_0] : memref<8x588xf32, #tpu.memory_space<vmem>>, vector<8x588xf32>
    %1 = arith.truncf %0 : vector<8x588xf32> to vector<8x588xbf16>
    %c0_1 = arith.constant 0 : index
    %c0_2 = arith.constant 0 : index
    %2 = vector.load %arg3[%c0_1, %c0_2] : memref<588x128xbf16, #tpu.memory_space<vmem>>, vector<588x128xbf16>
    %cst = arith.constant dense<0.000000e+00> : vector<8x128xf32>
    %3 = tpu.matmul %1, %2, %cst {dimension_numbers = #tpu.dot_dimension_numbers<[1], [0], [0], [1], [0, 0, 1, 1], [], []>} : vector<8x588xbf16>, vector<588x128xbf16>, vector<8x128xf32> -> vector<8x128xf32>
    %c0_3 = arith.constant 0 : index
    %c0_4 = arith.constant 0 : index
    %4 = vector.load %arg4[%c0_3, %c0_4] : memref<1x128xf32, #tpu.memory_space<vmem>>, vector<1x128xf32>
    %5 = vector.broadcast %4 : vector<1x128xf32> to vector<8x128xf32>
    %6 = arith.addf %3, %5 : vector<8x128xf32>
    %c0_5 = arith.constant 0 : index
    %c0_6 = arith.constant 0 : index
    %7 = vector.load %arg5[%c0_5, %c0_6] : memref<8x128xf32, #tpu.memory_space<vmem>>, vector<8x128xf32>
    tpu.vector_store %arg5[%c0_5, %c0_6], %6 {strides = array<i32>} : memref<8x128xf32, #tpu.memory_space<vmem>>, vector<8x128xf32>,
    return
  }
  func.func @transform_0(%arg0: i32, %arg1: i32) -> (i32, i32) {
    %c0_i32 = arith.constant 0 : i32
    %c0_i32_0 = arith.constant 0 : i32
    return %arg0, %c0_i32 : i32, i32
  }
  func.func @transform_1(%arg0: i32, %arg1: i32) -> (i32, i32) {
    %c0_i32 = arith.constant 0 : i32
    %c0_i32_0 = arith.constant 0 : i32
    return %c0_i32, %arg1 : i32, i32
  }
  func.func @transform_2(%arg0: i32, %arg1: i32) -> (i32, i32) {
    %c0_i32 = arith.constant 0 : i32
    %c0_i32_0 = arith.constant 0 : i32
    return %c0_i32, %arg1 : i32, i32
  }
  func.func @transform_3(%arg0: i32, %arg1: i32) -> (i32, i32) {
    %c0_i32 = arith.constant 0 : i32
    return %arg0, %arg1 : i32, i32
  }
}

module attributes {stable_mosaic.version = 11 : i64} {
  func.func @_ln_mm_kernel(%arg0: i32, %arg1: i32, %arg2: memref<32x128xf32, #tpu.memory_space<vmem>>, %arg3: memref<1x128xf32, #tpu.memory_space<vmem>>, %arg4: memref<1x128xf32, #tpu.memory_space<vmem>>, %arg5: memref<128x128xbf16, #tpu.memory_space<vmem>>, %arg6: memref<1x128xf32, #tpu.memory_space<vmem>>, %arg7: memref<32x128xbf16, #tpu.memory_space<vmem>>, %arg8: memref<32x128xbf16, #tpu.memory_space<vmem>>) attributes {dimension_semantics = [#tpu.dimension_semantics<parallel>, #tpu.dimension_semantics<arbitrary>], iteration_bounds = array<i64: 1, 3>, scalar_prefetch = 0 : i64, scratch_operands = 1 : i64, tpu.core_type = #tpu.core_type<tc>, window_params = [{transform_indices = @transform_0, window_bounds = array<i64: 32, 128>}, {pipeline_mode = #tpu.pipeline_mode<synchronous>, transform_indices = @transform_1, window_bounds = array<i64: 1, 128>}, {pipeline_mode = #tpu.pipeline_mode<synchronous>, transform_indices = @transform_2, window_bounds = array<i64: 1, 128>}, {transform_indices = @transform_3, window_bounds = array<i64: 128, 128>}, {transform_indices = @transform_4, window_bounds = array<i64: 1, 128>}, {transform_indices = @transform_5, window_bounds = array<i64: 32, 128>}]} {
    %c0_i32 = arith.constant 0 : i32
    %0 = arith.cmpi eq, %arg1, %c0_i32 : i32
    %1 = arith.extui %0 : i1 to i32
    %c0_i32_0 = arith.constant 0 : i32
    %2 = arith.cmpi ne, %1, %c0_i32_0 : i32
    scf.if %2 {
      %c0_8 = arith.constant 0 : index
      %c0_9 = arith.constant 0 : index
      %11 = vector.load %arg2[%c0_8, %c0_9] : memref<32x128xf32, #tpu.memory_space<vmem>>, vector<32x128xf32>
      %cst_10 = arith.constant dense<0.000000e+00> : vector<32xf32>
      %12 = vector.multi_reduction <add>, %11, %cst_10 [1] : vector<32x128xf32> to vector<32xf32>
      %13 = vector.shape_cast %12 : vector<32xf32> to vector<32x1xf32>
      %cst_11 = arith.constant 1.280000e+02 : f32
      %14 = vector.broadcast %cst_11 : f32 to vector<32x1xf32>
      %15 = arith.divf %13, %14 : vector<32x1xf32>
      %16 = vector.broadcast %15 : vector<32x1xf32> to vector<32x128xf32>
      %17 = arith.subf %11, %16 : vector<32x128xf32>
      %18 = arith.mulf %17, %17 : vector<32x128xf32>
      %cst_12 = arith.constant dense<0.000000e+00> : vector<32xf32>
      %19 = vector.multi_reduction <add>, %18, %cst_12 [1] : vector<32x128xf32> to vector<32xf32>
      %20 = vector.shape_cast %19 : vector<32xf32> to vector<32x1xf32>
      %cst_13 = arith.constant 1.280000e+02 : f32
      %21 = vector.broadcast %cst_13 : f32 to vector<32x1xf32>
      %22 = arith.divf %20, %21 : vector<32x1xf32>
      %23 = vector.broadcast %15 : vector<32x1xf32> to vector<32x128xf32>
      %24 = arith.subf %11, %23 : vector<32x128xf32>
      %cst_14 = arith.constant 9.99999997E-7 : f32
      %25 = vector.broadcast %cst_14 : f32 to vector<32x1xf32>
      %26 = arith.addf %22, %25 : vector<32x1xf32>
      %27 = math.rsqrt %26 : vector<32x1xf32>
      %28 = vector.broadcast %27 : vector<32x1xf32> to vector<32x128xf32>
      %29 = arith.mulf %24, %28 : vector<32x128xf32>
      %c0_15 = arith.constant 0 : index
      %c0_16 = arith.constant 0 : index
      %30 = vector.load %arg3[%c0_15, %c0_16] : memref<1x128xf32, #tpu.memory_space<vmem>>, vector<1x128xf32>
      %31 = vector.broadcast %30 : vector<1x128xf32> to vector<32x128xf32>
      %32 = arith.mulf %29, %31 : vector<32x128xf32>
      %c0_17 = arith.constant 0 : index
      %c0_18 = arith.constant 0 : index
      %33 = vector.load %arg4[%c0_17, %c0_18] : memref<1x128xf32, #tpu.memory_space<vmem>>, vector<1x128xf32>
      %34 = vector.broadcast %33 : vector<1x128xf32> to vector<32x128xf32>
      %35 = arith.addf %32, %34 : vector<32x128xf32>
      %36 = arith.truncf %35 : vector<32x128xf32> to vector<32x128xbf16>
      %c0_19 = arith.constant 0 : index
      %c0_20 = arith.constant 0 : index
      %37 = vector.load %arg8[%c0_19, %c0_20] : memref<32x128xbf16, #tpu.memory_space<vmem>>, vector<32x128xbf16>
      tpu.vector_store %arg8[%c0_19, %c0_20], %36 {strides = array<i32>} : memref<32x128xbf16, #tpu.memory_space<vmem>>, vector<32x128xbf16>,
    } else {
    }
    %c0 = arith.constant 0 : index
    %c0_1 = arith.constant 0 : index
    %3 = vector.load %arg8[%c0, %c0_1] : memref<32x128xbf16, #tpu.memory_space<vmem>>, vector<32x128xbf16>
    %c0_2 = arith.constant 0 : index
    %c0_3 = arith.constant 0 : index
    %4 = vector.load %arg5[%c0_2, %c0_3] : memref<128x128xbf16, #tpu.memory_space<vmem>>, vector<128x128xbf16>
    %cst = arith.constant dense<0.000000e+00> : vector<32x128xf32>
    %5 = tpu.matmul %3, %4, %cst {dimension_numbers = #tpu.dot_dimension_numbers<[1], [0], [0], [1], [0, 0, 1, 1], [], []>} : vector<32x128xbf16>, vector<128x128xbf16>, vector<32x128xf32> -> vector<32x128xf32>
    %c0_4 = arith.constant 0 : index
    %c0_5 = arith.constant 0 : index
    %6 = vector.load %arg6[%c0_4, %c0_5] : memref<1x128xf32, #tpu.memory_space<vmem>>, vector<1x128xf32>
    %7 = vector.broadcast %6 : vector<1x128xf32> to vector<32x128xf32>
    %8 = arith.addf %5, %7 : vector<32x128xf32>
    %9 = arith.truncf %8 : vector<32x128xf32> to vector<32x128xbf16>
    %c0_6 = arith.constant 0 : index
    %c0_7 = arith.constant 0 : index
    %10 = vector.load %arg7[%c0_6, %c0_7] : memref<32x128xbf16, #tpu.memory_space<vmem>>, vector<32x128xbf16>
    tpu.vector_store %arg7[%c0_6, %c0_7], %9 {strides = array<i32>} : memref<32x128xbf16, #tpu.memory_space<vmem>>, vector<32x128xbf16>,
    return
  }
  func.func @transform_0(%arg0: i32, %arg1: i32) -> (i32, i32) {
    %c0_i32 = arith.constant 0 : i32
    %c0_i32_0 = arith.constant 0 : i32
    return %arg0, %c0_i32 : i32, i32
  }
  func.func @transform_1(%arg0: i32, %arg1: i32) -> (i32, i32) {
    %c0_i32 = arith.constant 0 : i32
    %c0_i32_0 = arith.constant 0 : i32
    %c0_i32_1 = arith.constant 0 : i32
    return %c0_i32, %c0_i32_0 : i32, i32
  }
  func.func @transform_2(%arg0: i32, %arg1: i32) -> (i32, i32) {
    %c0_i32 = arith.constant 0 : i32
    %c0_i32_0 = arith.constant 0 : i32
    %c0_i32_1 = arith.constant 0 : i32
    return %c0_i32, %c0_i32_0 : i32, i32
  }
  func.func @transform_3(%arg0: i32, %arg1: i32) -> (i32, i32) {
    %c0_i32 = arith.constant 0 : i32
    %c0_i32_0 = arith.constant 0 : i32
    return %c0_i32, %arg1 : i32, i32
  }
  func.func @transform_4(%arg0: i32, %arg1: i32) -> (i32, i32) {
    %c0_i32 = arith.constant 0 : i32
    %c0_i32_0 = arith.constant 0 : i32
    return %c0_i32, %arg1 : i32, i32
  }
  func.func @transform_5(%arg0: i32, %arg1: i32) -> (i32, i32) {
    %c0_i32 = arith.constant 0 : i32
    return %arg0, %arg1 : i32, i32
  }
}

module attributes {stable_mosaic.version = 11 : i64} {
  func.func @_mm_scale_resid_kernel(%arg0: i32, %arg1: i32, %arg2: memref<32x128xbf16, #tpu.memory_space<vmem>>, %arg3: memref<128x128xbf16, #tpu.memory_space<vmem>>, %arg4: memref<1x128xf32, #tpu.memory_space<vmem>>, %arg5: memref<1x128xf32, #tpu.memory_space<vmem>>, %arg6: memref<32x128xf32, #tpu.memory_space<vmem>>, %arg7: memref<32x128xf32, #tpu.memory_space<vmem>>) attributes {dimension_semantics = [#tpu.dimension_semantics<parallel>, #tpu.dimension_semantics<parallel>], iteration_bounds = array<i64: 1, 1>, scalar_prefetch = 0 : i64, scratch_operands = 0 : i64, tpu.core_type = #tpu.core_type<tc>, window_params = [{transform_indices = @transform_0, window_bounds = array<i64: 32, 128>}, {transform_indices = @transform_1, window_bounds = array<i64: 128, 128>}, {transform_indices = @transform_2, window_bounds = array<i64: 1, 128>}, {transform_indices = @transform_3, window_bounds = array<i64: 1, 128>}, {transform_indices = @transform_4, window_bounds = array<i64: 32, 128>}, {transform_indices = @transform_5, window_bounds = array<i64: 32, 128>}]} {
    %c0 = arith.constant 0 : index
    %c0_0 = arith.constant 0 : index
    %0 = vector.load %arg2[%c0, %c0_0] : memref<32x128xbf16, #tpu.memory_space<vmem>>, vector<32x128xbf16>
    %c0_1 = arith.constant 0 : index
    %c0_2 = arith.constant 0 : index
    %1 = vector.load %arg3[%c0_1, %c0_2] : memref<128x128xbf16, #tpu.memory_space<vmem>>, vector<128x128xbf16>
    %cst = arith.constant dense<0.000000e+00> : vector<32x128xf32>
    %2 = tpu.matmul %0, %1, %cst {dimension_numbers = #tpu.dot_dimension_numbers<[1], [0], [0], [1], [0, 0, 1, 1], [], []>} : vector<32x128xbf16>, vector<128x128xbf16>, vector<32x128xf32> -> vector<32x128xf32>
    %c0_3 = arith.constant 0 : index
    %c0_4 = arith.constant 0 : index
    %3 = vector.load %arg4[%c0_3, %c0_4] : memref<1x128xf32, #tpu.memory_space<vmem>>, vector<1x128xf32>
    %4 = vector.broadcast %3 : vector<1x128xf32> to vector<32x128xf32>
    %5 = arith.addf %2, %4 : vector<32x128xf32>
    %c0_5 = arith.constant 0 : index
    %c0_6 = arith.constant 0 : index
    %6 = vector.load %arg5[%c0_5, %c0_6] : memref<1x128xf32, #tpu.memory_space<vmem>>, vector<1x128xf32>
    %7 = vector.broadcast %6 : vector<1x128xf32> to vector<32x128xf32>
    %8 = arith.mulf %5, %7 : vector<32x128xf32>
    %c0_7 = arith.constant 0 : index
    %c0_8 = arith.constant 0 : index
    %9 = vector.load %arg6[%c0_7, %c0_8] : memref<32x128xf32, #tpu.memory_space<vmem>>, vector<32x128xf32>
    %10 = arith.addf %9, %8 : vector<32x128xf32>
    %c0_9 = arith.constant 0 : index
    %c0_10 = arith.constant 0 : index
    %11 = vector.load %arg7[%c0_9, %c0_10] : memref<32x128xf32, #tpu.memory_space<vmem>>, vector<32x128xf32>
    tpu.vector_store %arg7[%c0_9, %c0_10], %10 {strides = array<i32>} : memref<32x128xf32, #tpu.memory_space<vmem>>, vector<32x128xf32>,
    return
  }
  func.func @transform_0(%arg0: i32, %arg1: i32) -> (i32, i32) {
    %c0_i32 = arith.constant 0 : i32
    %c0_i32_0 = arith.constant 0 : i32
    return %arg0, %c0_i32 : i32, i32
  }
  func.func @transform_1(%arg0: i32, %arg1: i32) -> (i32, i32) {
    %c0_i32 = arith.constant 0 : i32
    %c0_i32_0 = arith.constant 0 : i32
    return %c0_i32, %arg1 : i32, i32
  }
  func.func @transform_2(%arg0: i32, %arg1: i32) -> (i32, i32) {
    %c0_i32 = arith.constant 0 : i32
    %c0_i32_0 = arith.constant 0 : i32
    return %c0_i32, %arg1 : i32, i32
  }
  func.func @transform_3(%arg0: i32, %arg1: i32) -> (i32, i32) {
    %c0_i32 = arith.constant 0 : i32
    %c0_i32_0 = arith.constant 0 : i32
    return %c0_i32, %arg1 : i32, i32
  }
  func.func @transform_4(%arg0: i32, %arg1: i32) -> (i32, i32) {
    %c0_i32 = arith.constant 0 : i32
    return %arg0, %arg1 : i32, i32
  }
  func.func @transform_5(%arg0: i32, %arg1: i32) -> (i32, i32) {
    %c0_i32 = arith.constant 0 : i32
    return %arg0, %arg1 : i32, i32
  }
}

module attributes {stable_mosaic.version = 11 : i64} {
  func.func @_attn_kernel(%arg0: i32, %arg1: i32, %arg2: memref<1x16x128xbf16, #tpu.memory_space<vmem>>, %arg3: memref<1x16x128xbf16, #tpu.memory_space<vmem>>, %arg4: memref<1x16x128xbf16, #tpu.memory_space<vmem>>, %arg5: memref<1x16x128xbf16, #tpu.memory_space<vmem>>) attributes {dimension_semantics = [#tpu.dimension_semantics<parallel>, #tpu.dimension_semantics<parallel>], iteration_bounds = array<i64: 2, 1>, scalar_prefetch = 0 : i64, scratch_operands = 0 : i64, tpu.core_type = #tpu.core_type<tc>, window_params = [{transform_indices = @transform_0, window_bounds = array<i64: 1, 16, 128>}, {transform_indices = @transform_1, window_bounds = array<i64: 1, 16, 128>}, {transform_indices = @transform_2, window_bounds = array<i64: 1, 16, 128>}, {transform_indices = @transform_3, window_bounds = array<i64: 1, 16, 128>}]} {
    %c0 = arith.constant 0 : index
    %c0_0 = arith.constant 0 : index
    %c0_1 = arith.constant 0 : index
    %0 = vector.load %arg2[%c0, %c0_0, %c0_1] : memref<1x16x128xbf16, #tpu.memory_space<vmem>>, vector<1x16x128xbf16>
    %1 = vector.shape_cast %0 : vector<1x16x128xbf16> to vector<16x128xbf16>
    %c0_2 = arith.constant 0 : index
    %c0_3 = arith.constant 0 : index
    %c0_4 = arith.constant 0 : index
    %2 = vector.load %arg3[%c0_2, %c0_3, %c0_4] : memref<1x16x128xbf16, #tpu.memory_space<vmem>>, vector<1x16x128xbf16>
    %3 = vector.shape_cast %2 : vector<1x16x128xbf16> to vector<16x128xbf16>
    %c0_5 = arith.constant 0 : index
    %c0_6 = arith.constant 0 : index
    %c0_7 = arith.constant 0 : index
    %4 = vector.load %arg4[%c0_5, %c0_6, %c0_7] : memref<1x16x128xbf16, #tpu.memory_space<vmem>>, vector<1x16x128xbf16>
    %5 = vector.shape_cast %4 : vector<1x16x128xbf16> to vector<16x128xbf16>
    %6 = tpu.iota {dimensions = array<i32: 1>} : vector<16x16xi32>
    %c9_i32 = arith.constant 9 : i32
    %7 = vector.broadcast %c9_i32 : i32 to vector<16x16xi32>
    %8 = arith.cmpi slt, %6, %7 : vector<16x16xi32>
    %9 = vector.extract_strided_slice %1 {offsets = [0, 0], sizes = [16, 32], strides = [1, 1]} : vector<16x128xbf16> to vector<16x32xbf16>
    %10 = vector.extract_strided_slice %3 {offsets = [0, 0], sizes = [16, 32], strides = [1, 1]} : vector<16x128xbf16> to vector<16x32xbf16>
    "tpu.trace_start"() <{level = 10 : i32, message = "qd,kd->qk"}> : () -> ()
    %cst = arith.constant dense<0.000000e+00> : vector<16x16xf32>
    %11 = tpu.matmul %9, %10, %cst {dimension_numbers = #tpu.dot_dimension_numbers<[1], [1], [0], [0], [0, 0, 1, 0], [], []>} : vector<16x32xbf16>, vector<16x32xbf16>, vector<16x16xf32> -> vector<16x16xf32>
    "tpu.trace_stop"() : () -> ()
    %cst_8 = arith.constant 0.176776692 : f32
    %12 = vector.broadcast %cst_8 : f32 to vector<16x16xf32>
    %13 = arith.mulf %11, %12 : vector<16x16xf32>
    %cst_9 = arith.constant -1.000000e+30 : f32
    %14 = vector.broadcast %cst_9 : f32 to vector<16x16xf32>
    %15 = arith.select %8, %13, %14 : vector<16x16xi1>, vector<16x16xf32>
    %cst_10 = arith.constant dense<0xFF800000> : vector<16xf32>
    %16 = vector.multi_reduction <maximumf>, %15, %cst_10 [1] : vector<16x16xf32> to vector<16xf32>
    %17 = vector.shape_cast %16 : vector<16xf32> to vector<16x1xf32>
    %18 = vector.broadcast %17 : vector<16x1xf32> to vector<16x16xf32>
    %19 = arith.subf %15, %18 : vector<16x16xf32>
    %20 = math.exp %19 : vector<16x16xf32>
    %cst_11 = arith.constant dense<0.000000e+00> : vector<16xf32>
    %21 = vector.multi_reduction <add>, %20, %cst_11 [1] : vector<16x16xf32> to vector<16xf32>
    %22 = vector.shape_cast %21 : vector<16xf32> to vector<16x1xf32>
    %23 = vector.broadcast %22 : vector<16x1xf32> to vector<16x16xf32>
    %24 = arith.divf %20, %23 : vector<16x16xf32>
    %25 = arith.truncf %24 : vector<16x16xf32> to vector<16x16xbf16>
    %26 = vector.extract_strided_slice %5 {offsets = [0, 0], sizes = [16, 32], strides = [1, 1]} : vector<16x128xbf16> to vector<16x32xbf16>
    %cst_12 = arith.constant dense<0.000000e+00> : vector<16x32xf32>
    %27 = tpu.matmul %25, %26, %cst_12 {dimension_numbers = #tpu.dot_dimension_numbers<[1], [0], [0], [1], [0, 0, 1, 1], [], []>} : vector<16x16xbf16>, vector<16x32xbf16>, vector<16x32xf32> -> vector<16x32xf32>
    %28 = arith.truncf %27 : vector<16x32xf32> to vector<16x32xbf16>
    %29 = vector.extract_strided_slice %1 {offsets = [0, 32], sizes = [16, 32], strides = [1, 1]} : vector<16x128xbf16> to vector<16x32xbf16>
    %30 = vector.extract_strided_slice %3 {offsets = [0, 32], sizes = [16, 32], strides = [1, 1]} : vector<16x128xbf16> to vector<16x32xbf16>
    "tpu.trace_start"() <{level = 10 : i32, message = "qd,kd->qk"}> : () -> ()
    %cst_13 = arith.constant dense<0.000000e+00> : vector<16x16xf32>
    %31 = tpu.matmul %29, %30, %cst_13 {dimension_numbers = #tpu.dot_dimension_numbers<[1], [1], [0], [0], [0, 0, 1, 0], [], []>} : vector<16x32xbf16>, vector<16x32xbf16>, vector<16x16xf32> -> vector<16x16xf32>
    "tpu.trace_stop"() : () -> ()
    %cst_14 = arith.constant 0.176776692 : f32
    %32 = vector.broadcast %cst_14 : f32 to vector<16x16xf32>
    %33 = arith.mulf %31, %32 : vector<16x16xf32>
    %cst_15 = arith.constant -1.000000e+30 : f32
    %34 = vector.broadcast %cst_15 : f32 to vector<16x16xf32>
    %35 = arith.select %8, %33, %34 : vector<16x16xi1>, vector<16x16xf32>
    %cst_16 = arith.constant dense<0xFF800000> : vector<16xf32>
    %36 = vector.multi_reduction <maximumf>, %35, %cst_16 [1] : vector<16x16xf32> to vector<16xf32>
    %37 = vector.shape_cast %36 : vector<16xf32> to vector<16x1xf32>
    %38 = vector.broadcast %37 : vector<16x1xf32> to vector<16x16xf32>
    %39 = arith.subf %35, %38 : vector<16x16xf32>
    %40 = math.exp %39 : vector<16x16xf32>
    %cst_17 = arith.constant dense<0.000000e+00> : vector<16xf32>
    %41 = vector.multi_reduction <add>, %40, %cst_17 [1] : vector<16x16xf32> to vector<16xf32>
    %42 = vector.shape_cast %41 : vector<16xf32> to vector<16x1xf32>
    %43 = vector.broadcast %42 : vector<16x1xf32> to vector<16x16xf32>
    %44 = arith.divf %40, %43 : vector<16x16xf32>
    %45 = arith.truncf %44 : vector<16x16xf32> to vector<16x16xbf16>
    %46 = vector.extract_strided_slice %5 {offsets = [0, 32], sizes = [16, 32], strides = [1, 1]} : vector<16x128xbf16> to vector<16x32xbf16>
    %cst_18 = arith.constant dense<0.000000e+00> : vector<16x32xf32>
    %47 = tpu.matmul %45, %46, %cst_18 {dimension_numbers = #tpu.dot_dimension_numbers<[1], [0], [0], [1], [0, 0, 1, 1], [], []>} : vector<16x16xbf16>, vector<16x32xbf16>, vector<16x32xf32> -> vector<16x32xf32>
    %48 = arith.truncf %47 : vector<16x32xf32> to vector<16x32xbf16>
    %49 = vector.extract_strided_slice %1 {offsets = [0, 64], sizes = [16, 32], strides = [1, 1]} : vector<16x128xbf16> to vector<16x32xbf16>
    %50 = vector.extract_strided_slice %3 {offsets = [0, 64], sizes = [16, 32], strides = [1, 1]} : vector<16x128xbf16> to vector<16x32xbf16>
    "tpu.trace_start"() <{level = 10 : i32, message = "qd,kd->qk"}> : () -> ()
    %cst_19 = arith.constant dense<0.000000e+00> : vector<16x16xf32>
    %51 = tpu.matmul %49, %50, %cst_19 {dimension_numbers = #tpu.dot_dimension_numbers<[1], [1], [0], [0], [0, 0, 1, 0], [], []>} : vector<16x32xbf16>, vector<16x32xbf16>, vector<16x16xf32> -> vector<16x16xf32>
    "tpu.trace_stop"() : () -> ()
    %cst_20 = arith.constant 0.176776692 : f32
    %52 = vector.broadcast %cst_20 : f32 to vector<16x16xf32>
    %53 = arith.mulf %51, %52 : vector<16x16xf32>
    %cst_21 = arith.constant -1.000000e+30 : f32
    %54 = vector.broadcast %cst_21 : f32 to vector<16x16xf32>
    %55 = arith.select %8, %53, %54 : vector<16x16xi1>, vector<16x16xf32>
    %cst_22 = arith.constant dense<0xFF800000> : vector<16xf32>
    %56 = vector.multi_reduction <maximumf>, %55, %cst_22 [1] : vector<16x16xf32> to vector<16xf32>
    %57 = vector.shape_cast %56 : vector<16xf32> to vector<16x1xf32>
    %58 = vector.broadcast %57 : vector<16x1xf32> to vector<16x16xf32>
    %59 = arith.subf %55, %58 : vector<16x16xf32>
    %60 = math.exp %59 : vector<16x16xf32>
    %cst_23 = arith.constant dense<0.000000e+00> : vector<16xf32>
    %61 = vector.multi_reduction <add>, %60, %cst_23 [1] : vector<16x16xf32> to vector<16xf32>
    %62 = vector.shape_cast %61 : vector<16xf32> to vector<16x1xf32>
    %63 = vector.broadcast %62 : vector<16x1xf32> to vector<16x16xf32>
    %64 = arith.divf %60, %63 : vector<16x16xf32>
    %65 = arith.truncf %64 : vector<16x16xf32> to vector<16x16xbf16>
    %66 = vector.extract_strided_slice %5 {offsets = [0, 64], sizes = [16, 32], strides = [1, 1]} : vector<16x128xbf16> to vector<16x32xbf16>
    %cst_24 = arith.constant dense<0.000000e+00> : vector<16x32xf32>
    %67 = tpu.matmul %65, %66, %cst_24 {dimension_numbers = #tpu.dot_dimension_numbers<[1], [0], [0], [1], [0, 0, 1, 1], [], []>} : vector<16x16xbf16>, vector<16x32xbf16>, vector<16x32xf32> -> vector<16x32xf32>
    %68 = arith.truncf %67 : vector<16x32xf32> to vector<16x32xbf16>
    %69 = vector.extract_strided_slice %1 {offsets = [0, 96], sizes = [16, 32], strides = [1, 1]} : vector<16x128xbf16> to vector<16x32xbf16>
    %70 = vector.extract_strided_slice %3 {offsets = [0, 96], sizes = [16, 32], strides = [1, 1]} : vector<16x128xbf16> to vector<16x32xbf16>
    "tpu.trace_start"() <{level = 10 : i32, message = "qd,kd->qk"}> : () -> ()
    %cst_25 = arith.constant dense<0.000000e+00> : vector<16x16xf32>
    %71 = tpu.matmul %69, %70, %cst_25 {dimension_numbers = #tpu.dot_dimension_numbers<[1], [1], [0], [0], [0, 0, 1, 0], [], []>} : vector<16x32xbf16>, vector<16x32xbf16>, vector<16x16xf32> -> vector<16x16xf32>
    "tpu.trace_stop"() : () -> ()
    %cst_26 = arith.constant 0.176776692 : f32
    %72 = vector.broadcast %cst_26 : f32 to vector<16x16xf32>
    %73 = arith.mulf %71, %72 : vector<16x16xf32>
    %cst_27 = arith.constant -1.000000e+30 : f32
    %74 = vector.broadcast %cst_27 : f32 to vector<16x16xf32>
    %75 = arith.select %8, %73, %74 : vector<16x16xi1>, vector<16x16xf32>
    %cst_28 = arith.constant dense<0xFF800000> : vector<16xf32>
    %76 = vector.multi_reduction <maximumf>, %75, %cst_28 [1] : vector<16x16xf32> to vector<16xf32>
    %77 = vector.shape_cast %76 : vector<16xf32> to vector<16x1xf32>
    %78 = vector.broadcast %77 : vector<16x1xf32> to vector<16x16xf32>
    %79 = arith.subf %75, %78 : vector<16x16xf32>
    %80 = math.exp %79 : vector<16x16xf32>
    %cst_29 = arith.constant dense<0.000000e+00> : vector<16xf32>
    %81 = vector.multi_reduction <add>, %80, %cst_29 [1] : vector<16x16xf32> to vector<16xf32>
    %82 = vector.shape_cast %81 : vector<16xf32> to vector<16x1xf32>
    %83 = vector.broadcast %82 : vector<16x1xf32> to vector<16x16xf32>
    %84 = arith.divf %80, %83 : vector<16x16xf32>
    %85 = arith.truncf %84 : vector<16x16xf32> to vector<16x16xbf16>
    %86 = vector.extract_strided_slice %5 {offsets = [0, 96], sizes = [16, 32], strides = [1, 1]} : vector<16x128xbf16> to vector<16x32xbf16>
    %cst_30 = arith.constant dense<0.000000e+00> : vector<16x32xf32>
    %87 = tpu.matmul %85, %86, %cst_30 {dimension_numbers = #tpu.dot_dimension_numbers<[1], [0], [0], [1], [0, 0, 1, 1], [], []>} : vector<16x16xbf16>, vector<16x32xbf16>, vector<16x32xf32> -> vector<16x32xf32>
    %88 = arith.truncf %87 : vector<16x32xf32> to vector<16x32xbf16>
    %89 = tpu.concatenate %28, %48, %68, %88 in 1 : vector<16x32xbf16>, vector<16x32xbf16>, vector<16x32xbf16>, vector<16x32xbf16> -> vector<16x128xbf16>
    %c0_31 = arith.constant 0 : index
    %c0_32 = arith.constant 0 : index
    %c0_33 = arith.constant 0 : index
    %90 = vector.load %arg5[%c0_31, %c0_32, %c0_33] : memref<1x16x128xbf16, #tpu.memory_space<vmem>>, vector<1x16x128xbf16>
    %91 = vector.shape_cast %90 : vector<1x16x128xbf16> to vector<16x128xbf16>
    %92 = vector.shape_cast %89 : vector<16x128xbf16> to vector<1x16x128xbf16>
    tpu.vector_store %arg5[%c0_31, %c0_32, %c0_33], %92 {strides = array<i32>} : memref<1x16x128xbf16, #tpu.memory_space<vmem>>, vector<1x16x128xbf16>,
    return
  }
  func.func @transform_0(%arg0: i32, %arg1: i32) -> (i32, i32, i32) {
    %c0_i32 = arith.constant 0 : i32
    %c0_i32_0 = arith.constant 0 : i32
    return %arg0, %arg1, %c0_i32 : i32, i32, i32
  }
  func.func @transform_1(%arg0: i32, %arg1: i32) -> (i32, i32, i32) {
    %c0_i32 = arith.constant 0 : i32
    %c1_i32 = arith.constant 1 : i32
    %c0_i32_0 = arith.constant 0 : i32
    return %arg0, %c0_i32, %c1_i32 : i32, i32, i32
  }
  func.func @transform_2(%arg0: i32, %arg1: i32) -> (i32, i32, i32) {
    %c0_i32 = arith.constant 0 : i32
    %c2_i32 = arith.constant 2 : i32
    %c0_i32_0 = arith.constant 0 : i32
    return %arg0, %c0_i32, %c2_i32 : i32, i32, i32
  }
  func.func @transform_3(%arg0: i32, %arg1: i32) -> (i32, i32, i32) {
    %c0_i32 = arith.constant 0 : i32
    %c0_i32_0 = arith.constant 0 : i32
    return %arg0, %arg1, %c0_i32 : i32, i32, i32
  }
}

module attributes {stable_mosaic.version = 11 : i64} {
  func.func @_ln_mm_kernel(%arg0: i32, %arg1: i32, %arg2: memref<32x128xf32, #tpu.memory_space<vmem>>, %arg3: memref<1x128xf32, #tpu.memory_space<vmem>>, %arg4: memref<1x128xf32, #tpu.memory_space<vmem>>, %arg5: memref<128x256xbf16, #tpu.memory_space<vmem>>, %arg6: memref<1x256xf32, #tpu.memory_space<vmem>>, %arg7: memref<32x256xbf16, #tpu.memory_space<vmem>>, %arg8: memref<32x128xbf16, #tpu.memory_space<vmem>>) attributes {dimension_semantics = [#tpu.dimension_semantics<parallel>, #tpu.dimension_semantics<arbitrary>], iteration_bounds = array<i64: 1, 2>, scalar_prefetch = 0 : i64, scratch_operands = 1 : i64, tpu.core_type = #tpu.core_type<tc>, window_params = [{transform_indices = @transform_0, window_bounds = array<i64: 32, 128>}, {pipeline_mode = #tpu.pipeline_mode<synchronous>, transform_indices = @transform_1, window_bounds = array<i64: 1, 128>}, {pipeline_mode = #tpu.pipeline_mode<synchronous>, transform_indices = @transform_2, window_bounds = array<i64: 1, 128>}, {transform_indices = @transform_3, window_bounds = array<i64: 128, 256>}, {transform_indices = @transform_4, window_bounds = array<i64: 1, 256>}, {transform_indices = @transform_5, window_bounds = array<i64: 32, 256>}]} {
    %c0_i32 = arith.constant 0 : i32
    %0 = arith.cmpi eq, %arg1, %c0_i32 : i32
    %1 = arith.extui %0 : i1 to i32
    %c0_i32_0 = arith.constant 0 : i32
    %2 = arith.cmpi ne, %1, %c0_i32_0 : i32
    scf.if %2 {
      %c0_12 = arith.constant 0 : index
      %c0_13 = arith.constant 0 : index
      %24 = vector.load %arg2[%c0_12, %c0_13] : memref<32x128xf32, #tpu.memory_space<vmem>>, vector<32x128xf32>
      %cst_14 = arith.constant dense<0.000000e+00> : vector<32xf32>
      %25 = vector.multi_reduction <add>, %24, %cst_14 [1] : vector<32x128xf32> to vector<32xf32>
      %26 = vector.shape_cast %25 : vector<32xf32> to vector<32x1xf32>
      %cst_15 = arith.constant 1.280000e+02 : f32
      %27 = vector.broadcast %cst_15 : f32 to vector<32x1xf32>
      %28 = arith.divf %26, %27 : vector<32x1xf32>
      %29 = vector.broadcast %28 : vector<32x1xf32> to vector<32x128xf32>
      %30 = arith.subf %24, %29 : vector<32x128xf32>
      %31 = arith.mulf %30, %30 : vector<32x128xf32>
      %cst_16 = arith.constant dense<0.000000e+00> : vector<32xf32>
      %32 = vector.multi_reduction <add>, %31, %cst_16 [1] : vector<32x128xf32> to vector<32xf32>
      %33 = vector.shape_cast %32 : vector<32xf32> to vector<32x1xf32>
      %cst_17 = arith.constant 1.280000e+02 : f32
      %34 = vector.broadcast %cst_17 : f32 to vector<32x1xf32>
      %35 = arith.divf %33, %34 : vector<32x1xf32>
      %36 = vector.broadcast %28 : vector<32x1xf32> to vector<32x128xf32>
      %37 = arith.subf %24, %36 : vector<32x128xf32>
      %cst_18 = arith.constant 9.99999997E-7 : f32
      %38 = vector.broadcast %cst_18 : f32 to vector<32x1xf32>
      %39 = arith.addf %35, %38 : vector<32x1xf32>
      %40 = math.rsqrt %39 : vector<32x1xf32>
      %41 = vector.broadcast %40 : vector<32x1xf32> to vector<32x128xf32>
      %42 = arith.mulf %37, %41 : vector<32x128xf32>
      %c0_19 = arith.constant 0 : index
      %c0_20 = arith.constant 0 : index
      %43 = vector.load %arg3[%c0_19, %c0_20] : memref<1x128xf32, #tpu.memory_space<vmem>>, vector<1x128xf32>
      %44 = vector.broadcast %43 : vector<1x128xf32> to vector<32x128xf32>
      %45 = arith.mulf %42, %44 : vector<32x128xf32>
      %c0_21 = arith.constant 0 : index
      %c0_22 = arith.constant 0 : index
      %46 = vector.load %arg4[%c0_21, %c0_22] : memref<1x128xf32, #tpu.memory_space<vmem>>, vector<1x128xf32>
      %47 = vector.broadcast %46 : vector<1x128xf32> to vector<32x128xf32>
      %48 = arith.addf %45, %47 : vector<32x128xf32>
      %49 = arith.truncf %48 : vector<32x128xf32> to vector<32x128xbf16>
      %c0_23 = arith.constant 0 : index
      %c0_24 = arith.constant 0 : index
      %50 = vector.load %arg8[%c0_23, %c0_24] : memref<32x128xbf16, #tpu.memory_space<vmem>>, vector<32x128xbf16>
      tpu.vector_store %arg8[%c0_23, %c0_24], %49 {strides = array<i32>} : memref<32x128xbf16, #tpu.memory_space<vmem>>, vector<32x128xbf16>,
    } else {
    }
    %c0 = arith.constant 0 : index
    %c0_1 = arith.constant 0 : index
    %3 = vector.load %arg8[%c0, %c0_1] : memref<32x128xbf16, #tpu.memory_space<vmem>>, vector<32x128xbf16>
    %c0_2 = arith.constant 0 : index
    %c0_3 = arith.constant 0 : index
    %4 = vector.load %arg5[%c0_2, %c0_3] : memref<128x256xbf16, #tpu.memory_space<vmem>>, vector<128x256xbf16>
    %cst = arith.constant dense<0.000000e+00> : vector<32x256xf32>
    %5 = tpu.matmul %3, %4, %cst {dimension_numbers = #tpu.dot_dimension_numbers<[1], [0], [0], [1], [0, 0, 1, 1], [], []>} : vector<32x128xbf16>, vector<128x256xbf16>, vector<32x256xf32> -> vector<32x256xf32>
    %c0_4 = arith.constant 0 : index
    %c0_5 = arith.constant 0 : index
    %6 = vector.load %arg6[%c0_4, %c0_5] : memref<1x256xf32, #tpu.memory_space<vmem>>, vector<1x256xf32>
    %7 = vector.broadcast %6 : vector<1x256xf32> to vector<32x256xf32>
    %8 = arith.addf %5, %7 : vector<32x256xf32>
    %9 = arith.mulf %8, %8 : vector<32x256xf32>
    %10 = arith.mulf %8, %9 : vector<32x256xf32>
    %cst_6 = arith.constant 4.471500e-02 : f32
    %11 = vector.broadcast %cst_6 : f32 to vector<32x256xf32>
    %12 = arith.mulf %11, %10 : vector<32x256xf32>
    %13 = arith.addf %8, %12 : vector<32x256xf32>
    %cst_7 = arith.constant 0.797884583 : f32
    %14 = vector.broadcast %cst_7 : f32 to vector<32x256xf32>
    %15 = arith.mulf %14, %13 : vector<32x256xf32>
    %16 = math.tanh %15 : vector<32x256xf32>
    %cst_8 = arith.constant 1.000000e+00 : f32
    %17 = vector.broadcast %cst_8 : f32 to vector<32x256xf32>
    %18 = arith.addf %17, %16 : vector<32x256xf32>
    %cst_9 = arith.constant 5.000000e-01 : f32
    %19 = vector.broadcast %cst_9 : f32 to vector<32x256xf32>
    %20 = arith.mulf %19, %18 : vector<32x256xf32>
    %21 = arith.mulf %8, %20 : vector<32x256xf32>
    %22 = arith.truncf %21 : vector<32x256xf32> to vector<32x256xbf16>
    %c0_10 = arith.constant 0 : index
    %c0_11 = arith.constant 0 : index
    %23 = vector.load %arg7[%c0_10, %c0_11] : memref<32x256xbf16, #tpu.memory_space<vmem>>, vector<32x256xbf16>
    tpu.vector_store %arg7[%c0_10, %c0_11], %22 {strides = array<i32>} : memref<32x256xbf16, #tpu.memory_space<vmem>>, vector<32x256xbf16>,
    return
  }
  func.func @transform_0(%arg0: i32, %arg1: i32) -> (i32, i32) {
    %c0_i32 = arith.constant 0 : i32
    %c0_i32_0 = arith.constant 0 : i32
    return %arg0, %c0_i32 : i32, i32
  }
  func.func @transform_1(%arg0: i32, %arg1: i32) -> (i32, i32) {
    %c0_i32 = arith.constant 0 : i32
    %c0_i32_0 = arith.constant 0 : i32
    %c0_i32_1 = arith.constant 0 : i32
    return %c0_i32, %c0_i32_0 : i32, i32
  }
  func.func @transform_2(%arg0: i32, %arg1: i32) -> (i32, i32) {
    %c0_i32 = arith.constant 0 : i32
    %c0_i32_0 = arith.constant 0 : i32
    %c0_i32_1 = arith.constant 0 : i32
    return %c0_i32, %c0_i32_0 : i32, i32
  }
  func.func @transform_3(%arg0: i32, %arg1: i32) -> (i32, i32) {
    %c0_i32 = arith.constant 0 : i32
    %c0_i32_0 = arith.constant 0 : i32
    return %c0_i32, %arg1 : i32, i32
  }
  func.func @transform_4(%arg0: i32, %arg1: i32) -> (i32, i32) {
    %c0_i32 = arith.constant 0 : i32
    %c0_i32_0 = arith.constant 0 : i32
    return %c0_i32, %arg1 : i32, i32
  }
  func.func @transform_5(%arg0: i32, %arg1: i32) -> (i32, i32) {
    %c0_i32 = arith.constant 0 : i32
    return %arg0, %arg1 : i32, i32
  }
}

module attributes {stable_mosaic.version = 11 : i64} {
  func.func @_mm_scale_resid_kernel(%arg0: i32, %arg1: i32, %arg2: memref<32x512xbf16, #tpu.memory_space<vmem>>, %arg3: memref<512x128xbf16, #tpu.memory_space<vmem>>, %arg4: memref<1x128xf32, #tpu.memory_space<vmem>>, %arg5: memref<1x128xf32, #tpu.memory_space<vmem>>, %arg6: memref<32x128xf32, #tpu.memory_space<vmem>>, %arg7: memref<32x128xf32, #tpu.memory_space<vmem>>) attributes {dimension_semantics = [#tpu.dimension_semantics<parallel>, #tpu.dimension_semantics<parallel>], iteration_bounds = array<i64: 1, 1>, scalar_prefetch = 0 : i64, scratch_operands = 0 : i64, tpu.core_type = #tpu.core_type<tc>, window_params = [{transform_indices = @transform_0, window_bounds = array<i64: 32, 512>}, {transform_indices = @transform_1, window_bounds = array<i64: 512, 128>}, {transform_indices = @transform_2, window_bounds = array<i64: 1, 128>}, {transform_indices = @transform_3, window_bounds = array<i64: 1, 128>}, {transform_indices = @transform_4, window_bounds = array<i64: 32, 128>}, {transform_indices = @transform_5, window_bounds = array<i64: 32, 128>}]} {
    %c0 = arith.constant 0 : index
    %c0_0 = arith.constant 0 : index
    %0 = vector.load %arg2[%c0, %c0_0] : memref<32x512xbf16, #tpu.memory_space<vmem>>, vector<32x512xbf16>
    %c0_1 = arith.constant 0 : index
    %c0_2 = arith.constant 0 : index
    %1 = vector.load %arg3[%c0_1, %c0_2] : memref<512x128xbf16, #tpu.memory_space<vmem>>, vector<512x128xbf16>
    %cst = arith.constant dense<0.000000e+00> : vector<32x128xf32>
    %2 = tpu.matmul %0, %1, %cst {dimension_numbers = #tpu.dot_dimension_numbers<[1], [0], [0], [1], [0, 0, 1, 1], [], []>} : vector<32x512xbf16>, vector<512x128xbf16>, vector<32x128xf32> -> vector<32x128xf32>
    %c0_3 = arith.constant 0 : index
    %c0_4 = arith.constant 0 : index
    %3 = vector.load %arg4[%c0_3, %c0_4] : memref<1x128xf32, #tpu.memory_space<vmem>>, vector<1x128xf32>
    %4 = vector.broadcast %3 : vector<1x128xf32> to vector<32x128xf32>
    %5 = arith.addf %2, %4 : vector<32x128xf32>
    %c0_5 = arith.constant 0 : index
    %c0_6 = arith.constant 0 : index
    %6 = vector.load %arg5[%c0_5, %c0_6] : memref<1x128xf32, #tpu.memory_space<vmem>>, vector<1x128xf32>
    %7 = vector.broadcast %6 : vector<1x128xf32> to vector<32x128xf32>
    %8 = arith.mulf %5, %7 : vector<32x128xf32>
    %c0_7 = arith.constant 0 : index
    %c0_8 = arith.constant 0 : index
    %9 = vector.load %arg6[%c0_7, %c0_8] : memref<32x128xf32, #tpu.memory_space<vmem>>, vector<32x128xf32>
    %10 = arith.addf %9, %8 : vector<32x128xf32>
    %c0_9 = arith.constant 0 : index
    %c0_10 = arith.constant 0 : index
    %11 = vector.load %arg7[%c0_9, %c0_10] : memref<32x128xf32, #tpu.memory_space<vmem>>, vector<32x128xf32>
    tpu.vector_store %arg7[%c0_9, %c0_10], %10 {strides = array<i32>} : memref<32x128xf32, #tpu.memory_space<vmem>>, vector<32x128xf32>,
    return
  }
  func.func @transform_0(%arg0: i32, %arg1: i32) -> (i32, i32) {
    %c0_i32 = arith.constant 0 : i32
    %c0_i32_0 = arith.constant 0 : i32
    return %arg0, %c0_i32 : i32, i32
  }
  func.func @transform_1(%arg0: i32, %arg1: i32) -> (i32, i32) {
    %c0_i32 = arith.constant 0 : i32
    %c0_i32_0 = arith.constant 0 : i32
    return %c0_i32, %arg1 : i32, i32
  }
  func.func @transform_2(%arg0: i32, %arg1: i32) -> (i32, i32) {
    %c0_i32 = arith.constant 0 : i32
    %c0_i32_0 = arith.constant 0 : i32
    return %c0_i32, %arg1 : i32, i32
  }
  func.func @transform_3(%arg0: i32, %arg1: i32) -> (i32, i32) {
    %c0_i32 = arith.constant 0 : i32
    %c0_i32_0 = arith.constant 0 : i32
    return %c0_i32, %arg1 : i32, i32
  }
  func.func @transform_4(%arg0: i32, %arg1: i32) -> (i32, i32) {
    %c0_i32 = arith.constant 0 : i32
    return %arg0, %arg1 : i32, i32
  }
  func.func @transform_5(%arg0: i32, %arg1: i32) -> (i32, i32) {
    %c0_i32 = arith.constant 0 : i32
    return %arg0, %arg1 : i32, i32
  }
}

module attributes {stable_mosaic.version = 11 : i64} {
  func.func @_ln_kernel(%arg0: i32, %arg1: memref<32x128xf32, #tpu.memory_space<vmem>>, %arg2: memref<1x128xf32, #tpu.memory_space<vmem>>, %arg3: memref<1x128xf32, #tpu.memory_space<vmem>>, %arg4: memref<32x128xf32, #tpu.memory_space<vmem>>) attributes {dimension_semantics = [#tpu.dimension_semantics<parallel>], iteration_bounds = array<i64: 1>, scalar_prefetch = 0 : i64, scratch_operands = 0 : i64, tpu.core_type = #tpu.core_type<tc>, window_params = [{transform_indices = @transform_0, window_bounds = array<i64: 32, 128>}, {pipeline_mode = #tpu.pipeline_mode<synchronous>, transform_indices = @transform_1, window_bounds = array<i64: 1, 128>}, {pipeline_mode = #tpu.pipeline_mode<synchronous>, transform_indices = @transform_2, window_bounds = array<i64: 1, 128>}, {transform_indices = @transform_3, window_bounds = array<i64: 32, 128>}]} {
    %c0 = arith.constant 0 : index
    %c0_0 = arith.constant 0 : index
    %0 = vector.load %arg1[%c0, %c0_0] : memref<32x128xf32, #tpu.memory_space<vmem>>, vector<32x128xf32>
    %cst = arith.constant dense<0.000000e+00> : vector<32xf32>
    %1 = vector.multi_reduction <add>, %0, %cst [1] : vector<32x128xf32> to vector<32xf32>
    %2 = vector.shape_cast %1 : vector<32xf32> to vector<32x1xf32>
    %cst_1 = arith.constant 1.280000e+02 : f32
    %3 = vector.broadcast %cst_1 : f32 to vector<32x1xf32>
    %4 = arith.divf %2, %3 : vector<32x1xf32>
    %5 = vector.broadcast %4 : vector<32x1xf32> to vector<32x128xf32>
    %6 = arith.subf %0, %5 : vector<32x128xf32>
    %7 = arith.mulf %6, %6 : vector<32x128xf32>
    %cst_2 = arith.constant dense<0.000000e+00> : vector<32xf32>
    %8 = vector.multi_reduction <add>, %7, %cst_2 [1] : vector<32x128xf32> to vector<32xf32>
    %9 = vector.shape_cast %8 : vector<32xf32> to vector<32x1xf32>
    %cst_3 = arith.constant 1.280000e+02 : f32
    %10 = vector.broadcast %cst_3 : f32 to vector<32x1xf32>
    %11 = arith.divf %9, %10 : vector<32x1xf32>
    %12 = vector.broadcast %4 : vector<32x1xf32> to vector<32x128xf32>
    %13 = arith.subf %0, %12 : vector<32x128xf32>
    %cst_4 = arith.constant 9.99999997E-7 : f32
    %14 = vector.broadcast %cst_4 : f32 to vector<32x1xf32>
    %15 = arith.addf %11, %14 : vector<32x1xf32>
    %16 = math.rsqrt %15 : vector<32x1xf32>
    %17 = vector.broadcast %16 : vector<32x1xf32> to vector<32x128xf32>
    %18 = arith.mulf %13, %17 : vector<32x128xf32>
    %c0_5 = arith.constant 0 : index
    %c0_6 = arith.constant 0 : index
    %19 = vector.load %arg2[%c0_5, %c0_6] : memref<1x128xf32, #tpu.memory_space<vmem>>, vector<1x128xf32>
    %20 = vector.broadcast %19 : vector<1x128xf32> to vector<32x128xf32>
    %21 = arith.mulf %18, %20 : vector<32x128xf32>
    %c0_7 = arith.constant 0 : index
    %c0_8 = arith.constant 0 : index
    %22 = vector.load %arg3[%c0_7, %c0_8] : memref<1x128xf32, #tpu.memory_space<vmem>>, vector<1x128xf32>
    %23 = vector.broadcast %22 : vector<1x128xf32> to vector<32x128xf32>
    %24 = arith.addf %21, %23 : vector<32x128xf32>
    %c0_9 = arith.constant 0 : index
    %c0_10 = arith.constant 0 : index
    %25 = vector.load %arg4[%c0_9, %c0_10] : memref<32x128xf32, #tpu.memory_space<vmem>>, vector<32x128xf32>
    tpu.vector_store %arg4[%c0_9, %c0_10], %24 {strides = array<i32>} : memref<32x128xf32, #tpu.memory_space<vmem>>, vector<32x128xf32>,
    return
  }
  func.func @transform_0(%arg0: i32) -> (i32, i32) {
    %c0_i32 = arith.constant 0 : i32
    %c0_i32_0 = arith.constant 0 : i32
    return %arg0, %c0_i32 : i32, i32
  }
  func.func @transform_1(%arg0: i32) -> (i32, i32) {
    %c0_i32 = arith.constant 0 : i32
    %c0_i32_0 = arith.constant 0 : i32
    %c0_i32_1 = arith.constant 0 : i32
    return %c0_i32, %c0_i32_0 : i32, i32
  }
  func.func @transform_2(%arg0: i32) -> (i32, i32) {
    %c0_i32 = arith.constant 0 : i32
    %c0_i32_0 = arith.constant 0 : i32
    %c0_i32_1 = arith.constant 0 : i32
    return %c0_i32, %c0_i32_0 : i32, i32
  }
  func.func @transform_3(%arg0: i32) -> (i32, i32) {
    %c0_i32 = arith.constant 0 : i32
    %c0_i32_0 = arith.constant 0 : i32
    return %arg0, %c0_i32 : i32, i32
  }
}

module attributes {stable_mosaic.version = 11 : i64} {
  func.func @_ln_kernel(%arg0: i32, %arg1: memref<6x128xf32, #tpu.memory_space<vmem>>, %arg2: memref<1x128xf32, #tpu.memory_space<vmem>>, %arg3: memref<1x128xf32, #tpu.memory_space<vmem>>, %arg4: memref<6x128xf32, #tpu.memory_space<vmem>>) attributes {dimension_semantics = [#tpu.dimension_semantics<parallel>], iteration_bounds = array<i64: 1>, scalar_prefetch = 0 : i64, scratch_operands = 0 : i64, tpu.core_type = #tpu.core_type<tc>, window_params = [{transform_indices = @transform_0, window_bounds = array<i64: 6, 128>}, {pipeline_mode = #tpu.pipeline_mode<synchronous>, transform_indices = @transform_1, window_bounds = array<i64: 1, 128>}, {pipeline_mode = #tpu.pipeline_mode<synchronous>, transform_indices = @transform_2, window_bounds = array<i64: 1, 128>}, {transform_indices = @transform_3, window_bounds = array<i64: 6, 128>}]} {
    %c0 = arith.constant 0 : index
    %c0_0 = arith.constant 0 : index
    %0 = vector.load %arg1[%c0, %c0_0] : memref<6x128xf32, #tpu.memory_space<vmem>>, vector<6x128xf32>
    %cst = arith.constant dense<0.000000e+00> : vector<6xf32>
    %1 = vector.multi_reduction <add>, %0, %cst [1] : vector<6x128xf32> to vector<6xf32>
    %2 = vector.shape_cast %1 : vector<6xf32> to vector<6x1xf32>
    %cst_1 = arith.constant 1.280000e+02 : f32
    %3 = vector.broadcast %cst_1 : f32 to vector<6x1xf32>
    %4 = arith.divf %2, %3 : vector<6x1xf32>
    %5 = vector.broadcast %4 : vector<6x1xf32> to vector<6x128xf32>
    %6 = arith.subf %0, %5 : vector<6x128xf32>
    %7 = arith.mulf %6, %6 : vector<6x128xf32>
    %cst_2 = arith.constant dense<0.000000e+00> : vector<6xf32>
    %8 = vector.multi_reduction <add>, %7, %cst_2 [1] : vector<6x128xf32> to vector<6xf32>
    %9 = vector.shape_cast %8 : vector<6xf32> to vector<6x1xf32>
    %cst_3 = arith.constant 1.280000e+02 : f32
    %10 = vector.broadcast %cst_3 : f32 to vector<6x1xf32>
    %11 = arith.divf %9, %10 : vector<6x1xf32>
    %12 = vector.broadcast %4 : vector<6x1xf32> to vector<6x128xf32>
    %13 = arith.subf %0, %12 : vector<6x128xf32>
    %cst_4 = arith.constant 9.99999997E-7 : f32
    %14 = vector.broadcast %cst_4 : f32 to vector<6x1xf32>
    %15 = arith.addf %11, %14 : vector<6x1xf32>
    %16 = math.rsqrt %15 : vector<6x1xf32>
    %17 = vector.broadcast %16 : vector<6x1xf32> to vector<6x128xf32>
    %18 = arith.mulf %13, %17 : vector<6x128xf32>
    %c0_5 = arith.constant 0 : index
    %c0_6 = arith.constant 0 : index
    %19 = vector.load %arg2[%c0_5, %c0_6] : memref<1x128xf32, #tpu.memory_space<vmem>>, vector<1x128xf32>
    %20 = vector.broadcast %19 : vector<1x128xf32> to vector<6x128xf32>
    %21 = arith.mulf %18, %20 : vector<6x128xf32>
    %c0_7 = arith.constant 0 : index
    %c0_8 = arith.constant 0 : index
    %22 = vector.load %arg3[%c0_7, %c0_8] : memref<1x128xf32, #tpu.memory_space<vmem>>, vector<1x128xf32>
    %23 = vector.broadcast %22 : vector<1x128xf32> to vector<6x128xf32>
    %24 = arith.addf %21, %23 : vector<6x128xf32>
    %c0_9 = arith.constant 0 : index
    %c0_10 = arith.constant 0 : index
    %25 = vector.load %arg4[%c0_9, %c0_10] : memref<6x128xf32, #tpu.memory_space<vmem>>, vector<6x128xf32>
    tpu.vector_store %arg4[%c0_9, %c0_10], %24 {strides = array<i32>} : memref<6x128xf32, #tpu.memory_space<vmem>>, vector<6x128xf32>,
    return
  }
  func.func @transform_0(%arg0: i32) -> (i32, i32) {
    %c0_i32 = arith.constant 0 : i32
    %c0_i32_0 = arith.constant 0 : i32
    return %arg0, %c0_i32 : i32, i32
  }
  func.func @transform_1(%arg0: i32) -> (i32, i32) {
    %c0_i32 = arith.constant 0 : i32
    %c0_i32_0 = arith.constant 0 : i32
    %c0_i32_1 = arith.constant 0 : i32
    return %c0_i32, %c0_i32_0 : i32, i32
  }
  func.func @transform_2(%arg0: i32) -> (i32, i32) {
    %c0_i32 = arith.constant 0 : i32
    %c0_i32_0 = arith.constant 0 : i32
    %c0_i32_1 = arith.constant 0 : i32
    return %c0_i32, %c0_i32_0 : i32, i32
  }
  func.func @transform_3(%arg0: i32) -> (i32, i32) {
    %c0_i32 = arith.constant 0 : i32
    %c0_i32_0 = arith.constant 0 : i32
    return %arg0, %c0_i32 : i32, i32
  }
}

module attributes {stable_mosaic.version = 11 : i64} {
  func.func @_mm_kernel(%arg0: i32, %arg1: i32, %arg2: memref<2x640xf32, #tpu.memory_space<vmem>>, %arg3: memref<640x128xbf16, #tpu.memory_space<vmem>>, %arg4: memref<1x128xf32, #tpu.memory_space<vmem>>, %arg5: memref<2x128xf32, #tpu.memory_space<vmem>>) attributes {dimension_semantics = [#tpu.dimension_semantics<parallel>, #tpu.dimension_semantics<parallel>], iteration_bounds = array<i64: 1, 1>, scalar_prefetch = 0 : i64, scratch_operands = 0 : i64, tpu.core_type = #tpu.core_type<tc>, window_params = [{transform_indices = @transform_0, window_bounds = array<i64: 2, 640>}, {transform_indices = @transform_1, window_bounds = array<i64: 640, 128>}, {transform_indices = @transform_2, window_bounds = array<i64: 1, 128>}, {transform_indices = @transform_3, window_bounds = array<i64: 2, 128>}]} {
    %c0 = arith.constant 0 : index
    %c0_0 = arith.constant 0 : index
    %0 = vector.load %arg2[%c0, %c0_0] : memref<2x640xf32, #tpu.memory_space<vmem>>, vector<2x640xf32>
    %1 = arith.truncf %0 : vector<2x640xf32> to vector<2x640xbf16>
    %c0_1 = arith.constant 0 : index
    %c0_2 = arith.constant 0 : index
    %2 = vector.load %arg3[%c0_1, %c0_2] : memref<640x128xbf16, #tpu.memory_space<vmem>>, vector<640x128xbf16>
    %cst = arith.constant dense<0.000000e+00> : vector<2x128xf32>
    %3 = tpu.matmul %1, %2, %cst {dimension_numbers = #tpu.dot_dimension_numbers<[1], [0], [0], [1], [0, 0, 1, 1], [], []>} : vector<2x640xbf16>, vector<640x128xbf16>, vector<2x128xf32> -> vector<2x128xf32>
    %c0_3 = arith.constant 0 : index
    %c0_4 = arith.constant 0 : index
    %4 = vector.load %arg4[%c0_3, %c0_4] : memref<1x128xf32, #tpu.memory_space<vmem>>, vector<1x128xf32>
    %5 = vector.broadcast %4 : vector<1x128xf32> to vector<2x128xf32>
    %6 = arith.addf %3, %5 : vector<2x128xf32>
    %c0_5 = arith.constant 0 : index
    %c0_6 = arith.constant 0 : index
    %7 = vector.load %arg5[%c0_5, %c0_6] : memref<2x128xf32, #tpu.memory_space<vmem>>, vector<2x128xf32>
    tpu.vector_store %arg5[%c0_5, %c0_6], %6 {strides = array<i32>} : memref<2x128xf32, #tpu.memory_space<vmem>>, vector<2x128xf32>,
    return
  }
  func.func @transform_0(%arg0: i32, %arg1: i32) -> (i32, i32) {
    %c0_i32 = arith.constant 0 : i32
    %c0_i32_0 = arith.constant 0 : i32
    return %arg0, %c0_i32 : i32, i32
  }
  func.func @transform_1(%arg0: i32, %arg1: i32) -> (i32, i32) {
    %c0_i32 = arith.constant 0 : i32
    %c0_i32_0 = arith.constant 0 : i32
    return %c0_i32, %arg1 : i32, i32
  }
  func.func @transform_2(%arg0: i32, %arg1: i32) -> (i32, i32) {
    %c0_i32 = arith.constant 0 : i32
    %c0_i32_0 = arith.constant 0 : i32
    return %c0_i32, %arg1 : i32, i32
  }
  func.func @transform_3(%arg0: i32, %arg1: i32) -> (i32, i32) {
    %c0_i32 = arith.constant 0 : i32
    return %arg0, %arg1 : i32, i32
  }
}

</mosaic_0001>

<bundles_post_ra>
// kernel: dinov2_classification_forward.24
= control target key start
LH: loop header
LB: loop body
LE: loop exit
PB: predicated region body
PF: predicated region fallthrough
CT: control target
= control target key end

     0   :  { %v602_v35 = vmov 0.0   ;;  %vm603_vm0 = vmmov 0   ;;  %vm331_vm1 = vcmask 1045504   ;;  %vm327_vm2 = vcmask 621568   ;;  %s756_s1 = inlined_call_operand.vmem [shape: bf16[588,128], index: 1, kind: input, shape index: {}]   ;;  %s757_s0 = inlined_call_operand.vmem [shape: f32[8,588], index: 0, kind: input, shape index: {}]   ;;  %s758_s2 = inlined_call_operand.vmem [shape: f32[1,128], index: 2, kind: input, shape index: {}]   ;;  %s759_s3 = inlined_call_operand.vmem [shape: f32[8,128], index: 3, kind: output, shape index: {}]  }
   0x1   :  { %v565_v0 = vld [vmem:[%s756_s1 + $0x40] sm:$0xff]   ;;  %v569_v4 = vld [vmem:[%s756_s1 + $0x48] sm:$0xff]   ;;  %v573_v8 = vld [vmem:[%s756_s1 + $0x50] sm:$0xff]  }
   0x2   :  { %v566_v1 = vld [vmem:[%s756_s1] sm:$0xff]   ;;  %499 = vmatprep.subr.bf16.mxu0 %v565_v0  ;;  %v570_v5 = vld [vmem:[%s756_s1 + $0x8] sm:$0xff]   ;;  %v574_v9 = vld [vmem:[%s756_s1 + $0x10] sm:$0xff]  }
   0x3   :  { %v567_v2 = vld [vmem:[%s756_s1 + $0xc0] sm:$0xff]   ;;  %500 = vmatpush3.bf16.msra.mxu0 %v566_v1  ;;  %v571_v6 = vld [vmem:[%s756_s1 + $0xc8] sm:$0xff]   ;;  %v575_v10 = vld [vmem:[%s756_s1 + $0xd0] sm:$0xff]  }
   0x4   :  { %v568_v3 = vld [vmem:[%s756_s1 + $0x80] sm:$0xff]   ;;  %521 = vmatprep.subr.bf16.mxu1 %v567_v2  ;;  %501 = vmatprep.subr.bf16.mxu0 %v569_v4  ;;  %v572_v7 = vld [vmem:[%s756_s1 + $0x88] sm:$0xff]   ;;  %v576_v11 = vld [vmem:[%s756_s1 + $0x90] sm:$0xff]  }
   0x5   :  { %522 = vmatpush3.bf16.msra.mxu1 %v568_v3  ;;  %v577_v12 = vld [vmem:[%s756_s1 + $0x58] sm:$0xff]   ;;  %v581_v16 = vld [vmem:[%s756_s1 + $0x60] sm:$0xff]   ;;  %v585_v20 = vld [vmem:[%s756_s1 + $0x68] sm:$0xff]  }
   0x6   :  { %523 = vmatprep.subr.bf16.mxu1 %v571_v6  ;;  %v578_v13 = vld [vmem:[%s756_s1 + $0x18] sm:$0xff]   ;;  %v582_v17 = vld [vmem:[%s756_s1 + $0x20] sm:$0xff]   ;;  %v586_v21 = vld [vmem:[%s756_s1 + $0x28] sm:$0xff]  }
   0x7   :  { %502 = vmatpush3.bf16.msra.mxu0 %v570_v5  ;;  %v579_v14 = vld [vmem:[%s756_s1 + $0xd8] sm:$0xff]   ;;  %v583_v18 = vld [vmem:[%s756_s1 + $0xe0] sm:$0xff]   ;;  %v587_v22 = vld [vmem:[%s756_s1 + $0xe8] sm:$0xff]  }
   0x8   :  { %503 = vmatprep.subr.bf16.mxu0 %v573_v8  ;;  %v580_v15 = vld [vmem:[%s756_s1 + $0x98] sm:$0xff]   ;;  %v584_v19 = vld [vmem:[%s756_s1 + $0xa0] sm:$0xff]   ;;  %v588_v23 = vld [vmem:[%s756_s1 + $0xa8] sm:$0xff]  }
   0x9   :  { %524 = vmatpush3.bf16.msra.mxu1 %v572_v7  ;;  %v589_v24 = vld [vmem:[%s756_s1 + $0x70] sm:$0xff]   ;;  %v593_v28 = vld [vmem:[%s756_s1 + $0x78] sm:$0xff]   ;;  %v16_v31 = vld [vmem:[%s757_s0 + $0x8] sm:$0xff] }
   0xa   :  { %525 = vmatprep.subr.bf16.mxu1 %v575_v10  ;;  %v590_v25 = vld [vmem:[%s756_s1 + $0x30] sm:$0xff]   ;;  %v594_v29 = vld [vmem:[%s756_s1 + $0x38] sm:$0xff]   ;;  %v21_v32 = vpack.c.bf16 %v16_v31, %v16_v31  ;;  %v15_v34 = vld [vmem:[%s757_s0] sm:$0xff] }
   0xb   :  { %504 = vmatpush3.bf16.msra.mxu0 %v574_v9  ;;  %v591_v26 = vld [vmem:[%s756_s1 + $0xf0] sm:$0xff]   ;;  %v595_v30 = vld [vmem:[%s756_s1 + $0xf8] sm:$0xff]   ;;  %v20_v37 = vpack.c.bf16 %v15_v34, %v15_v34  ;;  %v597_v39 = vld [vmem:[%s756_s1 + $0x100] sm:$0xff]  }
   0xc   :  { %505 = vmatprep.subr.bf16.mxu0 %v577_v12  ;;  %v592_v27 = vld [vmem:[%s756_s1 + $0xb0] sm:$0xff]   ;;  %v596_v33 = vld [vmem:[%s756_s1 + $0xb8] sm:$0xff]   ;;  %367 = vmatprep.mubr.bf16.mxu0 %v21_v32  ;;  %v598_v42 = vld [vmem:[%s756_s1 + $0x108] sm:$0xff]  }
   0xd   :  { %526 = vmatpush3.bf16.msra.mxu1 %v576_v11  ;;  %v18_v36 = vld [vmem:[%s757_s0 + $0x18] sm:$0xff]  ;;  %v17_v40 = vld [vmem:[%s757_s0 + $0x10] sm:$0xff]  ;;  %v601_v45 = vld [vmem:[%s756_s1 + $0x120] sm:$0x3f]  }
   0xe   :  { %527 = vmatprep.subr.bf16.mxu1 %v579_v14  ;;  %v23_v38 = vpack.c.bf16 %v18_v36, %v18_v36  ;;  %v22_v41 = vpack.c.bf16 %v17_v40, %v17_v40  ;;  %v599_v43 = vld [vmem:[%s756_s1 + $0x110] sm:$0xff]   ;;  %v600_v44 = vld [vmem:[%s756_s1 + $0x118] sm:$0xff]   ;;  %v19_v46 = vld [vmem:[%s757_s0 + $0x20] sm:$0xff]  ;;  %v333_v47 = vsel %vm331_vm1, %v601_v45, 0 }
   0xf   :  { %506 = vmatpush3.bf16.msra.mxu0 %v578_v13  ;;  %v24_v48 = vpack.c.bf16 %v19_v46, %v19_v46  ;;  %v460_v50 = vld [vmem:[%s758_s2] ss:$0 sm:$0xff] }
  0x10   :  { %507 = vmatprep.subr.bf16.mxu0 %v581_v16  ;;  %407 = vmatprep.mubr.bf16.mxu1 %v23_v38 }
  0x11   :  { %528 = vmatpush3.bf16.msra.mxu1 %v580_v15 }
  0x12   :  { %529 = vmatprep.subr.bf16.mxu1 %v583_v18 }
  0x13   :  { %508 = vmatpush3.bf16.msra.mxu0 %v582_v17 }
  0x14   :  { %509 = vmatprep.subr.bf16.mxu0 %v585_v20 }
  0x15   :  { %530 = vmatpush3.bf16.msra.mxu1 %v584_v19 }
  0x16   :  { %531 = vmatprep.subr.bf16.mxu1 %v587_v22 }
  0x17   :  { %510 = vmatpush3.bf16.msra.mxu0 %v586_v21 }
  0x18   :  { %511 = vmatprep.subr.bf16.mxu0 %v589_v24 }
  0x19   :  { %532 = vmatpush3.bf16.msra.mxu1 %v588_v23 }
  0x1a   :  { %533 = vmatprep.subr.bf16.mxu1 %v591_v26 }
  0x1b   :  { %512 = vmatpush3.bf16.msra.mxu0 %v590_v25 }
  0x1c   :  { %513 = vmatprep.subr.bf16.mxu0 %v593_v28 }
  0x1d   :  { %534 = vmatpush3.bf16.msra.mxu1 %v592_v27 }
  0x1e   :  { %535 = vmatprep.subr.bf16.mxu1 %v595_v30 }
  0x1f   :  { %514 = vmatpush3.bf16.msra.mxu0 %v594_v29 }
  0x20   :  { %549 = vmatprep.subr.bf16.mxu0 %v602_v35 }
  0x21   :  { %536 = vmatpush3.bf16.msra.mxu1 %v596_v33 }
  0x22   :  { %368 = vmatmul.mubr.bf16.vlgmr.msra.gmra.mrb[0].mxu0 %v20_v37 }
  0x23   :  { %550 = vmatpush3.bf16.msra.mxu0 %v597_v39  ;;  %559 = vmatprep.mubr.msk.bf16.mxu0 %vm603_vm0, %v602_v35 }
  0x24   :  { %408 = vmatmul.mubr.bf16.vlgmr.msra.gmra.mrb[0].mxu1 %v22_v41  ;;  %551 = vmatprep.subr.bf16.mxu0 %v602_v35 }
  0x27   :  { %552 = vmatpush3.bf16.msra.mxu0 %v598_v42 }
  0x28   :  { %553 = vmatprep.subr.bf16.mxu0 %v602_v35 }
  0x2b   :  { %554 = vmatpush3.bf16.msra.mxu0 %v599_v43 }
  0x2c   :  { %555 = vmatprep.subr.bf16.mxu0 %v602_v35 }
  0x2f   :  { %556 = vmatpush3.bf16.msra.mxu0 %v600_v44 }
  0x30   :  { %557 = vmatprep.subr.bf16.mxu0 %v602_v35 }
  0x33   :  { %558 = vmatpush3.bf16.msra.mxu0 %v333_v47 }
  0x36   :  { %560 = vmatmul.mubr.msk.bf16.vlgmr.msra.gmra.mrb[4].mxu0 %vm327_vm2, %v24_v48 }
  0xf5   :  { %v515_v49 = vpop.f32.mrb[0].mxu0 }
  0xf6   :  { %v516_v51 = vpop.f32.mrb[1].mxu0 }
  0xf7   :  { %v517_v52 = vadd.f32 %v516_v51, %v515_v49  ;;  %v518_v53 = vpop.f32.mrb[2].mxu0  ;;  %v537_v54 = vpop.f32.mrb[0].mxu1 }
  0xf8   :  { %v519_v55 = vpop.f32.mrb[3].mxu0  ;;  %v538_v56 = vpop.f32.mrb[1].mxu1 }
  0xf9   :  { %v370_v57 = vadd.f32 %v517_v52, %v460_v50  ;;  %v539_v58 = vadd.f32 %v538_v56, %v537_v54  ;;  %v540_v59 = vpop.f32.mrb[2].mxu1 }
  0xfa   :  { %v541_v60 = vpop.f32.mrb[3].mxu1 }
  0xfb   :  { %v410_v61 = vadd.f32 %v539_v58, %v370_v57 }
 0x109   :  { %v449_v62 = vpop.f32.mrb[4].mxu0 }
 0x10a   :  { %v450_v63 = vadd.f32 %v449_v62, %v410_v61  ;;  %v561_v0 = vpop.f32.mrb[5].mxu0 }
 0x10b   :  { %v452_v1 = vpop.f32.mrb[6].mxu0 }
 0x10c   :  { %455 = vst [vmem:[%s759_s3] sm:$0xff] %v450_v63  ;;  %v562_v2 = vpop.f32.mrb[7].mxu0 }

// kernel: dinov2_classification_forward.27
= control target key start
LH: loop header
LB: loop body
LE: loop exit
PB: predicated region body
PF: predicated region fallthrough
CT: control target
= control target key end

     0   :  { %s326_s1 = inlined_call_operand.vmem [shape: bf16[128,128], index: 1, kind: input, shape index: {}]   ;;  %s327_s0 = inlined_call_operand.vmem [shape: bf16[32,128], index: 0, kind: input, shape index: {}]   ;;  %s328_s2 = inlined_call_operand.vmem [shape: f32[1,128], index: 2, kind: input, shape index: {}]   ;;  %s329_s3 = inlined_call_operand.vmem [shape: f32[1,128], index: 3, kind: input, shape index: {}]   ;;  %s330_s4 = inlined_call_operand.vmem [shape: f32[32,128], index: 4, kind: input, shape index: {}]   ;;  %s331_s5 = inlined_call_operand.vmem [shape: f32[32,128], index: 5, kind: output, shape index: {}]  }
   0x1   :  { %v226_v0 = vld [vmem:[%s326_s1] sm:$0xff]   ;;  %v227_v1 = vld [vmem:[%s326_s1 + $0x8] sm:$0xff]   ;;  %v228_v2 = vld [vmem:[%s326_s1 + $0x10] sm:$0xff]  }
   0x2   :  { %206 = vmatprep.subr.bf16.mxu0 %v226_v0  ;;  %v229_v3 = vld [vmem:[%s326_s1 + $0x18] sm:$0xff]   ;;  %v234_v4 = vld [vmem:[%s327_s0] sm:$0xff]   ;;  %v231_v6 = vld [vmem:[%s326_s1 + $0x28] sm:$0xff]  }
   0x3   :  { %207 = vmatpush3.bf16.msra.mxu0 %v226_v0  ;;  %222 = vmatprep.mubr.bf16.mxu0 %v234_v4  ;;  %v230_v5 = vld [vmem:[%s326_s1 + $0x20] sm:$0xff]   ;;  %v232_v7 = vld [vmem:[%s326_s1 + $0x30] sm:$0xff]   ;;  %v233_v8 = vld [vmem:[%s326_s1 + $0x38] sm:$0xff]  }
   0x4   :  { %208 = vmatprep.subr.bf16.mxu0 %v227_v1  ;;  %v235_v9 = vld [vmem:[%s327_s0 + $0x8] sm:$0xff]   ;;  %v184_v10 = vld [vmem:[%s328_s2] ss:$0 sm:$0xff]  ;;  %v170_v15 = vld [vmem:[%s330_s4 + $0x10] sm:$0xff] }
   0x5   :  { %v195_v12 = vld [vmem:[%s329_s3] ss:$0 sm:$0xff]  ;;  %v171_v23 = vld [vmem:[%s330_s4 + $0x18] sm:$0xff]  ;;  %v169_v27 = vld [vmem:[%s330_s4 + $0x8] sm:$0xff] }
   0x6   :  { %v168_v19 = vld [vmem:[%s330_s4] sm:$0xff] }
   0x7   :  { %209 = vmatpush3.bf16.msra.mxu0 %v227_v1 }
   0x8   :  { %210 = vmatprep.subr.bf16.mxu0 %v228_v2 }
   0xb   :  { %211 = vmatpush3.bf16.msra.mxu0 %v228_v2 }
   0xc   :  { %212 = vmatprep.subr.bf16.mxu0 %v229_v3 }
   0xf   :  { %213 = vmatpush3.bf16.msra.mxu0 %v229_v3 }
  0x10   :  { %214 = vmatprep.subr.bf16.mxu0 %v230_v5 }
  0x13   :  { %215 = vmatpush3.bf16.msra.mxu0 %v230_v5 }
  0x14   :  { %216 = vmatprep.subr.bf16.mxu0 %v231_v6 }
  0x17   :  { %217 = vmatpush3.bf16.msra.mxu0 %v231_v6 }
  0x18   :  { %218 = vmatprep.subr.bf16.mxu0 %v232_v7 }
  0x1b   :  { %219 = vmatpush3.bf16.msra.mxu0 %v232_v7 }
  0x1c   :  { %220 = vmatprep.subr.bf16.mxu0 %v233_v8 }
  0x1f   :  { %221 = vmatpush3.bf16.msra.mxu0 %v233_v8 }
  0x22   :  { %223 = vmatmul.mubr.bf16.vlgmr.msra.gmra.mrb[0].mxu0 %v235_v9 }
  0xf5   :  { %v224_v11 = vpop.f32.mrb[0].mxu0 }
  0xf6   :  { %v151_v13 = vadd.f32 %v224_v11, %v184_v10  ;;  %v142_v14 = vpop.f32.mrb[1].mxu0 }
  0xf7   :  { %v143_v16 = vadd.f32 %v184_v10, %v142_v14  ;;  %v225_v17 = vpop.f32.mrb[2].mxu0 }
  0xf8   :  { %v166_v18 = vmul.f32 %v195_v12, %v151_v13  ;;  %v154_v20 = vadd.f32 %v225_v17, %v184_v10  ;;  %v145_v21 = vpop.f32.mrb[3].mxu0 }
  0xf9   :  { %v164_v22 = vmul.f32 %v195_v12, %v143_v16  ;;  %v146_v24 = vadd.f32 %v184_v10, %v145_v21 }
  0xfa   :  { %v174_v25 = vadd.f32 %v170_v15, %v166_v18  ;;  %v167_v26 = vmul.f32 %v195_v12, %v154_v20 }
  0xfb   :  { %v172_v28 = vadd.f32 %v168_v19, %v164_v22  ;;  %v165_v29 = vmul.f32 %v195_v12, %v146_v24 }
  0xfc   :  { %178 = vst [vmem:[%s331_s5 + $0x10] sm:$0xff] %v174_v25  ;;  %v175_v30 = vadd.f32 %v171_v23, %v167_v26 }
  0xfd   :  { %176 = vst [vmem:[%s331_s5] sm:$0xff] %v172_v28  ;;  %v173_v31 = vadd.f32 %v169_v27, %v165_v29 }
  0xfe   :  { %179 = vst [vmem:[%s331_s5 + $0x18] sm:$0xff] %v175_v30 }
  0xff   :  { %177 = vst [vmem:[%s331_s5 + $0x8] sm:$0xff] %v173_v31 }

// kernel: dinov2_classification_forward.25
= control target key start
LH: loop header
LB: loop body
LE: loop exit
PB: predicated region body
PF: predicated region fallthrough
CT: control target
= control target key end

     0   :  { %s948_s18 = smov 0   ;;  %s950_s19 = smov 0   ;;  %s1088_s0 = inlined_call_operand.vmem [shape: f32[32,128], index: 0, kind: input, shape index: {}]   ;;  %s1089_s1 = inlined_call_operand.vmem [shape: f32[1,128], index: 1, kind: input, shape index: {}]   ;;  %s1090_s2 = inlined_call_operand.vmem [shape: f32[1,128], index: 2, kind: input, shape index: {}]   ;;  %s1091_s3 = inlined_call_operand.vmem [shape: bf16[128,384], index: 3, kind: input, shape index: {}]   ;;  %s1092_s4 = inlined_call_operand.vmem [shape: f32[1,384], index: 4, kind: input, shape index: {}]   ;;  %s1093_s5 = inlined_call_operand.vmem [shape: bf16[32,384], index: 5, kind: output, shape index: {}]  }
   0x1   :  { %s952_s20 = smov 0   ;;  %s954_s21 = smov 0  }
   0x2   :  { %s956_s22 = smov 0  }
   0x3 LB: > { %s24_s23 = sadd.s32 1, %s912_s21  ;;  %s747_s24 = sadd.s32 4294967295, %s916_s22   ;;  %s916_s22 = sphi %s956_s22, %s15_s22   ;;  %s912_s21 = sphi %s954_s21, %s1098_s21   ;;  %s908_s20 = sphi %s952_s20, %s1097_s20   ;;  %s904_s19 = sphi %s950_s19, %s1096_s19   ;;  %s900_s18 = sphi %s948_s18, %s1095_s18  }
   0x4   : > { %p25_p0 = scmp.ge.s32.totalorder %s24_s23, 3  ;;  %p109_p1 = scmp.ne.s32.totalorder %s904_s19, %s900_s18 }
   0x5   : > { %p110_p2 = scmp.eq.s32.totalorder %s916_s22, 0  ;;  %p167_p4 = scmp.eq.s32.totalorder %s747_s24, 2 }
   0x6   : > { %s1100_s23 = smov (%p25_p0, %s24_s23), 0  ;;  %s102_s26 = sadd.s32 1, %s904_s19 }
   0x7   : > { %p111_p3 = por %p110_p2, %p109_p1  ;;  %s99_s25 = ssub.s32 %s912_s21, %s1100_s23 }
   0x8   : > { %p100_p5 = scmp.eq.s32.totalorder %s99_s25, 0  ;;  %p983_p6 = por %p167_p4, %p109_p1 }
   0x9   : > { %p751_p7 = scmp.ge.s32.totalorder %s916_s22, 3 }
   0xa   : > { %s988_s28 = scalar_select %p100_p5, %s904_s19, %s102_s26  }
   0xb   : > { %204 = sbr.rel (%p751_p7) target bundleno = 32 (0x20), region = 28 }
  0x12   : > { %207 = sbr.rel (!%p111_p3) target bundleno = 32 (0x20), region = 32  ;;  %s209_s29 = sand.u32 (%p111_p3), 1, %s904_s19  }
  0x13   : > { %s753_s30 = sshll.u32 (%p111_p3), %s912_s21, 2  ;;  %s752_s6 = sshll.u32 (%p111_p3), %s209_s29, 6 }
  0x14   : > { %s996_s9 = scalar_lea.vmem (%p111_p3), %s1091_s3, %s753_s30  ;;  %s211_s10 = scalar_lea.vmem (%p111_p3), [#allocation3], %s752_s6 }
  0x15   : > { %v229_v0 = vld [vmem:[%s996_s9] sm:$0xf] (%p111_p3)  ;;  %v231_v1 = vld [vmem:[%s996_s9 + $0xc] sm:$0xf] (%p111_p3)  ;;  %v233_v2 = vld [vmem:[%s996_s9 + $0x18] sm:$0xf] (%p111_p3) }
  0x16   : > { %230 = vst [vmem:[%s211_s10] sm:$0xf] (%p111_p3), %v229_v0  ;;  %232 = vst [vmem:[%s211_s10 + $0x4] sm:$0xf] (%p111_p3), %v231_v1  ;;  %v235_v3 = vld [vmem:[%s996_s9 + $0x24] sm:$0xf] (%p111_p3) }
  0x17   : > { %v237_v4 = vld [vmem:[%s996_s9 + $0x30] sm:$0xf] (%p111_p3)  ;;  %234 = vst [vmem:[%s211_s10 + $0x8] sm:$0xf] (%p111_p3), %v233_v2  ;;  %236 = vst [vmem:[%s211_s10 + $0xc] sm:$0xf] (%p111_p3), %v235_v3 }
  0x18   : > { %238 = vst [vmem:[%s211_s10 + $0x10] sm:$0xf] (%p111_p3), %v237_v4  ;;  %v239_v5 = vld [vmem:[%s996_s9 + $0x3c] sm:$0xf] (%p111_p3)  ;;  %v241_v6 = vld [vmem:[%s996_s9 + $0x48] sm:$0xf] (%p111_p3) }
  0x19   : > { %v243_v7 = vld [vmem:[%s996_s9 + $0x54] sm:$0xf]  ;;  %240 = vst [vmem:[%s211_s10 + $0x14] sm:$0xf] %v239_v5  ;;  %242 = vst [vmem:[%s211_s10 + $0x18] sm:$0xf] %v241_v6 }
  0x1a   : > { %244 = vst [vmem:[%s211_s10 + $0x1c] sm:$0xf] %v243_v7  ;;  %v245_v8 = vld [vmem:[%s996_s9 + $0x60] sm:$0xf]  ;;  %v247_v9 = vld [vmem:[%s996_s9 + $0x6c] sm:$0xf] }
  0x1b   : > { %v249_v10 = vld [vmem:[%s996_s9 + $0x78] sm:$0xf]  ;;  %246 = vst [vmem:[%s211_s10 + $0x20] sm:$0xf] %v245_v8  ;;  %248 = vst [vmem:[%s211_s10 + $0x24] sm:$0xf] %v247_v9 }
  0x1c   : > { %250 = vst [vmem:[%s211_s10 + $0x28] sm:$0xf] %v249_v10  ;;  %v251_v11 = vld [vmem:[%s996_s9 + $0x84] sm:$0xf]  ;;  %v253_v12 = vld [vmem:[%s996_s9 + $0x90] sm:$0xf] }
  0x1d   : > { %v255_v13 = vld [vmem:[%s996_s9 + $0x9c] sm:$0xf]  ;;  %252 = vst [vmem:[%s211_s10 + $0x2c] sm:$0xf] %v251_v11  ;;  %254 = vst [vmem:[%s211_s10 + $0x30] sm:$0xf] %v253_v12 }
  0x1e   : > { %256 = vst [vmem:[%s211_s10 + $0x34] sm:$0xf] %v255_v13  ;;  %v257_v14 = vld [vmem:[%s996_s9 + $0xa8] sm:$0xf]  ;;  %v259_v15 = vld [vmem:[%s996_s9 + $0xb4] sm:$0xf] }
  0x1f   : > { %258 = vst [vmem:[%s211_s10 + $0x38] sm:$0xf] %v257_v14  ;;  %260 = vst [vmem:[%s211_s10 + $0x3c] sm:$0xf] %v259_v15 }
  0x20 PF: > { %p754_p8 = scmp.ge.s32.totalorder %s916_s22, 1  ;;  %p320_p9 = scmp.lt.s32.totalorder %s916_s22, 4 }
  0x22   : > { %p321_p10 = pnand %p754_p8, %p320_p9 }
  0x23   : > { %s327_s11 = sand.u32 (!%p321_p10), 1, %s900_s18   ;;  %p367_p11 = scmp.lt.s32.totalorder (!%p321_p10), %s908_s20, 2 }
  0x24   : > { %324 = sbr.rel (%p321_p10) target bundleno = 629 (0x275), region = 77  ;;  %s755_s12 = sshll.u32 (!%p321_p10), %s327_s11, 6 }
  0x25   : > { %s756_s13 = sshll.u32 (!%p321_p10), %s327_s11, 4  ;;  %s1025_s24 = scalar_lea.vmem (!%p321_p10), [#allocation3], %s755_s12 }
  0x26   : > { %s1027_s25 = scalar_lea.vmem (!%p321_p10), [#allocation4], %s756_s13  ;;  %p757_p12 = scmp.ne.s32.totalorder (!%p321_p10), %s908_s20, 0 }
  0x2b   : > { %s1019_s14 = scalar_select %p367_p11, %s908_s20, 2 }
  0x2c   : > { %375 = sbr.rel (%p757_p12) target bundleno = 367 (0x16f), region = 85  ;;  %v376_v16 = vld [vmem:[%s1088_s0] sm:$0xff] (!%p757_p12)  ;;  %v378_v17 = vld [vmem:[%s1088_s0 + $0x10] sm:$0xff] (!%p757_p12)  ;;  %v377_v18 = vld [vmem:[%s1088_s0 + $0x8] sm:$0xff] (!%p757_p12) }
  0x2d   : > { %s369_s17 = scalar_lea.vmem %s1092_s4, %s1019_s14  ;;  %380 = vadd.xlane.f32.xlu0 (!%p757_p12), %v376_v16  ;;  %384 = vadd.xlane.f32.xlu1 (!%p757_p12), %v378_v17  ;;  %v379_v19 = vld [vmem:[%s1088_s0 + $0x18] sm:$0xff] (!%p757_p12)  ;;  %v758_v50 = vld [vmem:[%s1089_s1] ss:$0 sm:$0xff] (!%p757_p12) }
  0x2e   : > { %v759_v55 = vld [vmem:[%s1090_s2] ss:$0 sm:$0xff] (!%p757_p12) }
  0x31   : > { %382 = vadd.xlane.f32.xlu0 (!%p757_p12), %v377_v18  ;;  %386 = vadd.xlane.f32.xlu1 (!%p757_p12), %v379_v19 }
  0xba   : > { %v381_v20 = vpop.xlane.xlu0 %380  ;;  %v385_v21 = vpop.xlane.xlu1 %384 }
  0xbb   : > { %v389_v22 = vmul.f32 0.0078125, %v381_v20  ;;  %v391_v23 = vmul.f32 0.0078125, %v385_v21 }
  0xbd   : > { %v393_v24 = vsub.f32 %v376_v16, %v389_v22  ;;  %v395_v25 = vsub.f32 %v378_v17, %v391_v23 }
  0xbe   : > { %v383_v26 = vpop.xlane.xlu0 %382  ;;  %v387_v27 = vpop.xlane.xlu1 %386 }
  0xbf   : > { %v390_v28 = vmul.f32 0.0078125, %v383_v26  ;;  %v397_v29 = vmul.f32 %v393_v24, %v393_v24  ;;  %v392_v30 = vmul.f32 0.0078125, %v387_v27  ;;  %v399_v33 = vmul.f32 %v395_v25, %v395_v25 }
  0xc1   : > { %v394_v31 = vsub.f32 %v377_v18, %v390_v28  ;;  %401 = vadd.xlane.f32.xlu0 %v397_v29  ;;  %v396_v32 = vsub.f32 %v379_v19, %v392_v30 }
  0xc3   : > { %v398_v34 = vmul.f32 %v394_v31, %v394_v31  ;;  %v400_v35 = vmul.f32 %v396_v32, %v396_v32 }
  0xc5   : > { %405 = vadd.xlane.f32.xlu0 %v399_v33  ;;  %403 = vadd.xlane.f32.xlu1 %v398_v34 }
  0xc9   : > { %407 = vadd.xlane.f32.xlu1 %v400_v35 }
 0x14e   : > { %v402_v36 = vpop.xlane.xlu0 %401 }
 0x14f   : > { %v409_v37 = vmul.f32 0.0078125, %v402_v36 }
 0x151   : > { %v413_v38 = vadd.f32 1e-06, %v409_v37 }
 0x152   : > { %v404_v39 = vpop.xlane.xlu1 %403  ;;  %v406_v40 = vpop.xlane.xlu0 %405 }
 0x153   : > { %862 = vrsqrt.f32 %v413_v38  ;;  %v410_v41 = vmul.f32 0.0078125, %v404_v39  ;;  %v411_v42 = vmul.f32 0.0078125, %v406_v40 }
 0x155   : > { %v414_v43 = vadd.f32 1e-06, %v410_v41  ;;  %v415_v44 = vadd.f32 1e-06, %v411_v42 }
 0x156   : > { %v408_v45 = vpop.xlane.xlu1 %407 }
 0x157   : > { %864 = vrsqrt.f32 %v414_v43  ;;  %v412_v46 = vmul.f32 0.0078125, %v408_v45 }
 0x158   : > { %866 = vrsqrt.f32 %v415_v44 }
 0x159   : > { %v416_v47 = vadd.f32 1e-06, %v412_v46 }
 0x15b   : > { %868 = vrsqrt.f32 %v416_v47 }
 0x15d   : > { %v863_v48 = vpop.eup %862 }
 0x15e   : > { %v421_v49 = vmul.f32 %v863_v48, %v393_v24 }
 0x160   : > { %v432_v53 = vmul.f32 %v758_v50, %v421_v49 }
 0x161   : > { %v865_v51 = vpop.eup %864 }
 0x162   : > { %v867_v52 = vpop.eup %866  ;;  %v422_v54 = vmul.f32 %v865_v51, %v394_v31  ;;  %v443_v59 = vadd.f32 %v759_v55, %v432_v53 }
 0x163   : > { %v423_v56 = vmul.f32 %v867_v52, %v395_v25 }
 0x164   : > { %v433_v57 = vmul.f32 %v758_v50, %v422_v54 }
 0x165   : > { %v869_v58 = vpop.eup %868  ;;  %v434_v61 = vmul.f32 %v758_v50, %v423_v56 }
 0x166   : > { %v444_v60 = vadd.f32 %v759_v55, %v433_v57  ;;  %v424_v62 = vmul.f32 %v869_v58, %v396_v32 }
 0x167   : > { %v445_v1 = vadd.f32 %v759_v55, %v434_v61 }
 0x168   : > { %v447_v63 = vpack.c.bf16 %v444_v60, %v443_v59  ;;  %v435_v0 = vmul.f32 %v758_v50, %v424_v62 }
 0x16a   : > { %449 = vst [vmem:[#allocation2] sm:$0xff] %v447_v63  ;;  %v446_v2 = vadd.f32 %v759_v55, %v435_v0 }
 0x16c   : > { %v448_v3 = vpack.c.bf16 %v446_v2, %v445_v1 }
 0x16e   : > { %450 = vst [vmem:[#allocation2 + $0x8] sm:$0xff] %v448_v3 }
 0x16f PF: > { %v870_v4 = vld [vmem:[%s1025_s24] sm:$0xff]   ;;  %v871_v5 = vld [vmem:[%s1025_s24 + $0x8] sm:$0xff]   ;;  %v872_v6 = vld [vmem:[%s1025_s24 + $0x10] sm:$0xff]   ;;  %s774_s14 = sshll.u32 (%p983_p6), %s908_s20, 2 }
 0x170   : > { %802 = vmatprep.subr.bf16.mxu0 %v870_v4  ;;  %v873_v7 = vld [vmem:[%s1025_s24 + $0x18] sm:$0xff]   ;;  %v874_v9 = vld [vmem:[%s1025_s24 + $0x20] sm:$0xff]   ;;  %v875_v10 = vld [vmem:[%s1025_s24 + $0x28] sm:$0xff]   ;;  %s604_s26 = scalar_lea.vmem (%p983_p6), %s1093_s5, %s774_s14 }
 0x171   : > { %803 = vmatpush3.bf16.msra.mxu0 %v870_v4  ;;  %v451_v8 = vld [vmem:[#allocation2] sm:$0xff]  ;;  %v877_v12 = vld [vmem:[%s1025_s24 + $0x38] sm:$0xff]  }
 0x172   : > { %804 = vmatprep.subr.bf16.mxu0 %v871_v5  ;;  %818 = vmatprep.mubr.bf16.mxu0 %v451_v8  ;;  %v876_v11 = vld [vmem:[%s1025_s24 + $0x30] sm:$0xff]  }
 0x173   : > { %v760_v15 = vld [vmem:[%s369_s17] ss:$0 sm:$0xff] }
 0x175   : > { %805 = vmatpush3.bf16.msra.mxu0 %v871_v5  ;;  %v452_v13 = vld [vmem:[#allocation2 + $0x8] sm:$0xff] }
 0x176   : > { %806 = vmatprep.subr.bf16.mxu0 %v872_v6 }
 0x179   : > { %807 = vmatpush3.bf16.msra.mxu0 %v872_v6 }
 0x17a   : > { %808 = vmatprep.subr.bf16.mxu0 %v873_v7 }
 0x17d   : > { %809 = vmatpush3.bf16.msra.mxu0 %v873_v7 }
 0x17e   : > { %810 = vmatprep.subr.bf16.mxu0 %v874_v9 }
 0x181   : > { %811 = vmatpush3.bf16.msra.mxu0 %v874_v9 }
 0x182   : > { %812 = vmatprep.subr.bf16.mxu0 %v875_v10 }
 0x185   : > { %813 = vmatpush3.bf16.msra.mxu0 %v875_v10 }
 0x186   : > { %814 = vmatprep.subr.bf16.mxu0 %v876_v11 }
 0x189   : > { %815 = vmatpush3.bf16.msra.mxu0 %v876_v11 }
 0x18a   : > { %816 = vmatprep.subr.bf16.mxu0 %v877_v12 }
 0x18d   : > { %817 = vmatpush3.bf16.msra.mxu0 %v877_v12 }
 0x190   : > { %819 = vmatmul.mubr.bf16.vlgmr.msra.gmra.mrb[0].mxu0 %v452_v13 }
 0x263   : > { %v820_v14 = vpop.f32.mrb[0].mxu0 }
 0x264   : > { %v558_v16 = vpop.f32.mrb[1].mxu0  ;;  %v567_v18 = vadd.f32 %v820_v14, %v760_v15 }
 0x265   : > { %v821_v17 = vpop.f32.mrb[2].mxu0  ;;  %v559_v21 = vadd.f32 %v760_v15, %v558_v16  ;;  %599 = sbr.rel (!%p983_p6) target bundleno = 629 (0x275), region = 89 }
 0x266   : > { %v570_v19 = vadd.f32 %v821_v17, %v760_v15  ;;  %v561_v20 = vpop.f32.mrb[3].mxu0 }
 0x267   : > { %v562_v22 = vadd.f32 %v760_v15, %v561_v20 }
 0x268   : > { %v789_v23 = vpack.c.bf16 %v570_v19, %v567_v18 }
 0x269   : > { %v784_v24 = vpack.c.bf16 %v562_v22, %v559_v21 }
 0x26a   : > { %791 = vst [vmem:[%s1027_s25 + $0x8] sm:$0xff] %v789_v23  }
 0x26b   : > { %785 = vst [vmem:[%s1027_s25] sm:$0xff] %v784_v24  }
 0x271   : > { %v624_v27 = vld [vmem:[%s1027_s25 + $0x8] sm:$0xf]  ;;  %v626_v28 = vld [vmem:[%s1027_s25 + $0xc] sm:$0xf] }
 0x272   : > { %v620_v25 = vld [vmem:[%s1027_s25] sm:$0xf]  ;;  %v622_v26 = vld [vmem:[%s1027_s25 + $0x4] sm:$0xf]  ;;  %625 = vst [vmem:[%s604_s26 + $0x18] sm:$0xf] %v624_v27 }
 0x273   : > { %621 = vst [vmem:[%s604_s26] sm:$0xf] %v620_v25  ;;  %623 = vst [vmem:[%s604_s26 + $0xc] sm:$0xf] %v622_v26 }
 0x274   : > { %627 = vst [vmem:[%s604_s26 + $0x24] sm:$0xf] %v626_v28 }
 0x275 PF: > { %s15_s22 = sadd.s32 1, %s916_s22   ;;  %s1095_s18 = smov %s904_s19 }
 0x276   : > { %p12_p13 = scmp.ge.s32.totalorder %s15_s22, 5   ;;  %s1096_s19 = smov %s988_s28 }
 0x277   : > { %s1097_s20 = smov %s912_s21  ;;  %s1098_s21 = smov %s1100_s23 }
 0x278   :  { %14 = sbr.rel (!%p12_p13) target bundleno = 3 (0x3), region = 167 }

// kernel: dinov2_classification_forward.26
= control target key start
LH: loop header
LB: loop body
LE: loop exit
PB: predicated region body
PF: predicated region fallthrough
CT: control target
= control target key end

     0   :  { %s1308_s12 = smov 0   ;;  %s1310_s13 = smov 0   ;;  %s1498_s0 = inlined_call_operand.vmem [shape: bf16[2,16,384], index: 0, kind: input, shape index: {}, may-alias: {0,1,2}]   ;;  %s1499_s1 = inlined_call_operand.vmem [shape: bf16[2,16,384], index: 1, kind: input, shape index: {}, may-alias: {0,1,2}]   ;;  %s1500_s2 = inlined_call_operand.vmem [shape: bf16[2,16,384], index: 2, kind: input, shape index: {}, may-alias: {0,1,2}]   ;;  %s1501_s3 = inlined_call_operand.vmem [shape: bf16[2,16,128], index: 3, kind: output, shape index: {}]  }
   0x1   :  { %s1312_s14 = smov 0   ;;  %s1314_s15 = smov 0  }
   0x2   :  { %s1316_s16 = smov 0  }
   0x3 LB: > { %s25_s17 = sadd.s32 1, %s1277_s15  ;;  %p41_p1 = scmp.ne.s32.totalorder %s1269_s13, %s1265_s12  ;;  %s1281_s16 = sphi %s1316_s16, %s13_s16   ;;  %s1277_s15 = sphi %s1314_s15, %s1506_s15   ;;  %s1273_s14 = sphi %s1312_s14, %s1505_s14   ;;  %s1269_s13 = sphi %s1310_s13, %s1504_s13   ;;  %s1265_s12 = sphi %s1308_s12, %s1503_s12  }
   0x4   : > { %p27_p0 = scmp.ge.s32.totalorder %s25_s17, 2  ;;  %p42_p2 = scmp.eq.s32.totalorder %s1281_s16, 0 }
   0x5   : > { %s34_s20 = sadd.s32 1, %s1269_s13  ;;  %p1065_p5 = scmp.ge.s32.totalorder %s1281_s16, 2 }
   0x6   : > { %s1508_s17 = smov (%p27_p0, %s25_s17), 0  ;;  %p1339_p3 = por %p42_p2, %p41_p1 }
   0x7   : > { %s29_s19 = ssub.s32 %s1277_s15, %s1508_s17  ;;  %147 = sbr.rel (%p1065_p5) target bundleno = 35 (0x23), region = 16 }
   0x8   : > { %p32_p4 = scmp.eq.s32.totalorder %s29_s19, 0 }
   0xa   : > { %s1347_s21 = scalar_select %p32_p4, %s1269_s13, %s34_s20  }
   0xe   : > { %150 = sbr.rel (!%p1339_p3) target bundleno = 21 (0x15), region = 20  ;;  %s152_s22 = sand.u32 (%p1339_p3), 1, %s1269_s13  }
   0xf   : > { %s1162_s23 = smul.u32 (%p1339_p3), 24, %s1277_s15  ;;  %s1066_s24 = sshll.u32 (%p1339_p3), %s152_s22, 3 }
  0x10   : > { %s154_s28 = scalar_lea.vmem (%p1339_p3), [#allocation2], %s1066_s24 }
  0x11   : > { %s160_s27 = scalar_lea.vmem (%p1339_p3), %s1498_s0, %s1162_s23 }
  0x12   : > { %v176_v0 = vld [vmem:[%s160_s27] sm:$0xf] (%p1339_p3)  ;;  %v178_v1 = vld [vmem:[%s160_s27 + $0xc] sm:$0xf] (%p1339_p3) }
  0x13   : > { %177 = vst [vmem:[%s154_s28] sm:$0xf] (%p1339_p3), %v176_v0  ;;  %179 = vst [vmem:[%s154_s28 + $0x4] sm:$0xf] (%p1339_p3), %v178_v1 }
  0x15 PF: > { %206 = sbr.rel (!%p1339_p3) target bundleno = 28 (0x1c), region = 61  ;;  %s208_s29 = sand.u32 (%p1339_p3), 1, %s1269_s13  }
  0x16   : > { %s1069_s30 = smul.u32 (%p1339_p3), 24, %s1277_s15  ;;  %s1068_s4 = sshll.u32 (%p1339_p3), %s208_s29, 3 }
  0x17   : > { %s210_s8 = scalar_lea.vmem (%p1339_p3), [#allocation3], %s1068_s4 }
  0x18   : > { %s973_s7 = scalar_lea.vmem (%p1339_p3), %s1499_s1, %s1069_s30 }
  0x19   : > { %v1070_v2 = vld [vmem:[%s973_s7 + $0x4] sm:$0xf] (%p1339_p3)  ;;  %v1071_v3 = vld [vmem:[%s973_s7 + $0x10] sm:$0xf] (%p1339_p3) }
  0x1a   : > { %231 = vst [vmem:[%s210_s8] sm:$0xf] (%p1339_p3), %v1070_v2  ;;  %233 = vst [vmem:[%s210_s8 + $0x4] sm:$0xf] (%p1339_p3), %v1071_v3 }
  0x1c PF: > { %260 = sbr.rel (!%p1339_p3) target bundleno = 35 (0x23), region = 102  ;;  %s262_s9 = sand.u32 (%p1339_p3), 1, %s1269_s13  }
  0x1d   : > { %s1073_s10 = smul.u32 (%p1339_p3), 24, %s1277_s15  ;;  %s1072_s11 = sshll.u32 (%p1339_p3), %s262_s9, 3 }
  0x1e   : > { %s264_s23 = scalar_lea.vmem (%p1339_p3), [#allocation4], %s1072_s11 }
  0x1f   : > { %s979_s22 = scalar_lea.vmem (%p1339_p3), %s1500_s2, %s1073_s10 }
  0x20   : > { %v1074_v4 = vld [vmem:[%s979_s22 + $0x8] sm:$0xf] (%p1339_p3)  ;;  %v1075_v5 = vld [vmem:[%s979_s22 + $0x14] sm:$0xf] (%p1339_p3) }
  0x21   : > { %285 = vst [vmem:[%s264_s23] sm:$0xf] (%p1339_p3), %v1074_v4  ;;  %287 = vst [vmem:[%s264_s23 + $0x4] sm:$0xf] (%p1339_p3), %v1075_v5 }
  0x23 PF: > { %p1076_p6 = scmp.ge.s32.totalorder %s1281_s16, 1  ;;  %p313_p7 = scmp.lt.s32.totalorder %s1281_s16, 3 }
  0x25   : > { %p314_p8 = pnand %p1076_p6, %p313_p7 }
  0x26   : > { %s320_s18 = sand.u32 (!%p314_p8), 1, %s1265_s12   ;;  %v1283_v6 = vmov (!%p314_p8), 0.0   ;;  %vm1284_vm0 = vmmov (!%p314_p8), 0   ;;  %vm400_vm1 = vcmask (!%p314_p8), 261120   ;;  %v387_v10 = vlaneseq (!%p314_p8)  ;;  %s1285_s26 = smov (!%p314_p8), 96  }
  0x27   : > { %317 = sbr.rel (%p314_p8) target bundleno = 1524 (0x5f4), region = 143  ;;  %1114 = vmatprep.subr.bf16.mxu0 (!%p314_p8), %v1283_v6  ;;  %s1375_s24 = sshll.u32 (!%p314_p8), %s320_s18, 3  ;;  %1116 = vmatprep.mubr.msk.bf16.mxu0 (!%p314_p8), %vm1284_vm0, %v1283_v6  ;;  %vm452_vm3 = vcmask (!%p314_p8), 130048   ;;  %vm917_vm4 = vcmask (!%p314_p8), 523264   ;;  %vm920_vm5 = vcmask (!%p314_p8), 785408  }
  0x28   : > { %1120 = vmatprep.subr.bf16.mxu1 (!%p314_p8), %v1283_v6  ;;  %1122 = vmatprep.mubr.msk.bf16.mxu1 (!%p314_p8), %vm1284_vm0, %v1283_v6  ;;  %s329_s25 = scalar_lea.vmem (!%p314_p8), [#allocation3], %s1375_s24  ;;  %s322_s12 = scalar_lea.vmem (!%p314_p8), [#allocation2], %s1375_s24  ;;  %v1389_v11 = vand.u32 (!%p314_p8), 127, %v387_v10 }
  0x29   : > { %v1208_v7 = vld [vmem:[%s329_s25] sm:$0xff] (!%p314_p8)   ;;  %v1209_v9 = vld [vmem:[%s322_s12] sm:$0xff] (!%p314_p8)   ;;  %s1286_s27 = smov (!%p314_p8), 32   ;;  %s336_s28 = scalar_lea.vmem (!%p314_p8), [#allocation4], %s1375_s24 }
  0x2a   : > { %v405_v8 = vsel (!%p314_p8), %vm400_vm1, %v1208_v7, 0  ;;  %vm389_vm2 = vcmp.lt.s32.totalorder (!%p314_p8), %v1389_v11, 9  ;;  %v1403_v32 = vld [vmem:[%s336_s28] sm:$0xff] (!%p314_p8)   ;;  %s1287_s29 = smov (!%p314_p8), 64   ;;  %p371_p9 = scmp.lt.s32.totalorder (!%p314_p8), %s1273_s14, 1 }
  0x2b   : > { %1115 = vmatpush3.bf16.xpose.msra.mxu0 (!%p314_p8), %v405_v8  ;;  %1121 = vmatpush3.bf16.msra.mxu1 (!%p314_p8), %v1403_v32 }
  0x2c   : > { %1132 = vmatprep.subr.bf16.mxu0 (!%p314_p8), %v1283_v6  ;;  %1126 = vmatprep.subr.bf16.mxu1 (!%p314_p8), %v1283_v6 }
  0x2e   : > { %s1510_s14 = smov (!%p371_p9, %s1273_s14), 1 }
  0x2f   : > { %s1097_s30 = sshll.u32 %s1510_s14, 3 }
  0x30   : > { %s378_s6 = scalar_lea.vmem %s1501_s3, %s1097_s30 }
  0x32   : > { %1117 = vmatmul.mubr.msk.bf16.vlgmr.msra.gmra.mrb[0].mxu0 %vm400_vm1, %v1209_v9 }
  0x33   : > { %1134 = vmatprep.mubr.msk.bf16.mxu0 %vm1284_vm0, %v1283_v6 }
 0x105   : > { %v441_v12 = vpop.f32.mrb[0].mxu0 }
 0x106   : > { %v448_v13 = vmul.f32 0.17677669, %v441_v12  ;;  %v1118_v14 = vpop.f32.mrb[1].mxu0 }
 0x107   : > { %v444_v15 = vpop.f32.mrb[2].mxu0 }
 0x108   : > { %v449_v16 = vmul.f32 0.17677669, %v444_v15  ;;  %v1119_v17 = vpop.f32.mrb[3].mxu0  ;;  %v450_v18 = vsel %vm389_vm2, %v448_v13, -1e+30 }
 0x109   : > { %v453_v19 = vsel %vm452_vm3, %v450_v18, -inf }
 0x10a   : > { %454 = vmax.xlane.f32.xlu0 %v453_v19  ;;  %v451_v20 = vsel %vm389_vm2, %v449_v16, -1e+30 }
 0x10b   : > { %v456_v21 = vsel %vm452_vm3, %v451_v20, -inf }
 0x10e   : > { %457 = vmax.xlane.f32.xlu0 %v456_v21 }
 0x124   : > { %529 = vrot.lane.b32.xlu0 %v1208_v7, %s1285_s26 }
 0x128   : > { %781 = vrot.lane.b32.xlu0 %v1208_v7, %s1286_s27 }
 0x197   : > { %v455_v22 = vpop.xlane.xlu0 %454 }
 0x198   : > { %v459_v23 = vsub.f32 %v450_v18, %v455_v22 }
 0x19a   : > { %v461_v24 = vmul.f32 1.442695, %v459_v23 }
 0x19b   : > { %v458_v25 = vpop.xlane.xlu0 %457 }
 0x19c   : > { %1211 = vpow2.f32 %v461_v24  ;;  %v460_v26 = vsub.f32 %v451_v20, %v458_v25 }
 0x19e   : > { %v463_v27 = vmul.f32 1.442695, %v460_v26 }
 0x19f   : > { %v530_v37 = vpop.permute.xlu0 %529 }
 0x1a0   : > { %1213 = vpow2.f32 %v463_v27  ;;  %v535_v41 = vsel %vm400_vm1, %v530_v37, 0 }
 0x1a3   : > { %v782_v45 = vpop.permute.xlu0 %781 }
 0x1a4   : > { %v787_v47 = vsel %vm400_vm1, %v782_v45, 0 }
 0x1a6   : > { %v1212_v28 = vpop.eup %1211 }
 0x1a7   : > { %v465_v29 = vsel %vm452_vm3, %v1212_v28, 0.0 }
 0x1a8   : > { %466 = vadd.xlane.f32.xlu1 %v465_v29 }
 0x1aa   : > { %v1214_v30 = vpop.eup %1213 }
 0x1ab   : > { %v468_v31 = vsel %vm452_vm3, %v1214_v30, 0.0 }
 0x1ac   : > { %469 = vadd.xlane.f32.xlu1 %v468_v31 }
 0x1bd   : > { %527 = vrot.lane.b32.xlu1 %v1209_v9, %s1285_s26 }
 0x1c1   : > { %655 = vrot.lane.b32.xlu1 %v1208_v7, %s1287_s29 }
 0x1c5   : > { %653 = vrot.lane.b32.xlu1 %v1209_v9, %s1287_s29 }
 0x1c9   : > { %779 = vrot.lane.b32.xlu1 %v1209_v9, %s1286_s27 }
 0x235   : > { %v467_v33 = vpop.xlane.xlu1 %466 }
 0x236   : > { %1215 = vrcp.f32 %v467_v33 }
 0x239   : > { %v470_v34 = vpop.xlane.xlu1 %469 }
 0x23a   : > { %1217 = vrcp.f32 %v470_v34 }
 0x23d   : > { %v528_v40 = vpop.permute.xlu1 %527 }
 0x240   : > { %v1216_v35 = vpop.eup %1215 }
 0x241   : > { %v472_v38 = vmul.f32 %v1216_v35, %v1212_v28  ;;  %v656_v43 = vpop.permute.xlu1 %655 }
 0x242   : > { %v661_v44 = vsel %vm400_vm1, %v656_v43, 0 }
 0x244   : > { %v1218_v36 = vpop.eup %1217 }
 0x245   : > { %v474_v39 = vmul.f32 %v1218_v36, %v1214_v30  ;;  %v654_v46 = vpop.permute.xlu1 %653 }
 0x247   : > { %v475_v42 = vpack.c.bf16 %v474_v39, %v472_v38 }
 0x249   : > { %1123 = vmatmul.mubr.msk.bf16.vlgmr.msra.gmra.mrb[0].mxu1 %vm452_vm3, %v475_v42  ;;  %v780_v48 = vpop.permute.xlu1 %779 }
 0x24a   : > { %1127 = vmatpush3.bf16.xpose.msra.mxu1 %v535_v41  ;;  %1128 = vmatprep.mubr.msk.bf16.mxu1 %vm1284_vm0, %v1283_v6 }
 0x24b   : > { %1138 = vmatprep.subr.bf16.mxu1 %v1283_v6 }
 0x251   : > { %1129 = vmatmul.mubr.msk.bf16.vlgmr.msra.gmra.mrb[4].mxu1 %vm400_vm1, %v528_v40 }
 0x252   : > { %1139 = vmatpush3.bf16.xpose.msra.mxu1 %v661_v44  ;;  %1140 = vmatprep.mubr.msk.bf16.mxu1 %vm1284_vm0, %v1283_v6 }
 0x253   : > { %1150 = vmatprep.subr.bf16.mxu1 %v1283_v6 }
 0x259   : > { %1141 = vmatmul.mubr.msk.bf16.vlgmr.msra.gmra.mrb[8].mxu1 %vm400_vm1, %v654_v46 }
 0x25a   : > { %1151 = vmatpush3.bf16.xpose.msra.mxu1 %v787_v47  ;;  %1152 = vmatprep.mubr.msk.bf16.mxu1 %vm1284_vm0, %v1283_v6 }
 0x261   : > { %1153 = vmatmul.mubr.msk.bf16.vlgmr.msra.gmra.mrb[12].mxu1 %vm400_vm1, %v780_v48 }
 0x31c   : > { %v1426_v49 = vpop.f32.mrb[0].mxu1 }
 0x31d   : > { %v1124_v50 = vpop.f32.mrb[1].mxu1 }
 0x31e   : > { %v1428_v51 = vpop.f32.mrb[2].mxu1 }
 0x31f   : > { %v526_v52 = vpack.c.bf16 %v1428_v51, %v1426_v49  ;;  %v1125_v53 = vpop.f32.mrb[3].mxu1 }
 0x324   : > { %v571_v54 = vpop.f32.mrb[4].mxu1 }
 0x325   : > { %v578_v55 = vmul.f32 0.17677669, %v571_v54  ;;  %v1130_v56 = vpop.f32.mrb[5].mxu1 }
 0x326   : > { %v574_v57 = vpop.f32.mrb[6].mxu1 }
 0x327   : > { %v579_v58 = vmul.f32 0.17677669, %v574_v57  ;;  %v1131_v59 = vpop.f32.mrb[7].mxu1  ;;  %v580_v60 = vsel %vm389_vm2, %v578_v55, -1e+30 }
 0x328   : > { %v582_v61 = vsel %vm452_vm3, %v580_v60, -inf }
 0x329   : > { %583 = vmax.xlane.f32.xlu0 %v582_v61  ;;  %v581_v62 = vsel %vm389_vm2, %v579_v58, -1e+30 }
 0x32a   : > { %v585_v63 = vsel %vm452_vm3, %v581_v62, -inf }
 0x32b   : > { %586 = vmax.xlane.f32.xlu1 %v585_v63 }
 0x32c   : > { %v697_v0 = vpop.f32.mrb[8].mxu1 }
 0x32d   : > { %v704_v1 = vmul.f32 0.17677669, %v697_v0  ;;  %v1142_v2 = vpop.f32.mrb[9].mxu1 }
 0x32e   : > { %v700_v3 = vpop.f32.mrb[10].mxu1 }
 0x32f   : > { %v705_v4 = vmul.f32 0.17677669, %v700_v3  ;;  %v1143_v5 = vpop.f32.mrb[11].mxu1  ;;  %v706_v7 = vsel %vm389_vm2, %v704_v1, -1e+30 }
 0x330   : > { %v708_v8 = vsel %vm452_vm3, %v706_v7, -inf }
 0x331   : > { %709 = vmax.xlane.f32.xlu0 %v708_v8  ;;  %v707_v9 = vsel %vm389_vm2, %v705_v4, -1e+30 }
 0x332   : > { %v711_v12 = vsel %vm452_vm3, %v707_v9, -inf }
 0x334   : > { %v823_v10 = vpop.f32.mrb[12].mxu1 }
 0x335   : > { %v830_v13 = vmul.f32 0.17677669, %v823_v10  ;;  %712 = vmax.xlane.f32.xlu0 %v711_v12  ;;  %v1154_v14 = vpop.f32.mrb[13].mxu1 }
 0x336   : > { %v826_v15 = vpop.f32.mrb[14].mxu1 }
 0x337   : > { %v831_v16 = vmul.f32 0.17677669, %v826_v15  ;;  %v832_v17 = vsel %vm389_vm2, %v830_v13, -1e+30  ;;  %v1155_v18 = vpop.f32.mrb[15].mxu1 }
 0x338   : > { %v834_v19 = vsel %vm452_vm3, %v832_v17, -inf }
 0x339   : > { %835 = vmax.xlane.f32.xlu0 %v834_v19  ;;  %v833_v20 = vsel %vm389_vm2, %v831_v16, -1e+30 }
 0x33a   : > { %v837_v21 = vsel %vm452_vm3, %v833_v20, -inf }
 0x33b   : > { %838 = vmax.xlane.f32.xlu1 %v837_v21 }
 0x3b6   : > { %v584_v22 = vpop.xlane.xlu0 %583 }
 0x3b7   : > { %v588_v23 = vsub.f32 %v580_v60, %v584_v22 }
 0x3b8   : > { %v587_v24 = vpop.xlane.xlu1 %586 }
 0x3b9   : > { %v590_v25 = vmul.f32 1.442695, %v588_v23  ;;  %v589_v26 = vsub.f32 %v581_v62, %v587_v24 }
 0x3bb   : > { %1219 = vpow2.f32 %v590_v25  ;;  %v592_v27 = vmul.f32 1.442695, %v589_v26 }
 0x3bd   : > { %1221 = vpow2.f32 %v592_v27 }
 0x3be   : > { %v710_v28 = vpop.xlane.xlu0 %709 }
 0x3bf   : > { %v714_v29 = vsub.f32 %v706_v7, %v710_v28 }
 0x3c1   : > { %v716_v30 = vmul.f32 1.442695, %v714_v29 }
 0x3c2   : > { %v713_v31 = vpop.xlane.xlu0 %712 }
 0x3c3   : > { %1223 = vpow2.f32 %v716_v30  ;;  %v715_v33 = vsub.f32 %v707_v9, %v713_v31 }
 0x3c5   : > { %v1220_v34 = vpop.eup %1219  ;;  %v718_v11 = vmul.f32 1.442695, %v715_v33 }
 0x3c6   : > { %v836_v35 = vpop.xlane.xlu0 %835  ;;  %v594_v36 = vsel %vm452_vm3, %v1220_v34, 0.0 }
 0x3c7   : > { %v1222_v37 = vpop.eup %1221  ;;  %1225 = vpow2.f32 %v718_v11  ;;  %v840_v38 = vsub.f32 %v832_v17, %v836_v35  ;;  %595 = vadd.xlane.f32.xlu0 %v594_v36 }
 0x3c8   : > { %v597_v39 = vsel %vm452_vm3, %v1222_v37, 0.0  ;;  %v839_v47 = vpop.xlane.xlu1 %838 }
 0x3c9   : > { %v842_v40 = vmul.f32 1.442695, %v840_v38  ;;  %598 = vadd.xlane.f32.xlu1 %v597_v39  ;;  %v841_v48 = vsub.f32 %v833_v20, %v839_v47 }
 0x3cb   : > { %1227 = vpow2.f32 %v842_v40  ;;  %v844_v50 = vmul.f32 1.442695, %v841_v48 }
 0x3cd   : > { %v1224_v41 = vpop.eup %1223  ;;  %1229 = vpow2.f32 %v844_v50 }
 0x3ce   : > { %v720_v42 = vsel %vm452_vm3, %v1224_v41, 0.0 }
 0x3cf   : > { %721 = vadd.xlane.f32.xlu0 %v720_v42 }
 0x3d1   : > { %v1226_v43 = vpop.eup %1225 }
 0x3d2   : > { %v723_v44 = vsel %vm452_vm3, %v1226_v43, 0.0 }
 0x3d3   : > { %724 = vadd.xlane.f32.xlu1 %v723_v44 }
 0x3d5   : > { %v1228_v45 = vpop.eup %1227 }
 0x3d6   : > { %v846_v46 = vsel %vm452_vm3, %v1228_v45, 0.0 }
 0x3d7   : > { %847 = vadd.xlane.f32.xlu0 %v846_v46  ;;  %v1230_v53 = vpop.eup %1229 }
 0x3d8   : > { %v849_v54 = vsel %vm452_vm3, %v1230_v53, 0.0 }
 0x3e4   : > { %731 = vrot.lane.b32.xlu1 %v1403_v32, %s1287_s29 }
 0x3ed   : > { %605 = vrot.lane.b32.xlu0 %v1403_v32, %s1285_s26 }
 0x408   : > { %850 = vadd.xlane.f32.xlu1 %v849_v54 }
 0x419   : > { %857 = vrot.lane.b32.xlu1 %v1403_v32, %s1286_s27 }
 0x454   : > { %v596_v56 = vpop.xlane.xlu0 %595 }
 0x456   : > { %v599_v55 = vpop.xlane.xlu1 %598 }
 0x457   : > { %1231 = vrcp.f32 %v599_v55 }
 0x458   : > { %1233 = vrcp.f32 %v596_v56 }
 0x45c   : > { %v722_v57 = vpop.xlane.xlu0 %721 }
 0x460   : > { %v725_v58 = vpop.xlane.xlu1 %724 }
 0x461   : > { %1235 = vrcp.f32 %v725_v58  ;;  %v1232_v59 = vpop.eup %1231 }
 0x462   : > { %1237 = vrcp.f32 %v722_v57  ;;  %v1234_v61 = vpop.eup %1233  ;;  %v603_v62 = vmul.f32 %v1232_v59, %v1222_v37 }
 0x463   : > { %v601_v63 = vmul.f32 %v1234_v61, %v1220_v34 }
 0x464   : > { %v848_v60 = vpop.xlane.xlu0 %847  ;;  %v732_v32 = vpop.permute.xlu1 %731 }
 0x465   : > { %v604_v1 = vpack.c.bf16 %v603_v62, %v601_v63  ;;  %1239 = vrcp.f32 %v848_v60 }
 0x468   : > { %v606_v0 = vpop.permute.xlu0 %605 }
 0x469   : > { %1133 = vmatpush3.bf16.msra.mxu0 %v606_v0 }
 0x46a   : > { %1144 = vmatprep.subr.bf16.mxu0 %v1283_v6 }
 0x46b   : > { %v1236_v2 = vpop.eup %1235 }
 0x46c   : > { %1135 = vmatmul.mubr.msk.bf16.vlgmr.msra.gmra.mrb[4].mxu0 %vm452_vm3, %v604_v1  ;;  %v1238_v3 = vpop.eup %1237  ;;  %v729_v4 = vmul.f32 %v1236_v2, %v1226_v43 }
 0x46d   : > { %1145 = vmatpush3.bf16.msra.mxu0 %v732_v32  ;;  %1146 = vmatprep.mubr.msk.bf16.mxu0 %vm1284_vm0, %v1283_v6  ;;  %v727_v5 = vmul.f32 %v1238_v3, %v1224_v41 }
 0x46e   : > { %1156 = vmatprep.subr.bf16.mxu0 %v1283_v6 }
 0x46f   : > { %v730_v7 = vpack.c.bf16 %v729_v4, %v727_v5  ;;  %v1240_v10 = vpop.eup %1239 }
 0x470   : > { %v853_v13 = vmul.f32 %v1240_v10, %v1228_v45 }
 0x474   : > { %1147 = vmatmul.mubr.msk.bf16.vlgmr.msra.gmra.mrb[8].mxu0 %vm452_vm3, %v730_v7 }
 0x475   : > { %1158 = vmatprep.mubr.msk.bf16.mxu0 %vm1284_vm0, %v1283_v6 }
 0x495   : > { %v851_v8 = vpop.xlane.xlu1 %850 }
 0x496   : > { %1241 = vrcp.f32 %v851_v8 }
 0x499   : > { %v858_v9 = vpop.permute.xlu1 %857 }
 0x49a   : > { %1157 = vmatpush3.bf16.msra.mxu0 %v858_v9 }
 0x4a0   : > { %v1242_v12 = vpop.eup %1241 }
 0x4a1   : > { %v855_v14 = vmul.f32 %v1242_v12, %v1230_v53 }
 0x4a3   : > { %v856_v15 = vpack.c.bf16 %v855_v14, %v853_v13 }
 0x4a5   : > { %1159 = vmatmul.mubr.msk.bf16.vlgmr.msra.gmra.mrb[12].mxu0 %vm452_vm3, %v856_v15 }
 0x53f   : > { %v645_v16 = vpop.f32.mrb[4].mxu0 }
 0x540   : > { %v1136_v17 = vpop.f32.mrb[5].mxu0 }
 0x541   : > { %v648_v18 = vpop.f32.mrb[6].mxu0 }
 0x542   : > { %v652_v19 = vpack.c.bf16 %v648_v18, %v645_v16  ;;  %v1137_v20 = vpop.f32.mrb[7].mxu0 }
 0x544   : > { %906 = vrot.lane.b32.xlu1 %v652_v19, %s1286_s27 }
 0x547   : > { %v771_v6 = vpop.f32.mrb[8].mxu0 }
 0x548   : > { %v1148_v21 = vpop.f32.mrb[9].mxu0 }
 0x549   : > { %v774_v22 = vpop.f32.mrb[10].mxu0 }
 0x54a   : > { %v778_v23 = vpack.c.bf16 %v774_v22, %v771_v6  ;;  %v1149_v24 = vpop.f32.mrb[11].mxu0 }
 0x54c   : > { %909 = vrot.lane.b32.xlu0 %v778_v23, %s1287_s29 }
 0x578   : > { %v897_v25 = vpop.f32.mrb[12].mxu0 }
 0x579   : > { %v1160_v26 = vpop.f32.mrb[13].mxu0 }
 0x57a   : > { %v900_v27 = vpop.f32.mrb[14].mxu0 }
 0x57b   : > { %v904_v28 = vpack.c.bf16 %v900_v27, %v897_v25  ;;  %v1161_v29 = vpop.f32.mrb[15].mxu0 }
 0x57d   : > { %912 = vrot.lane.b32.xlu1 %v904_v28, %s1285_s26 }
 0x5b6   : > { %v907_v30 = vpop.permute.xlu1 %906 }
 0x5b7   : > { %v916_v33 = vsel %vm400_vm1, %v526_v52, %v907_v30 }
 0x5be   : > { %v910_v31 = vpop.permute.xlu0 %909 }
 0x5bf   : > { %v919_v34 = vsel %vm917_vm4, %v916_v33, %v910_v31 }
 0x5ef   : > { %v913_v11 = vpop.permute.xlu1 %912 }
 0x5f0   : > { %v922_v35 = vsel %vm920_vm5, %v919_v34, %v913_v11 }
 0x5f1   : > { %v1093_v36 = vcombine.low %v922_v35, %v922_v35  ;;  %v1094_v37 = vcombine.high %v922_v35, %v922_v35 }
 0x5f3   : > { %930 = vst [vmem:[%s378_s6] sm:$0xf] %v1093_v36  ;;  %931 = vst [vmem:[%s378_s6 + $0x4] sm:$0xf] %v1094_v37 }
 0x5f4 PF: > { %s13_s16 = sadd.s32 1, %s1281_s16   ;;  %s1503_s12 = smov %s1269_s13 }
 0x5f5   : > { %p10_p10 = scmp.ge.s32.totalorder %s13_s16, 4   ;;  %s1504_s13 = smov %s1347_s21 }
 0x5f6   : > { %s1505_s14 = smov %s1277_s15  ;;  %s1506_s15 = smov %s1508_s17 }
 0x5f7   :  { %12 = sbr.rel (!%p10_p10) target bundleno = 3 (0x3), region = 206 }

// kernel: dinov2_classification_forward.28
= control target key start
LH: loop header
LB: loop body
LE: loop exit
PB: predicated region body
PF: predicated region fallthrough
CT: control target
= control target key end

     0   :  { %s1086_s18 = smov 0   ;;  %s1088_s19 = smov 0   ;;  %s1291_s0 = inlined_call_operand.vmem [shape: f32[32,128], index: 0, kind: input, shape index: {}]   ;;  %s1292_s1 = inlined_call_operand.vmem [shape: f32[1,128], index: 1, kind: input, shape index: {}]   ;;  %s1293_s2 = inlined_call_operand.vmem [shape: f32[1,128], index: 2, kind: input, shape index: {}]   ;;  %s1294_s3 = inlined_call_operand.vmem [shape: bf16[128,512], index: 3, kind: input, shape index: {}]   ;;  %s1295_s4 = inlined_call_operand.vmem [shape: f32[1,512], index: 4, kind: input, shape index: {}]   ;;  %s1296_s5 = inlined_call_operand.vmem [shape: bf16[32,512], index: 5, kind: output, shape index: {}]  }
   0x1   :  { %s1090_s20 = smov 0   ;;  %s1092_s21 = smov 0  }
   0x2   :  { %s1094_s22 = smov 0  }
   0x3 LB: > { %s24_s23 = sadd.s32 1, %s1049_s21  ;;  %s864_s24 = sadd.s32 4294967295, %s1053_s22   ;;  %s1053_s22 = sphi %s1094_s22, %s15_s22   ;;  %s1049_s21 = sphi %s1092_s21, %s1301_s21   ;;  %s1045_s20 = sphi %s1090_s20, %s1300_s20   ;;  %s1041_s19 = sphi %s1088_s19, %s1299_s19   ;;  %s1037_s18 = sphi %s1086_s18, %s1298_s18  }
   0x4   : > { %p25_p0 = scmp.ge.s32.totalorder %s24_s23, 2  ;;  %p109_p1 = scmp.ne.s32.totalorder %s1041_s19, %s1037_s18 }
   0x5   : > { %p110_p2 = scmp.eq.s32.totalorder %s1053_s22, 0  ;;  %p167_p4 = scmp.eq.s32.totalorder %s864_s24, 1 }
   0x6   : > { %s1303_s23 = smov (%p25_p0, %s24_s23), 0  ;;  %s102_s26 = sadd.s32 1, %s1041_s19 }
   0x7   : > { %p111_p3 = por %p110_p2, %p109_p1  ;;  %s99_s25 = ssub.s32 %s1049_s21, %s1303_s23 }
   0x8   : > { %p100_p5 = scmp.eq.s32.totalorder %s99_s25, 0  ;;  %p1121_p6 = por %p167_p4, %p109_p1 }
   0x9   : > { %p868_p7 = scmp.ge.s32.totalorder %s1053_s22, 2 }
   0xa   : > { %s1126_s28 = scalar_select %p100_p5, %s1041_s19, %s102_s26  }
   0xb   : > { %204 = sbr.rel (%p868_p7) target bundleno = 30 (0x1e), region = 28 }
  0x12   : > { %207 = sbr.rel (!%p111_p3) target bundleno = 30 (0x1e), region = 32  ;;  %s209_s29 = sand.u32 (%p111_p3), 1, %s1041_s19  }
  0x13   : > { %s904_s30 = sshll.u32 (%p111_p3), %s1049_s21, 3  ;;  %s869_s6 = sshll.u32 (%p111_p3), %s209_s29, 7 }
  0x14   : > { %s1134_s9 = scalar_lea.vmem (%p111_p3), %s1294_s3, %s904_s30  ;;  %s211_s10 = scalar_lea.vmem (%p111_p3), [#allocation3], %s869_s6 }
  0x15   : > { %v272_v0 = vld [vmem:[%s1134_s9] sm:$0xff] (%p111_p3)  ;;  %v274_v1 = vld [vmem:[%s1134_s9 + $0x10] sm:$0xff] (%p111_p3) }
  0x16   : > { %v276_v2 = vld [vmem:[%s1134_s9 + $0x20] sm:$0xff] (%p111_p3)  ;;  %273 = vst [vmem:[%s211_s10] sm:$0xff] (%p111_p3), %v272_v0  ;;  %275 = vst [vmem:[%s211_s10 + $0x8] sm:$0xff] (%p111_p3), %v274_v1  ;;  %v278_v3 = vld [vmem:[%s1134_s9 + $0x30] sm:$0xff] (%p111_p3) }
  0x17   : > { %277 = vst [vmem:[%s211_s10 + $0x10] sm:$0xff] (%p111_p3), %v276_v2  ;;  %v280_v4 = vld [vmem:[%s1134_s9 + $0x40] sm:$0xff] (%p111_p3)  ;;  %v282_v5 = vld [vmem:[%s1134_s9 + $0x50] sm:$0xff] (%p111_p3)  ;;  %279 = vst [vmem:[%s211_s10 + $0x18] sm:$0xff] (%p111_p3), %v278_v3 }
  0x18   : > { %281 = vst [vmem:[%s211_s10 + $0x20] sm:$0xff] (%p111_p3), %v280_v4  ;;  %283 = vst [vmem:[%s211_s10 + $0x28] sm:$0xff] (%p111_p3), %v282_v5  ;;  %v284_v6 = vld [vmem:[%s1134_s9 + $0x60] sm:$0xff] (%p111_p3)  ;;  %v286_v7 = vld [vmem:[%s1134_s9 + $0x70] sm:$0xff] (%p111_p3) }
  0x19   : > { %v288_v8 = vld [vmem:[%s1134_s9 + $0x80] sm:$0xff]  ;;  %285 = vst [vmem:[%s211_s10 + $0x30] sm:$0xff] %v284_v6  ;;  %287 = vst [vmem:[%s211_s10 + $0x38] sm:$0xff] %v286_v7  ;;  %v290_v9 = vld [vmem:[%s1134_s9 + $0x90] sm:$0xff] }
  0x1a   : > { %289 = vst [vmem:[%s211_s10 + $0x40] sm:$0xff] %v288_v8  ;;  %v292_v10 = vld [vmem:[%s1134_s9 + $0xa0] sm:$0xff]  ;;  %v294_v11 = vld [vmem:[%s1134_s9 + $0xb0] sm:$0xff]  ;;  %291 = vst [vmem:[%s211_s10 + $0x48] sm:$0xff] %v290_v9 }
  0x1b   : > { %293 = vst [vmem:[%s211_s10 + $0x50] sm:$0xff] %v292_v10  ;;  %295 = vst [vmem:[%s211_s10 + $0x58] sm:$0xff] %v294_v11  ;;  %v296_v12 = vld [vmem:[%s1134_s9 + $0xc0] sm:$0xff]  ;;  %v298_v13 = vld [vmem:[%s1134_s9 + $0xd0] sm:$0xff] }
  0x1c   : > { %v300_v14 = vld [vmem:[%s1134_s9 + $0xe0] sm:$0xff]  ;;  %297 = vst [vmem:[%s211_s10 + $0x60] sm:$0xff] %v296_v12  ;;  %299 = vst [vmem:[%s211_s10 + $0x68] sm:$0xff] %v298_v13  ;;  %v302_v15 = vld [vmem:[%s1134_s9 + $0xf0] sm:$0xff] }
  0x1d   : > { %301 = vst [vmem:[%s211_s10 + $0x70] sm:$0xff] %v300_v14  ;;  %303 = vst [vmem:[%s211_s10 + $0x78] sm:$0xff] %v302_v15 }
  0x1e PF: > { %p872_p8 = scmp.ge.s32.totalorder %s1053_s22, 1  ;;  %p316_p9 = scmp.lt.s32.totalorder %s1053_s22, 3 }
  0x20   : > { %p317_p10 = pnand %p872_p8, %p316_p9 }
  0x21   : > { %s323_s11 = sand.u32 (!%p317_p10), 1, %s1037_s18   ;;  %s875_s12 = sshll.u32 (!%p317_p10), %s1045_s20, 1 }
  0x22   : > { %320 = sbr.rel (%p317_p10) target bundleno = 658 (0x292), region = 74  ;;  %s873_s13 = sshll.u32 (!%p317_p10), %s323_s11, 7 }
  0x23   : > { %s874_s14 = sshll.u32 (!%p317_p10), %s323_s11, 5  ;;  %p366_p11 = scmp.lt.s32.totalorder (!%p317_p10), %s875_s12, 3 }
  0x24   : > { %s1162_s24 = scalar_lea.vmem (!%p317_p10), [#allocation3], %s873_s13  ;;  %s1164_s25 = scalar_lea.vmem (!%p317_p10), [#allocation4], %s874_s14 }
  0x25   : > { %p876_p12 = scmp.ne.s32.totalorder (!%p317_p10), %s1045_s20, 0 }
  0x29   : > { %s1305_s12 = smov (!%p366_p11, %s875_s12), 3  ;;  %376 = sbr.rel (%p876_p12) target bundleno = 365 (0x16d), region = 82 }
  0x2a   : > { %s368_s17 = scalar_lea.vmem %s1295_s4, %s1305_s12  ;;  %v377_v16 = vld [vmem:[%s1291_s0] sm:$0xff] (!%p876_p12)  ;;  %v379_v17 = vld [vmem:[%s1291_s0 + $0x10] sm:$0xff] (!%p876_p12)  ;;  %v378_v18 = vld [vmem:[%s1291_s0 + $0x8] sm:$0xff] (!%p876_p12) }
  0x2b   : > { %381 = vadd.xlane.f32.xlu0 (!%p876_p12), %v377_v16  ;;  %385 = vadd.xlane.f32.xlu1 (!%p876_p12), %v379_v17  ;;  %v380_v19 = vld [vmem:[%s1291_s0 + $0x18] sm:$0xff] (!%p876_p12)  ;;  %v877_v50 = vld [vmem:[%s1292_s1] ss:$0 sm:$0xff] (!%p876_p12) }
  0x2c   : > { %v878_v55 = vld [vmem:[%s1293_s2] ss:$0 sm:$0xff] (!%p876_p12) }
  0x2f   : > { %383 = vadd.xlane.f32.xlu0 (!%p876_p12), %v378_v18  ;;  %387 = vadd.xlane.f32.xlu1 (!%p876_p12), %v380_v19 }
  0xb8   : > { %v382_v20 = vpop.xlane.xlu0 %381  ;;  %v386_v21 = vpop.xlane.xlu1 %385 }
  0xb9   : > { %v390_v22 = vmul.f32 0.0078125, %v382_v20  ;;  %v392_v23 = vmul.f32 0.0078125, %v386_v21 }
  0xbb   : > { %v394_v24 = vsub.f32 %v377_v16, %v390_v22  ;;  %v396_v25 = vsub.f32 %v379_v17, %v392_v23 }
  0xbc   : > { %v384_v26 = vpop.xlane.xlu0 %383  ;;  %v388_v27 = vpop.xlane.xlu1 %387 }
  0xbd   : > { %v391_v28 = vmul.f32 0.0078125, %v384_v26  ;;  %v398_v29 = vmul.f32 %v394_v24, %v394_v24  ;;  %v393_v30 = vmul.f32 0.0078125, %v388_v27  ;;  %v400_v33 = vmul.f32 %v396_v25, %v396_v25 }
  0xbf   : > { %v395_v31 = vsub.f32 %v378_v18, %v391_v28  ;;  %402 = vadd.xlane.f32.xlu0 %v398_v29  ;;  %v397_v32 = vsub.f32 %v380_v19, %v393_v30 }
  0xc1   : > { %v399_v34 = vmul.f32 %v395_v31, %v395_v31  ;;  %v401_v35 = vmul.f32 %v397_v32, %v397_v32 }
  0xc3   : > { %406 = vadd.xlane.f32.xlu0 %v400_v33  ;;  %404 = vadd.xlane.f32.xlu1 %v399_v34 }
  0xc7   : > { %408 = vadd.xlane.f32.xlu1 %v401_v35 }
 0x14c   : > { %v403_v36 = vpop.xlane.xlu0 %402 }
 0x14d   : > { %v410_v37 = vmul.f32 0.0078125, %v403_v36 }
 0x14f   : > { %v414_v38 = vadd.f32 1e-06, %v410_v37 }
 0x150   : > { %v405_v39 = vpop.xlane.xlu1 %404  ;;  %v407_v40 = vpop.xlane.xlu0 %406 }
 0x151   : > { %967 = vrsqrt.f32 %v414_v38  ;;  %v411_v41 = vmul.f32 0.0078125, %v405_v39  ;;  %v412_v42 = vmul.f32 0.0078125, %v407_v40 }
 0x153   : > { %v415_v43 = vadd.f32 1e-06, %v411_v41  ;;  %v416_v44 = vadd.f32 1e-06, %v412_v42 }
 0x154   : > { %v409_v45 = vpop.xlane.xlu1 %408 }
 0x155   : > { %969 = vrsqrt.f32 %v415_v43  ;;  %v413_v46 = vmul.f32 0.0078125, %v409_v45 }
 0x156   : > { %971 = vrsqrt.f32 %v416_v44 }
 0x157   : > { %v417_v47 = vadd.f32 1e-06, %v413_v46 }
 0x159   : > { %973 = vrsqrt.f32 %v417_v47 }
 0x15b   : > { %v968_v48 = vpop.eup %967 }
 0x15c   : > { %v422_v49 = vmul.f32 %v968_v48, %v394_v24 }
 0x15e   : > { %v433_v53 = vmul.f32 %v877_v50, %v422_v49 }
 0x15f   : > { %v970_v51 = vpop.eup %969 }
 0x160   : > { %v972_v52 = vpop.eup %971  ;;  %v423_v54 = vmul.f32 %v970_v51, %v395_v31  ;;  %v444_v59 = vadd.f32 %v878_v55, %v433_v53 }
 0x161   : > { %v424_v56 = vmul.f32 %v972_v52, %v396_v25 }
 0x162   : > { %v434_v57 = vmul.f32 %v877_v50, %v423_v54 }
 0x163   : > { %v974_v58 = vpop.eup %973  ;;  %v435_v61 = vmul.f32 %v877_v50, %v424_v56 }
 0x164   : > { %v445_v60 = vadd.f32 %v878_v55, %v434_v57  ;;  %v425_v62 = vmul.f32 %v974_v58, %v397_v32 }
 0x165   : > { %v446_v1 = vadd.f32 %v878_v55, %v435_v61 }
 0x166   : > { %v448_v63 = vpack.c.bf16 %v445_v60, %v444_v59  ;;  %v436_v0 = vmul.f32 %v877_v50, %v425_v62 }
 0x168   : > { %450 = vst [vmem:[#allocation2] sm:$0xff] %v448_v63  ;;  %v447_v2 = vadd.f32 %v878_v55, %v436_v0 }
 0x16a   : > { %v449_v3 = vpack.c.bf16 %v447_v2, %v446_v1 }
 0x16c   : > { %451 = vst [vmem:[#allocation2 + $0x8] sm:$0xff] %v449_v3 }
 0x16d PF: > { %v975_v4 = vld [vmem:[%s1162_s24 + $0x4] ss:$8 sps:$4 sm:$0xff]   ;;  %v977_v5 = vld [vmem:[%s1162_s24] ss:$8 sps:$4 sm:$0xff]   ;;  %v1055_v6 = vmov 0   ;;  %v472_v23 = vlaneseq  ;;  %s909_s12 = sshll.u32 (%p1121_p6), %s1045_s20, 3 }
 0x16e   : > { %594 = vmatprep.mubr.bf16.mxu0 %v1055_v6  ;;  %604 = vmatprep.mubr.bf16.mxu1 %v1055_v6  ;;  %v978_v7 = vld [vmem:[%s1162_s24 + $0x14] ss:$8 sps:$4 sm:$0xff]   ;;  %v980_v8 = vld [vmem:[%s1162_s24 + $0x10] ss:$8 sps:$4 sm:$0xff]   ;;  %v981_v9 = vld [vmem:[%s1162_s24 + $0x24] ss:$8 sps:$4 sm:$0xff]   ;;  %s727_s26 = scalar_lea.vmem (%p1121_p6), %s1296_s5, %s909_s12 }
 0x16f   : > { %562 = vmatprep.subr.bf16.mxu0 %v975_v4  ;;  %910 = vmatprep.subr.bf16.mxu1 %v975_v4  ;;  %v983_v10 = vld [vmem:[%s1162_s24 + $0x20] ss:$8 sps:$4 sm:$0xff]   ;;  %v984_v11 = vld [vmem:[%s1162_s24 + $0x34] ss:$8 sps:$4 sm:$0xff]   ;;  %v986_v12 = vld [vmem:[%s1162_s24 + $0x30] ss:$8 sps:$4 sm:$0xff]  }
 0x170   : > { %563 = vmatpush1.bf16.msra.mxu0 %v977_v5  ;;  %918 = vmatpush1.bf16.msra.mxu1 %v977_v5  ;;  %v987_v13 = vld [vmem:[%s1162_s24 + $0x44] ss:$8 sps:$4 sm:$0xff]   ;;  %v989_v14 = vld [vmem:[%s1162_s24 + $0x40] ss:$8 sps:$4 sm:$0xff]   ;;  %v990_v15 = vld [vmem:[%s1162_s24 + $0x54] ss:$8 sps:$4 sm:$0xff]  }
 0x171   : > { %564 = vmatprep.subr.bf16.mxu0 %v978_v7  ;;  %911 = vmatprep.subr.bf16.mxu1 %v978_v7  ;;  %v992_v16 = vld [vmem:[%s1162_s24 + $0x50] ss:$8 sps:$4 sm:$0xff]   ;;  %v993_v17 = vld [vmem:[%s1162_s24 + $0x64] ss:$8 sps:$4 sm:$0xff]   ;;  %v995_v18 = vld [vmem:[%s1162_s24 + $0x60] ss:$8 sps:$4 sm:$0xff]  }
 0x172   : > { %v996_v19 = vld [vmem:[%s1162_s24 + $0x74] ss:$8 sps:$4 sm:$0xff]   ;;  %v998_v20 = vld [vmem:[%s1162_s24 + $0x70] ss:$8 sps:$4 sm:$0xff]   ;;  %v473_v24 = vshrl.u32 %v472_v23, 7 }
 0x173   : > { %v452_v21 = vld [vmem:[#allocation2] sm:$0xff]  ;;  %v453_v22 = vld [vmem:[#allocation2 + $0x8] sm:$0xff] }
 0x174   : > { %565 = vmatpush1.bf16.msra.mxu0 %v980_v8  ;;  %919 = vmatpush1.bf16.msra.mxu1 %v980_v8  ;;  %v474_v25 = vsub.s32 0, %v473_v24  ;;  %v470_v26 = vld [vmem:[%s368_s17] sm:$0x3]  ;;  %v478_v27 = vsub.s32 1, %v473_v24 }
 0x175   : > { %566 = vmatprep.subr.bf16.mxu0 %v981_v9  ;;  %912 = vmatprep.subr.bf16.mxu1 %v981_v9 }
 0x176   : > { %v475_v28 = vrot.slane %v470_v26, %v474_v25  ;;  %v479_v29 = vrot.slane %v470_v26, %v478_v27 }
 0x178   : > { %567 = vmatpush1.bf16.msra.mxu0 %v983_v10  ;;  %920 = vmatpush1.bf16.msra.mxu1 %v983_v10 }
 0x179   : > { %568 = vmatprep.subr.bf16.mxu0 %v984_v11  ;;  %913 = vmatprep.subr.bf16.mxu1 %v984_v11 }
 0x17c   : > { %569 = vmatpush1.bf16.msra.mxu0 %v986_v12  ;;  %921 = vmatpush1.bf16.msra.mxu1 %v986_v12 }
 0x17d   : > { %570 = vmatprep.subr.bf16.mxu0 %v987_v13  ;;  %914 = vmatprep.subr.bf16.mxu1 %v987_v13 }
 0x180   : > { %571 = vmatpush1.bf16.msra.mxu0 %v989_v14  ;;  %922 = vmatpush1.bf16.msra.mxu1 %v989_v14 }
 0x181   : > { %572 = vmatprep.subr.bf16.mxu0 %v990_v15  ;;  %915 = vmatprep.subr.bf16.mxu1 %v990_v15 }
 0x184   : > { %573 = vmatpush1.bf16.msra.mxu0 %v992_v16  ;;  %923 = vmatpush1.bf16.msra.mxu1 %v992_v16 }
 0x185   : > { %574 = vmatprep.subr.bf16.mxu0 %v993_v17  ;;  %916 = vmatprep.subr.bf16.mxu1 %v993_v17 }
 0x188   : > { %575 = vmatpush1.bf16.msra.mxu0 %v995_v18  ;;  %924 = vmatpush1.bf16.msra.mxu1 %v995_v18 }
 0x189   : > { %576 = vmatprep.subr.bf16.mxu0 %v996_v19  ;;  %917 = vmatprep.subr.bf16.mxu1 %v996_v19 }
 0x18c   : > { %577 = vmatpush1.bf16.msra.mxu0 %v998_v20  ;;  %925 = vmatpush1.bf16.msra.mxu1 %v998_v20 }
 0x18f   : > { %595 = vmatmul.mubr.bf16.vlgmr.msra.gmra.mrb[0].mxu0 %v452_v21  ;;  %605 = vmatmul.mubr.bf16.vlgmr.msra.gmra.mrb[0].mxu1 %v453_v22 }
 0x262   : > { %v596_v30 = vpop.f32.mrb[0].mxu0  ;;  %v606_v31 = vpop.f32.mrb[0].mxu1 }
 0x263   : > { %v1206_v32 = vadd.f32 %v596_v30, %v475_v28  ;;  %v1208_v33 = vadd.f32 %v606_v31, %v475_v28  ;;  %v598_v34 = vpop.f32.mrb[1].mxu0  ;;  %v608_v35 = vpop.f32.mrb[1].mxu1 }
 0x264   : > { %v1210_v36 = vadd.f32 %v598_v34, %v479_v29  ;;  %v1212_v37 = vadd.f32 %v608_v35, %v479_v29  ;;  %v600_v38 = vpop.f32.mrb[2].mxu0  ;;  %v610_v39 = vpop.f32.mrb[2].mxu1 }
 0x265   : > { %v615_v40 = vmul.f32 %v1206_v32, %v1206_v32  ;;  %v619_v41 = vmul.f32 %v1208_v33, %v1208_v33  ;;  %v1218_v42 = vadd.f32 %v600_v38, %v475_v28  ;;  %v1220_v43 = vadd.f32 %v610_v39, %v475_v28  ;;  %v602_v44 = vpop.f32.mrb[3].mxu0  ;;  %v612_v45 = vpop.f32.mrb[3].mxu1 }
 0x266   : > { %v616_v46 = vmul.f32 %v1210_v36, %v1210_v36  ;;  %v620_v47 = vmul.f32 %v1212_v37, %v1212_v37  ;;  %v1226_v48 = vadd.f32 %v602_v44, %v479_v29  ;;  %v1228_v49 = vadd.f32 %v612_v45, %v479_v29 }
 0x267   : > { %v623_v50 = vmul.f32 %v615_v40, %v1206_v32  ;;  %v627_v51 = vmul.f32 %v619_v41, %v1208_v33  ;;  %v617_v52 = vmul.f32 %v1218_v42, %v1218_v42  ;;  %v621_v53 = vmul.f32 %v1220_v43, %v1220_v43 }
 0x268   : > { %v624_v54 = vmul.f32 %v616_v46, %v1210_v36  ;;  %v628_v55 = vmul.f32 %v620_v47, %v1212_v37  ;;  %v618_v56 = vmul.f32 %v1226_v48, %v1226_v48  ;;  %v622_v57 = vmul.f32 %v1228_v49, %v1228_v49 }
 0x269   : > { %v631_v58 = vmul.f32 0.044715, %v623_v50  ;;  %v635_v59 = vmul.f32 0.044715, %v627_v51  ;;  %v625_v60 = vmul.f32 %v617_v52, %v1218_v42  ;;  %v629_v61 = vmul.f32 %v621_v53, %v1220_v43 }
 0x26a   : > { %v632_v62 = vmul.f32 0.044715, %v624_v54  ;;  %v636_v63 = vmul.f32 0.044715, %v628_v55  ;;  %v626_v0 = vmul.f32 %v618_v56, %v1226_v48  ;;  %v630_v1 = vmul.f32 %v622_v57, %v1228_v49 }
 0x26b   : > { %v639_v2 = vadd.f32 %v631_v58, %v1206_v32  ;;  %v643_v3 = vadd.f32 %v635_v59, %v1208_v33  ;;  %v633_v4 = vmul.f32 0.044715, %v625_v60  ;;  %v637_v5 = vmul.f32 0.044715, %v629_v61 }
 0x26c   : > { %v640_v6 = vadd.f32 %v632_v62, %v1210_v36  ;;  %v644_v7 = vadd.f32 %v636_v63, %v1212_v37  ;;  %v634_v8 = vmul.f32 0.044715, %v626_v0  ;;  %v638_v9 = vmul.f32 0.044715, %v630_v1 }
 0x26d   : > { %v647_v10 = vmul.f32 0.7978846, %v639_v2  ;;  %v651_v11 = vmul.f32 0.7978846, %v643_v3  ;;  %v641_v12 = vadd.f32 %v633_v4, %v1218_v42  ;;  %v645_v13 = vadd.f32 %v637_v5, %v1220_v43 }
 0x26e   : > { %v648_v14 = vmul.f32 0.7978846, %v640_v6  ;;  %v652_v15 = vmul.f32 0.7978846, %v644_v7  ;;  %v642_v16 = vadd.f32 %v634_v8, %v1226_v48  ;;  %v646_v17 = vadd.f32 %v638_v9, %v1228_v49 }
 0x26f   : > { %999 = vtanh.f32 %v647_v10  ;;  %v649_v18 = vmul.f32 0.7978846, %v641_v12  ;;  %v653_v19 = vmul.f32 0.7978846, %v645_v13 }
 0x270   : > { %1001 = vtanh.f32 %v651_v11  ;;  %v650_v20 = vmul.f32 0.7978846, %v642_v16  ;;  %v654_v21 = vmul.f32 0.7978846, %v646_v17 }
 0x271   : > { %1003 = vtanh.f32 %v648_v14 }
 0x272   : > { %1005 = vtanh.f32 %v652_v15 }
 0x273   : > { %1007 = vtanh.f32 %v649_v18 }
 0x274   : > { %1009 = vtanh.f32 %v653_v19 }
 0x275   : > { %1011 = vtanh.f32 %v650_v20 }
 0x276   : > { %1013 = vtanh.f32 %v654_v21 }
 0x279   : > { %v1000_v22 = vpop.eup %999 }
 0x27a   : > { %v1002_v23 = vpop.eup %1001  ;;  %v663_v24 = vadd.f32 1.0, %v1000_v22 }
 0x27b   : > { %v1004_v25 = vpop.eup %1003  ;;  %v667_v26 = vadd.f32 1.0, %v1002_v23 }
 0x27c   : > { %v1006_v27 = vpop.eup %1005  ;;  %v671_v28 = vmul.f32 0.5, %v663_v24  ;;  %v664_v29 = vadd.f32 1.0, %v1004_v25 }
 0x27d   : > { %v1008_v30 = vpop.eup %1007  ;;  %v675_v31 = vmul.f32 0.5, %v667_v26  ;;  %v668_v34 = vadd.f32 1.0, %v1006_v27 }
 0x27e   : > { %v1010_v35 = vpop.eup %1009  ;;  %v679_v38 = vmul.f32 %v671_v28, %v1206_v32  ;;  %v672_v39 = vmul.f32 0.5, %v664_v29  ;;  %v665_v40 = vadd.f32 1.0, %v1008_v30 }
 0x27f   : > { %v1012_v41 = vpop.eup %1011  ;;  %v683_v44 = vmul.f32 %v675_v31, %v1208_v33  ;;  %v676_v45 = vmul.f32 0.5, %v668_v34  ;;  %v669_v46 = vadd.f32 1.0, %v1010_v35 }
 0x280   : > { %v1014_v47 = vpop.eup %1013  ;;  %v680_v50 = vmul.f32 %v672_v39, %v1210_v36  ;;  %v673_v51 = vmul.f32 0.5, %v665_v40  ;;  %v666_v52 = vadd.f32 1.0, %v1012_v41 }
 0x281   : > { %v684_v53 = vmul.f32 %v676_v45, %v1212_v37  ;;  %v677_v54 = vmul.f32 0.5, %v669_v46  ;;  %v670_v32 = vadd.f32 1.0, %v1014_v47 }
 0x282   : > { %v905_v55 = vpack.c.bf16 %v680_v50, %v679_v38  ;;  %v681_v56 = vmul.f32 %v673_v51, %v1218_v42  ;;  %v674_v57 = vmul.f32 0.5, %v666_v52 }
 0x283   : > { %v907_v33 = vpack.c.bf16 %v684_v53, %v683_v44  ;;  %v685_v58 = vmul.f32 %v677_v54, %v1220_v43  ;;  %v678_v59 = vmul.f32 0.5, %v670_v32  ;;  %721 = sbr.rel (!%p1121_p6) target bundleno = 658 (0x292), region = 86 }
 0x284   : > { %711 = vst [vmem:[%s1164_s25] sm:$0xff] %v905_v55  ;;  %v682_v60 = vmul.f32 %v674_v57, %v1226_v48 }
 0x285   : > { %713 = vst [vmem:[%s1164_s25 + $0x10] sm:$0xff] %v907_v33  ;;  %v686_v36 = vmul.f32 %v678_v59, %v1228_v49 }
 0x286   : > { %v906_v61 = vpack.c.bf16 %v682_v60, %v681_v56 }
 0x287   : > { %v908_v62 = vpack.c.bf16 %v686_v36, %v685_v58 }
 0x288   : > { %712 = vst [vmem:[%s1164_s25 + $0x8] sm:$0xff] %v906_v61 }
 0x289   : > { %714 = vst [vmem:[%s1164_s25 + $0x18] sm:$0xff] %v908_v62 }
 0x28b   : > { %v761_v37 = vld [vmem:[%s1164_s25] sm:$0xff] }
 0x28c   : > { %v765_v43 = vld [vmem:[%s1164_s25 + $0x10] sm:$0xff]  ;;  %762 = vst [vmem:[%s727_s26] sm:$0xff] %v761_v37 }
 0x28d   : > { %766 = vst [vmem:[%s727_s26 + $0x20] sm:$0xff] %v765_v43 }
 0x28f   : > { %v763_v42 = vld [vmem:[%s1164_s25 + $0x8] sm:$0xff] }
 0x290   : > { %v767_v48 = vld [vmem:[%s1164_s25 + $0x18] sm:$0xff]  ;;  %764 = vst [vmem:[%s727_s26 + $0x10] sm:$0xff] %v763_v42 }
 0x291   : > { %768 = vst [vmem:[%s727_s26 + $0x30] sm:$0xff] %v767_v48 }
 0x292 PF: > { %s15_s22 = sadd.s32 1, %s1053_s22   ;;  %s1298_s18 = smov %s1041_s19 }
 0x293   : > { %p12_p13 = scmp.ge.s32.totalorder %s15_s22, 4   ;;  %s1299_s19 = smov %s1126_s28 }
 0x294   : > { %s1300_s20 = smov %s1049_s21  ;;  %s1301_s21 = smov %s1303_s23 }
 0x295   :  { %14 = sbr.rel (!%p12_p13) target bundleno = 3 (0x3), region = 161 }

// kernel: dinov2_classification_forward.46
= control target key start
LH: loop header
LB: loop body
LE: loop exit
PB: predicated region body
PF: predicated region fallthrough
CT: control target
= control target key end

     0   :  { %s153_s0 = inlined_call_operand.vmem [shape: f32[32,128], index: 0, kind: input, shape index: {}]   ;;  %s154_s1 = inlined_call_operand.vmem [shape: f32[1,128], index: 1, kind: input, shape index: {}]   ;;  %s155_s2 = inlined_call_operand.vmem [shape: f32[1,128], index: 2, kind: input, shape index: {}]   ;;  %s156_s3 = inlined_call_operand.vmem [shape: f32[32,128], index: 3, kind: output, shape index: {}]  }
   0x1   :  { %v14_v0 = vld [vmem:[%s153_s0] sm:$0xff]  ;;  %v16_v1 = vld [vmem:[%s153_s0 + $0x10] sm:$0xff]  ;;  %v15_v2 = vld [vmem:[%s153_s0 + $0x8] sm:$0xff] }
   0x2   :  { %18 = vadd.xlane.f32.xlu0 %v14_v0  ;;  %22 = vadd.xlane.f32.xlu1 %v16_v1  ;;  %v17_v3 = vld [vmem:[%s153_s0 + $0x18] sm:$0xff]  ;;  %v93_v33 = vld [vmem:[%s154_s1] ss:$0 sm:$0xff] }
   0x3   :  { %v94_v35 = vld [vmem:[%s155_s2] ss:$0 sm:$0xff] }
   0x6   :  { %20 = vadd.xlane.f32.xlu0 %v15_v2  ;;  %24 = vadd.xlane.f32.xlu1 %v17_v3 }
  0x8f   :  { %v19_v4 = vpop.xlane.xlu0 %18  ;;  %v23_v5 = vpop.xlane.xlu1 %22 }
  0x90   :  { %v27_v6 = vmul.f32 0.0078125, %v19_v4  ;;  %v29_v7 = vmul.f32 0.0078125, %v23_v5 }
  0x92   :  { %v31_v8 = vsub.f32 %v14_v0, %v27_v6  ;;  %v33_v9 = vsub.f32 %v16_v1, %v29_v7 }
  0x93   :  { %v21_v10 = vpop.xlane.xlu0 %20  ;;  %v25_v11 = vpop.xlane.xlu1 %24 }
  0x94   :  { %v28_v12 = vmul.f32 0.0078125, %v21_v10  ;;  %v35_v13 = vmul.f32 %v31_v8, %v31_v8  ;;  %v30_v14 = vmul.f32 0.0078125, %v25_v11  ;;  %v37_v17 = vmul.f32 %v33_v9, %v33_v9 }
  0x96   :  { %v32_v15 = vsub.f32 %v15_v2, %v28_v12  ;;  %39 = vadd.xlane.f32.xlu0 %v35_v13  ;;  %v34_v16 = vsub.f32 %v17_v3, %v30_v14 }
  0x98   :  { %v36_v18 = vmul.f32 %v32_v15, %v32_v15  ;;  %v38_v19 = vmul.f32 %v34_v16, %v34_v16 }
  0x9a   :  { %43 = vadd.xlane.f32.xlu0 %v37_v17  ;;  %41 = vadd.xlane.f32.xlu1 %v36_v18 }
  0x9e   :  { %45 = vadd.xlane.f32.xlu1 %v38_v19 }
 0x123   :  { %v40_v20 = vpop.xlane.xlu0 %39 }
 0x124   :  { %v47_v21 = vmul.f32 0.0078125, %v40_v20 }
 0x126   :  { %v51_v22 = vadd.f32 1e-06, %v47_v21 }
 0x127   :  { %v42_v23 = vpop.xlane.xlu1 %41  ;;  %v44_v24 = vpop.xlane.xlu0 %43 }
 0x128   :  { %95 = vrsqrt.f32 %v51_v22  ;;  %v48_v25 = vmul.f32 0.0078125, %v42_v23  ;;  %v49_v26 = vmul.f32 0.0078125, %v44_v24 }
 0x12a   :  { %v52_v27 = vadd.f32 1e-06, %v48_v25  ;;  %v53_v28 = vadd.f32 1e-06, %v49_v26 }
 0x12b   :  { %v46_v29 = vpop.xlane.xlu1 %45 }
 0x12c   :  { %97 = vrsqrt.f32 %v52_v27  ;;  %v50_v30 = vmul.f32 0.0078125, %v46_v29 }
 0x12d   :  { %99 = vrsqrt.f32 %v53_v28 }
 0x12e   :  { %v54_v31 = vadd.f32 1e-06, %v50_v30 }
 0x130   :  { %101 = vrsqrt.f32 %v54_v31 }
 0x132   :  { %v96_v32 = vpop.eup %95 }
 0x133   :  { %v59_v34 = vmul.f32 %v96_v32, %v31_v8 }
 0x135   :  { %v70_v36 = vmul.f32 %v93_v33, %v59_v34 }
 0x136   :  { %v98_v37 = vpop.eup %97 }
 0x137   :  { %v100_v38 = vpop.eup %99  ;;  %v81_v39 = vadd.f32 %v94_v35, %v70_v36  ;;  %v60_v40 = vmul.f32 %v98_v37, %v32_v15 }
 0x138   :  { %v61_v41 = vmul.f32 %v100_v38, %v33_v9 }
 0x139   :  { %85 = vst [vmem:[%s156_s3] sm:$0xff] %v81_v39  ;;  %v71_v42 = vmul.f32 %v93_v33, %v60_v40 }
 0x13a   :  { %v102_v43 = vpop.eup %101  ;;  %v72_v44 = vmul.f32 %v93_v33, %v61_v41 }
 0x13b   :  { %v82_v45 = vadd.f32 %v94_v35, %v71_v42  ;;  %v62_v46 = vmul.f32 %v102_v43, %v34_v16 }
 0x13c   :  { %v83_v47 = vadd.f32 %v94_v35, %v72_v44 }
 0x13d   :  { %86 = vst [vmem:[%s156_s3 + $0x8] sm:$0xff] %v82_v45  ;;  %v73_v48 = vmul.f32 %v93_v33, %v62_v46 }
 0x13e   :  { %87 = vst [vmem:[%s156_s3 + $0x10] sm:$0xff] %v83_v47 }
 0x13f   :  { %v84_v49 = vadd.f32 %v94_v35, %v73_v48 }
 0x141   :  { %88 = vst [vmem:[%s156_s3 + $0x18] sm:$0xff] %v84_v49 }

// kernel: dinov2_classification_forward.29
= control target key start
LH: loop header
LB: loop body
LE: loop exit
PB: predicated region body
PF: predicated region fallthrough
CT: control target
= control target key end

     0   :  { %s779_s1 = inlined_call_operand.vmem [shape: bf16[512,128], index: 1, kind: input, shape index: {}]   ;;  %s780_s0 = inlined_call_operand.vmem [shape: bf16[32,512], index: 0, kind: input, shape index: {}]   ;;  %s781_s2 = inlined_call_operand.vmem [shape: f32[1,128], index: 2, kind: input, shape index: {}]   ;;  %s782_s3 = inlined_call_operand.vmem [shape: f32[1,128], index: 3, kind: input, shape index: {}]   ;;  %s783_s4 = inlined_call_operand.vmem [shape: f32[32,128], index: 4, kind: input, shape index: {}]   ;;  %s784_s5 = inlined_call_operand.vmem [shape: f32[32,128], index: 5, kind: output, shape index: {}]  }
   0x1   :  { %v555_v0 = vld [vmem:[%s779_s1 + $0x40] sm:$0xff]   ;;  %v559_v4 = vld [vmem:[%s779_s1 + $0x48] sm:$0xff]   ;;  %v563_v8 = vld [vmem:[%s779_s1 + $0x50] sm:$0xff]  }
   0x2   :  { %v556_v1 = vld [vmem:[%s779_s1 + $0xc0] sm:$0xff]   ;;  %499 = vmatprep.subr.bf16.mxu0 %v555_v0  ;;  %v560_v5 = vld [vmem:[%s779_s1 + $0xc8] sm:$0xff]   ;;  %v564_v9 = vld [vmem:[%s779_s1 + $0xd0] sm:$0xff]  }
   0x3   :  { %v557_v2 = vld [vmem:[%s779_s1] sm:$0xff]   ;;  %527 = vmatprep.subr.bf16.mxu1 %v556_v1  ;;  %v561_v6 = vld [vmem:[%s779_s1 + $0x8] sm:$0xff]   ;;  %v565_v10 = vld [vmem:[%s779_s1 + $0x10] sm:$0xff]  }
   0x4   :  { %v558_v3 = vld [vmem:[%s779_s1 + $0x80] sm:$0xff]   ;;  %500 = vmatpush3.bf16.msra.mxu0 %v557_v2  ;;  %v562_v7 = vld [vmem:[%s779_s1 + $0x88] sm:$0xff]   ;;  %v566_v11 = vld [vmem:[%s779_s1 + $0x90] sm:$0xff]  }
   0x5   :  { %528 = vmatpush3.bf16.msra.mxu1 %v558_v3  ;;  %501 = vmatprep.subr.bf16.mxu0 %v559_v4  ;;  %v567_v12 = vld [vmem:[%s779_s1 + $0x58] sm:$0xff]   ;;  %v571_v16 = vld [vmem:[%s779_s1 + $0x60] sm:$0xff]   ;;  %v575_v20 = vld [vmem:[%s779_s1 + $0x68] sm:$0xff]  }
   0x6   :  { %529 = vmatprep.subr.bf16.mxu1 %v560_v5  ;;  %v568_v13 = vld [vmem:[%s779_s1 + $0xd8] sm:$0xff]   ;;  %v572_v17 = vld [vmem:[%s779_s1 + $0xe0] sm:$0xff]   ;;  %v576_v21 = vld [vmem:[%s779_s1 + $0xe8] sm:$0xff]  }
   0x7   :  { %v569_v14 = vld [vmem:[%s779_s1 + $0x18] sm:$0xff]   ;;  %v573_v18 = vld [vmem:[%s779_s1 + $0x20] sm:$0xff]   ;;  %v577_v22 = vld [vmem:[%s779_s1 + $0x28] sm:$0xff]  }
   0x8   :  { %502 = vmatpush3.bf16.msra.mxu0 %v561_v6  ;;  %v570_v15 = vld [vmem:[%s779_s1 + $0x98] sm:$0xff]   ;;  %v574_v19 = vld [vmem:[%s779_s1 + $0xa0] sm:$0xff]   ;;  %v578_v23 = vld [vmem:[%s779_s1 + $0xa8] sm:$0xff]  }
   0x9   :  { %530 = vmatpush3.bf16.msra.mxu1 %v562_v7  ;;  %503 = vmatprep.subr.bf16.mxu0 %v563_v8  ;;  %v579_v24 = vld [vmem:[%s779_s1 + $0x70] sm:$0xff]   ;;  %v583_v28 = vld [vmem:[%s779_s1 + $0x78] sm:$0xff]   ;;  %v457_v42 = vld [vmem:[%s781_s2] ss:$0 sm:$0xff] }
   0xa   :  { %531 = vmatprep.subr.bf16.mxu1 %v564_v9  ;;  %v580_v25 = vld [vmem:[%s779_s1 + $0xf0] sm:$0xff]   ;;  %v584_v29 = vld [vmem:[%s779_s1 + $0xf8] sm:$0xff]   ;;  %v498_v53 = vld [vmem:[%s782_s3] ss:$0 sm:$0xff] }
   0xb   :  { %v581_v26 = vld [vmem:[%s779_s1 + $0x30] sm:$0xff]   ;;  %v585_v30 = vld [vmem:[%s779_s1 + $0x38] sm:$0xff]   ;;  %v441_v57 = vld [vmem:[%s783_s4] sm:$0xff] }
   0xc   :  { %504 = vmatpush3.bf16.msra.mxu0 %v565_v10  ;;  %v582_v27 = vld [vmem:[%s779_s1 + $0xb0] sm:$0xff]   ;;  %v586_v31 = vld [vmem:[%s779_s1 + $0xb8] sm:$0xff]   ;;  %v442_v61 = vld [vmem:[%s783_s4 + $0x8] sm:$0xff] }
   0xd   :  { %532 = vmatpush3.bf16.msra.mxu1 %v566_v11  ;;  %505 = vmatprep.subr.bf16.mxu0 %v567_v12  ;;  %v587_v32 = vld [vmem:[%s780_s0] ss:$16 sps:$4 sm:$0xff]   ;;  %v589_v33 = vld [vmem:[%s780_s0 + $0x4] ss:$16 sps:$4 sm:$0xff]   ;;  %v590_v34 = vld [vmem:[%s780_s0 + $0x8] ss:$16 sps:$4 sm:$0xff]  }
   0xe   :  { %533 = vmatprep.subr.bf16.mxu1 %v568_v13  ;;  %v592_v35 = vld [vmem:[%s780_s0 + $0xc] ss:$16 sps:$4 sm:$0xff]   ;;  %364 = vmatprep.mubr.bf16.mxu0 %v589_v33  ;;  %v593_v36 = vld [vmem:[%s780_s0 + $0x24] ss:$16 sps:$4 sm:$0xff]   ;;  %v597_v38 = vld [vmem:[%s780_s0 + $0x20] ss:$16 sps:$4 sm:$0xff]  }
   0xf   :  { %413 = vmatprep.mubr.bf16.mxu1 %v592_v35  ;;  %v595_v37 = vld [vmem:[%s780_s0 + $0x2c] ss:$16 sps:$4 sm:$0xff]   ;;  %v598_v39 = vld [vmem:[%s780_s0 + $0x28] ss:$16 sps:$4 sm:$0xff]  }
  0x10   :  { %506 = vmatpush3.bf16.msra.mxu0 %v569_v14 }
  0x11   :  { %534 = vmatpush3.bf16.msra.mxu1 %v570_v15  ;;  %507 = vmatprep.subr.bf16.mxu0 %v571_v16  ;;  %v443_v15 = vld [vmem:[%s783_s4 + $0x10] sm:$0xff] }
  0x12   :  { %535 = vmatprep.subr.bf16.mxu1 %v572_v17 }
  0x14   :  { %508 = vmatpush3.bf16.msra.mxu0 %v573_v18  ;;  %v444_v18 = vld [vmem:[%s783_s4 + $0x18] sm:$0xff] }
  0x15   :  { %536 = vmatpush3.bf16.msra.mxu1 %v574_v19  ;;  %509 = vmatprep.subr.bf16.mxu0 %v575_v20 }
  0x16   :  { %537 = vmatprep.subr.bf16.mxu1 %v576_v21 }
  0x18   :  { %510 = vmatpush3.bf16.msra.mxu0 %v577_v22 }
  0x19   :  { %538 = vmatpush3.bf16.msra.mxu1 %v578_v23  ;;  %511 = vmatprep.subr.bf16.mxu0 %v579_v24 }
  0x1a   :  { %539 = vmatprep.subr.bf16.mxu1 %v580_v25 }
  0x1c   :  { %512 = vmatpush3.bf16.msra.mxu0 %v581_v26 }
  0x1d   :  { %540 = vmatpush3.bf16.msra.mxu1 %v582_v27  ;;  %513 = vmatprep.subr.bf16.mxu0 %v583_v28 }
  0x1e   :  { %541 = vmatprep.subr.bf16.mxu1 %v584_v29 }
  0x20   :  { %514 = vmatpush3.bf16.msra.mxu0 %v585_v30 }
  0x21   :  { %542 = vmatpush3.bf16.msra.mxu1 %v586_v31 }
  0x23   :  { %365 = vmatmul.mubr.bf16.vlgmr.msra.gmra.mrb[0].mxu0 %v587_v32 }
  0x24   :  { %414 = vmatmul.mubr.bf16.vlgmr.msra.gmra.mrb[0].mxu1 %v590_v34  ;;  %372 = vmatprep.mubr.bf16.mxu0 %v593_v36 }
  0x25   :  { %421 = vmatprep.mubr.bf16.mxu1 %v595_v37 }
  0x2b   :  { %373 = vmatmul.mubr.bf16.gmra.mrb[4].mxu0 %v597_v38 }
  0x2c   :  { %422 = vmatmul.mubr.bf16.gmra.mrb[4].mxu1 %v598_v39 }
  0xf6   :  { %v515_v40 = vpop.f32.mrb[0].mxu0 }
  0xf7   :  { %v543_v41 = vpop.f32.mrb[0].mxu1  ;;  %v516_v43 = vpop.f32.mrb[1].mxu0 }
  0xf8   :  { %v517_v44 = vadd.f32 %v516_v43, %v515_v40  ;;  %v544_v45 = vpop.f32.mrb[1].mxu1  ;;  %v518_v46 = vpop.f32.mrb[2].mxu0 }
  0xf9   :  { %v545_v47 = vadd.f32 %v544_v45, %v543_v41  ;;  %v546_v48 = vpop.f32.mrb[2].mxu1  ;;  %v519_v49 = vpop.f32.mrb[3].mxu0 }
  0xfa   :  { %v367_v50 = vadd.f32 %v517_v44, %v457_v42  ;;  %v520_v51 = vadd.f32 %v519_v49, %v518_v46  ;;  %v547_v52 = vpop.f32.mrb[3].mxu1 }
  0xfb   :  { %v548_v54 = vadd.f32 %v547_v52, %v546_v48 }
  0xfc   :  { %v416_v55 = vadd.f32 %v545_v47, %v367_v50  ;;  %v370_v56 = vadd.f32 %v520_v51, %v457_v42 }
  0xfe   :  { %v437_v58 = vmul.f32 %v498_v53, %v416_v55  ;;  %v419_v59 = vadd.f32 %v548_v54, %v370_v56  ;;  %v521_v60 = vpop.f32.mrb[4].mxu0 }
  0xff   :  { %v549_v62 = vpop.f32.mrb[4].mxu1  ;;  %v522_v63 = vpop.f32.mrb[5].mxu0 }
 0x100   :  { %v445_v0 = vadd.f32 %v441_v57, %v437_v58  ;;  %v438_v1 = vmul.f32 %v498_v53, %v419_v59  ;;  %v523_v2 = vadd.f32 %v522_v63, %v521_v60  ;;  %v550_v3 = vpop.f32.mrb[5].mxu1  ;;  %v524_v4 = vpop.f32.mrb[6].mxu0 }
 0x101   :  { %v551_v5 = vadd.f32 %v550_v3, %v549_v62  ;;  %v552_v6 = vpop.f32.mrb[6].mxu1  ;;  %v525_v7 = vpop.f32.mrb[7].mxu0 }
 0x102   :  { %449 = vst [vmem:[%s784_s5] sm:$0xff] %v445_v0  ;;  %v446_v8 = vadd.f32 %v442_v61, %v438_v1  ;;  %v375_v9 = vadd.f32 %v523_v2, %v457_v42  ;;  %v526_v10 = vadd.f32 %v525_v7, %v524_v4  ;;  %v553_v11 = vpop.f32.mrb[7].mxu1 }
 0x103   :  { %v554_v12 = vadd.f32 %v553_v11, %v552_v6 }
 0x104   :  { %450 = vst [vmem:[%s784_s5 + $0x8] sm:$0xff] %v446_v8  ;;  %v424_v13 = vadd.f32 %v551_v5, %v375_v9  ;;  %v378_v14 = vadd.f32 %v526_v10, %v457_v42 }
 0x106   :  { %v439_v16 = vmul.f32 %v498_v53, %v424_v13  ;;  %v427_v17 = vadd.f32 %v554_v12, %v378_v14 }
 0x108   :  { %v447_v19 = vadd.f32 %v443_v15, %v439_v16  ;;  %v440_v20 = vmul.f32 %v498_v53, %v427_v17 }
 0x10a   :  { %451 = vst [vmem:[%s784_s5 + $0x10] sm:$0xff] %v447_v19  ;;  %v448_v21 = vadd.f32 %v444_v18, %v440_v20 }
 0x10c   :  { %452 = vst [vmem:[%s784_s5 + $0x18] sm:$0xff] %v448_v21 }

// kernel: dinov2_classification_forward.45
= control target key start
LH: loop header
LB: loop body
LE: loop exit
PB: predicated region body
PF: predicated region fallthrough
CT: control target
= control target key end

     0   :  { %vm15_vm0 = vcmask 1045504   ;;  %s87_s0 = inlined_call_operand.vmem [shape: f32[6,128], index: 0, kind: input, shape index: {}]   ;;  %s88_s1 = inlined_call_operand.vmem [shape: f32[1,128], index: 1, kind: input, shape index: {}]   ;;  %s89_s2 = inlined_call_operand.vmem [shape: f32[1,128], index: 2, kind: input, shape index: {}]   ;;  %s90_s3 = inlined_call_operand.vmem [shape: f32[6,128], index: 3, kind: output, shape index: {}]  }
   0x1   :  { %v14_v0 = vld [vmem:[%s87_s0] sm:$0x3f] }
   0x2   :  { %v16_v1 = vsel %vm15_vm0, %v14_v0, 0.0  ;;  %v51_v11 = vld [vmem:[%s88_s1] ss:$0 sm:$0xff] }
   0x3   :  { %17 = vadd.xlane.f32.xlu0 %v16_v1  ;;  %v52_v13 = vld [vmem:[%s89_s2] ss:$0 sm:$0xff] }
  0x90   :  { %v18_v2 = vpop.xlane.xlu0 %17 }
  0x91   :  { %v20_v3 = vmul.f32 0.0078125, %v18_v2 }
  0x93   :  { %v21_v4 = vsub.f32 %v14_v0, %v20_v3 }
  0x95   :  { %v22_v5 = vmul.f32 %v21_v4, %v21_v4 }
  0x97   :  { %v23_v6 = vsel %vm15_vm0, %v22_v5, 0.0 }
  0x98   :  { %24 = vadd.xlane.f32.xlu0 %v23_v6 }
 0x125   :  { %v25_v7 = vpop.xlane.xlu0 %24 }
 0x126   :  { %v26_v8 = vmul.f32 0.0078125, %v25_v7 }
 0x128   :  { %v27_v9 = vadd.f32 1e-06, %v26_v8 }
 0x12a   :  { %53 = vrsqrt.f32 %v27_v9 }
 0x134   :  { %v54_v10 = vpop.eup %53 }
 0x135   :  { %v29_v12 = vmul.f32 %v54_v10, %v21_v4 }
 0x137   :  { %v37_v14 = vmul.f32 %v51_v11, %v29_v12 }
 0x139   :  { %v45_v15 = vadd.f32 %v52_v13, %v37_v14 }
 0x13b   :  { %46 = vst [vmem:[%s90_s3] sm:$0x3f] %v45_v15 }

// kernel: dinov2_classification_forward.47
= control target key start
LH: loop header
LB: loop body
LE: loop exit
PB: predicated region body
PF: predicated region fallthrough
CT: control target
= control target key end

     0   :  { %v24_v27 = vlaneseq  ;;  %v700_v35 = vmov 1983009808   ;;  %v701_v37 = vmov 0.0   ;;  %s865_s0 = inlined_call_operand.vmem [shape: f32[2,640], index: 0, kind: input, shape index: {}]   ;;  %s866_s1 = inlined_call_operand.vmem [shape: bf16[640,128], index: 1, kind: input, shape index: {}]   ;;  %s867_s2 = inlined_call_operand.vmem [shape: f32[1,128], index: 2, kind: input, shape index: {}]   ;;  %s868_s3 = inlined_call_operand.hbm [shape: f32[2,128], index: 3, kind: output, shape index: {}]  }
   0x1   :  { %v635_v0 = vld [vmem:[%s866_s1 + $0x40] sm:$0xff]   ;;  %v639_v4 = vld [vmem:[%s866_s1 + $0x48] sm:$0xff]   ;;  %v643_v8 = vld [vmem:[%s866_s1 + $0x50] sm:$0xff]   ;;  %v22_v36 = vunpack.c.l.s4 %v700_v35 }
   0x2   :  { %v636_v1 = vld [vmem:[%s866_s1] sm:$0xff]   ;;  %558 = vmatprep.subr.bf16.mxu0 %v635_v0  ;;  %v640_v5 = vld [vmem:[%s866_s1 + $0x8] sm:$0xff]   ;;  %v644_v9 = vld [vmem:[%s866_s1 + $0x10] sm:$0xff]   ;;  %v25_v32 = vshrl.u32 %v24_v27, 7 }
   0x3   :  { %v637_v2 = vld [vmem:[%s866_s1 + $0xc0] sm:$0xff]   ;;  %559 = vmatpush3.bf16.msra.mxu0 %v636_v1  ;;  %v641_v6 = vld [vmem:[%s866_s1 + $0xc8] sm:$0xff]   ;;  %v645_v10 = vld [vmem:[%s866_s1 + $0xd0] sm:$0xff]   ;;  %v23_v38 = vunpack.c.0.s8 %v22_v36 }
   0x4   :  { %v638_v3 = vld [vmem:[%s866_s1 + $0x80] sm:$0xff]   ;;  %580 = vmatprep.subr.bf16.mxu1 %v637_v2  ;;  %560 = vmatprep.subr.bf16.mxu0 %v639_v4  ;;  %v642_v7 = vld [vmem:[%s866_s1 + $0x88] sm:$0xff]   ;;  %v646_v11 = vld [vmem:[%s866_s1 + $0x90] sm:$0xff]  }
   0x5   :  { %581 = vmatpush3.bf16.msra.mxu1 %v638_v3  ;;  %v647_v12 = vld [vmem:[%s866_s1 + $0x58] sm:$0xff]   ;;  %v651_v16 = vld [vmem:[%s866_s1 + $0x60] sm:$0xff]   ;;  %v655_v20 = vld [vmem:[%s866_s1 + $0x68] sm:$0xff]   ;;  %v26_v40 = vsub.s32 %v23_v38, %v25_v32 }
   0x6   :  { %582 = vmatprep.subr.bf16.mxu1 %v641_v6  ;;  %v648_v13 = vld [vmem:[%s866_s1 + $0x18] sm:$0xff]   ;;  %v652_v17 = vld [vmem:[%s866_s1 + $0x20] sm:$0xff]   ;;  %v656_v21 = vld [vmem:[%s866_s1 + $0x28] sm:$0xff]  }
   0x7   :  { %561 = vmatpush3.bf16.msra.mxu0 %v640_v5  ;;  %v649_v14 = vld [vmem:[%s866_s1 + $0xd8] sm:$0xff]   ;;  %v653_v18 = vld [vmem:[%s866_s1 + $0xe0] sm:$0xff]   ;;  %v657_v22 = vld [vmem:[%s866_s1 + $0xe8] sm:$0xff]  }
   0x8   :  { %562 = vmatprep.subr.bf16.mxu0 %v643_v8  ;;  %v650_v15 = vld [vmem:[%s866_s1 + $0x98] sm:$0xff]   ;;  %v654_v19 = vld [vmem:[%s866_s1 + $0xa0] sm:$0xff]   ;;  %v658_v23 = vld [vmem:[%s866_s1 + $0xa8] sm:$0xff]  }
   0x9   :  { %583 = vmatpush3.bf16.msra.mxu1 %v642_v7  ;;  %v659_v24 = vld [vmem:[%s866_s1 + $0x70] sm:$0xff]   ;;  %v663_v29 = vld [vmem:[%s866_s1 + $0x78] sm:$0xff]   ;;  %v16_v33 = vld [vmem:[%s865_s0] sm:$0xff] }
   0xa   :  { %584 = vmatprep.subr.bf16.mxu1 %v645_v10  ;;  %v660_v25 = vld [vmem:[%s866_s1 + $0x30] sm:$0xff]   ;;  %v664_v30 = vld [vmem:[%s866_s1 + $0x38] sm:$0xff]   ;;  %v20_v39 = vcombine.high %v16_v33, %v16_v33  ;;  %v27_v41 = vrot.slane %v16_v33, %v26_v40 }
   0xb   :  { %563 = vmatpush3.bf16.msra.mxu0 %v644_v9  ;;  %v661_v26 = vld [vmem:[%s866_s1 + $0xf0] sm:$0xff]   ;;  %v665_v31 = vld [vmem:[%s866_s1 + $0xf8] sm:$0xff]  }
   0xc   :  { %564 = vmatprep.subr.bf16.mxu0 %v647_v12  ;;  %v662_v28 = vld [vmem:[%s866_s1 + $0xb0] sm:$0xff]   ;;  %v666_v34 = vld [vmem:[%s866_s1 + $0xb8] sm:$0xff]   ;;  %v34_v42 = vrot.slane %v20_v39, %v26_v40  ;;  %v35_v43 = vcombine.high %v27_v41, %v27_v41  ;;  %v49_v45 = vpack.c.bf16 %v27_v41, %v27_v41 }
   0xd   :  { %585 = vmatpush3.bf16.msra.mxu1 %v646_v11 }
   0xe   :  { %586 = vmatprep.subr.bf16.mxu1 %v649_v14  ;;  %v36_v44 = vcombine.high %v34_v42, %v34_v42  ;;  %v51_v46 = vpack.c.bf16 %v34_v42, %v34_v42 }
   0xf   :  { %565 = vmatpush3.bf16.msra.mxu0 %v648_v13 }
  0x10   :  { %566 = vmatprep.subr.bf16.mxu0 %v651_v16 }
  0x11   :  { %587 = vmatpush3.bf16.msra.mxu1 %v650_v15 }
  0x12   :  { %588 = vmatprep.subr.bf16.mxu1 %v653_v18 }
  0x13   :  { %567 = vmatpush3.bf16.msra.mxu0 %v652_v17 }
  0x14   :  { %568 = vmatprep.subr.bf16.mxu0 %v655_v20 }
  0x15   :  { %589 = vmatpush3.bf16.msra.mxu1 %v654_v19 }
  0x16   :  { %590 = vmatprep.subr.bf16.mxu1 %v657_v22 }
  0x17   :  { %569 = vmatpush3.bf16.msra.mxu0 %v656_v21 }
  0x18   :  { %570 = vmatprep.subr.bf16.mxu0 %v659_v24 }
  0x19   :  { %591 = vmatpush3.bf16.msra.mxu1 %v658_v23 }
  0x1a   :  { %592 = vmatprep.subr.bf16.mxu1 %v661_v26 }
  0x1b   :  { %571 = vmatpush3.bf16.msra.mxu0 %v660_v25 }
  0x1c   :  { %572 = vmatprep.subr.bf16.mxu0 %v663_v29 }
  0x1d   :  { %593 = vmatpush3.bf16.msra.mxu1 %v662_v28 }
  0x1e   :  { %594 = vmatprep.subr.bf16.mxu1 %v665_v31 }
  0x1f   :  { %573 = vmatpush3.bf16.msra.mxu0 %v664_v30 }
  0x20   :  { %611 = vmatprep.subr.bf16.mxu0 %v701_v37 }
  0x21   :  { %595 = vmatpush3.bf16.msra.mxu1 %v666_v34 }
  0x22   :  { %8 = vsyncpa [#allocation3], 0  ;;  %v50_v47 = vpack.c.bf16 %v35_v43, %v35_v43  ;;  %v52_v48 = vpack.c.bf16 %v36_v44, %v36_v44  ;;  %v668_v49 = vld [vmem:[%s866_s1 + $0x100] sm:$0xff]   ;;  %v669_v50 = vld [vmem:[%s866_s1 + $0x108] sm:$0xff]   ;;  %vm702_vm0 = vmmov 0  }
  0x23   :  { %v670_v51 = vld [vmem:[%s866_s1 + $0x110] sm:$0xff]   ;;  %v671_v52 = vld [vmem:[%s866_s1 + $0x118] sm:$0xff]   ;;  %v672_v53 = vld [vmem:[%s866_s1 + $0x120] sm:$0xff]  }
  0x24   :  { %413 = vmatprep.mubr.bf16.mxu0 %v50_v47  ;;  %453 = vmatprep.mubr.bf16.mxu1 %v52_v48  ;;  %v673_v54 = vld [vmem:[%s866_s1 + $0x128] sm:$0xff]   ;;  %v674_v55 = vld [vmem:[%s866_s1 + $0x130] sm:$0xff]   ;;  %v675_v56 = vld [vmem:[%s866_s1 + $0x138] sm:$0xff]  }
  0x25   :  { %414 = vmatmul.mubr.bf16.vlgmr.msra.gmra.mrb[0].mxu0 %v49_v45  ;;  %454 = vmatmul.mubr.bf16.vlgmr.msra.gmra.mrb[0].mxu1 %v51_v46  ;;  %v516_v57 = vld.sshfl [vmem:[%s865_s0 + $0x8] sm:$0x3 pattern:$0x76325410]  ;;  %v517_v61 = vld [vmem:[%s867_s2] ss:$0 sm:$0xff] }
  0x26   :  { %612 = vmatpush3.bf16.msra.mxu0 %v668_v49  ;;  %627 = vmatprep.mubr.msk.bf16.mxu0 %vm702_vm0, %v701_v37  ;;  %v53_v58 = vpack.c.bf16 %v516_v57, %v516_v57  ;;  %s703_s0 = smov [#allocation2]  }
  0x27   :  { %613 = vmatprep.subr.bf16.mxu0 %v701_v37  ;;  %s508_s1 = sshll.u32 %s703_s0, 4  ;;  %s509_s1 = int_to_ptr.vmem [resolvable:$true] %s508_s1 }
  0x28   :  { %s676_s2 = scalar_lea.vmem %s509_s1, 32  ;;  %p681_p1 = scmp.lt.s32.totalorder %s509_s1, %s509_s1 }
  0x29   :  { %p677_p0 = scmp.ne.s32.totalorder %s509_s1, %s676_s2  ;;  %p682_p2 = scmp.lt.s32.totalorder %s676_s2, %s676_s2 }
  0x2a   :  { %614 = vmatpush3.bf16.msra.mxu0 %v669_v50 }
  0x2b   :  { %615 = vmatprep.subr.bf16.mxu0 %v701_v37  ;;  %p683_p3 = por %p682_p2, %p681_p1 }
  0x2d   :  { %p684_p4 = pnand %p683_p3, %p677_p0 }
  0x2e   :  { %616 = vmatpush3.bf16.msra.mxu0 %v670_v51 }
  0x2f   :  { %617 = vmatprep.subr.bf16.mxu0 %v701_v37 }
  0x32   :  { %618 = vmatpush3.bf16.msra.mxu0 %v671_v52 }
  0x33   :  { %619 = vmatprep.subr.bf16.mxu0 %v701_v37 }
  0x36   :  { %620 = vmatpush3.bf16.msra.mxu0 %v672_v53 }
  0x37   :  { %621 = vmatprep.subr.bf16.mxu0 %v701_v37 }
  0x3a   :  { %622 = vmatpush3.bf16.msra.mxu0 %v673_v54 }
  0x3b   :  { %623 = vmatprep.subr.bf16.mxu0 %v701_v37 }
  0x3e   :  { %624 = vmatpush3.bf16.msra.mxu0 %v674_v55 }
  0x3f   :  { %625 = vmatprep.subr.bf16.mxu0 %v701_v37 }
  0x42   :  { %626 = vmatpush3.bf16.msra.mxu0 %v675_v56 }
  0x45   :  { %628 = vmatmul.mubr.bf16.vlgmr.msra.gmra.mrb[4].mxu0 %v53_v58 }
  0xf8   :  { %v574_v59 = vpop.f32.mrb[0].mxu0  ;;  %v596_v60 = vpop.f32.mrb[0].mxu1 }
  0xf9   :  { %v575_v62 = vpop.f32.mrb[1].mxu0  ;;  %v597_v63 = vpop.f32.mrb[1].mxu1 }
  0xfa   :  { %v576_v0 = vadd.f32 %v575_v62, %v574_v59  ;;  %v577_v1 = vpop.f32.mrb[2].mxu0  ;;  %v598_v2 = vadd.f32 %v597_v63, %v596_v60  ;;  %v599_v3 = vpop.f32.mrb[2].mxu1 }
  0xfb   :  { %v578_v4 = vpop.f32.mrb[3].mxu0  ;;  %v600_v5 = vpop.f32.mrb[3].mxu1 }
  0xfc   :  { %v416_v6 = vadd.f32 %v576_v0, %v517_v61 }
  0xfe   :  { %v456_v7 = vadd.f32 %v598_v2, %v416_v6 }
 0x118   :  { %v495_v8 = vpop.f32.mrb[4].mxu0 }
 0x119   :  { %v496_v9 = vadd.f32 %v495_v8, %v456_v7  ;;  %v629_v10 = vpop.f32.mrb[5].mxu0 }
 0x11a   :  { %v498_v11 = vpop.f32.mrb[6].mxu0 }
 0x11b   :  { %501 = vst [vmem:[#allocation2] sm:$0x3] %v496_v9  ;;  %v630_v12 = vpop.f32.mrb[7].mxu0 }
 0x11c   :  { %687 = shalt.err (!%p684_p4)
}
 0x11d   :  { %s688_s19 = scalar_lea.hbm %s868_s3, 32 }
 0x11e   :  { %p689_p5 = scmp.ne.s32.totalorder %s868_s3, %s688_s19  ;;  %p692_p6 = scmp.lt.u32.totalorder %s688_s19, %s868_s3 }
 0x120   :  { %p694_p7 = pnand %p692_p6, %p689_p5 }
 0x122   :  { %697 = shalt.err (!%p694_p7)
}
 0x123   :  { %511 = dma.vmem_to_hbm [thread:$0]  %s509_s1, 32, %s868_s3, [#allocation3]  }
 0x124   :  { %698 = dma.done.wait [#allocation3], 32  }
 0x125   :  { %699 = vsyncadd [#allocation3], 4294967264 }
 0x126   :  { %515 = vsyncpa [#allocation3], 1 }

</bundles_post_ra>
